<compile_context>
chip_gen: v6e
topology: v6e:2x2x1
jax: 0.10.0
libtpu: 0.0.40
codegen_flags: <defaults>
</compile_context>

<pallas_src>
import functools

import jax
import jax.numpy as jnp
from jax.experimental import pallas as pl
from jax.experimental.pallas import tpu as pltpu


# -----------------------------------------------------------------------------
# Fused kernel: Bt images per grid step, stacked in 32-row slots along sublanes.
# Row layout per image bi (phys row = bi*32 + r):
#   input image rows   r = 0..27   (28..31 zero pad)
#   conv1 output rows  r = 0..23
#   pool1 output rows  r = 0,2,..,22   (stride 2)
#   conv2 output rows  r = 0,2,..,14   (stride 2)
#   pool2 output rows  r = 0,4,8,12    (stride 4)
# -----------------------------------------------------------------------------
def _lenet_fused_kernel(x_ref,
                        w1_ref, b1_ref, ls1_ref,
                        w2_ref, b2_ref, ls2_ref,
                        wfc1_ref, bfc1_ref, wfc2_ref, bfc2_ref,
                        wout_ref, bout_ref,
                        o_ref, *, bt):
    f32, bf16 = jnp.float32, jnp.bfloat16
    rows = bt * 32                              # sublane extent of the activation slab

    def shift_rows_up(a, k):
        """out[r, :] = a[r+k, :]; bottom k rows become zeros (land in unused slots)."""
        if k == 0:
            return a
        pad = jnp.zeros((k, a.shape[1]), a.dtype)
        return jnp.concatenate([a[k:, :], pad], axis=0)

    def shift_lanes_up(a, k):
        """out[:, l] = a[:, l+k]; top k lanes become zeros (land in unused lanes)."""
        pad = jnp.zeros((a.shape[0], k), a.dtype)
        return jnp.concatenate([a[:, k:], pad], axis=1)

    x = x_ref[...]                                              # (rows, 28) f32

    # ---- conv1 (5x5, 1->6) + ReLU: ONE K-fused matmul, lanes = x*6 + ch -------
    lhs1 = jnp.concatenate([shift_rows_up(x, kh) for kh in range(5)], axis=1)
    c1 = jnp.dot(lhs1.astype(bf16), w1_ref[...], preferred_element_type=f32)
    a1 = jnp.maximum(c1 + b1_ref[...], 0.0)                     # (rows, 144)

    # ---- maxpool 2x2 #1: VPU max + one lane-compaction matmul -----------------
    rmax1 = jnp.maximum(a1, shift_rows_up(a1, 1))               # rows 2p hold row-max
    lmax1 = jnp.maximum(rmax1, shift_lanes_up(rmax1, 6))
    p1 = jnp.dot(lmax1, ls1_ref[...], preferred_element_type=f32)   # (rows, 72)

    # ---- conv2 (5x5, 6->12) + ReLU: ONE K-fused matmul, lanes = x*12 + ch -----
    lhs2 = jnp.concatenate([shift_rows_up(p1, 2 * kh) for kh in range(5)], axis=1)
    c2 = jnp.dot(lhs2.astype(bf16), w2_ref[...], preferred_element_type=f32)
    a2 = jnp.maximum(c2 + b2_ref[...], 0.0)                     # (rows, 96)

    # ---- maxpool 2x2 #2 -------------------------------------------------------
    rmax2 = jnp.maximum(a2, shift_rows_up(a2, 2))               # rows 4q hold row-max
    lmax2 = jnp.maximum(rmax2, shift_lanes_up(rmax2, 12))
    p2 = jnp.dot(lmax2, ls2_ref[...], preferred_element_type=f32)   # (rows, 48)

    # ---- gather the 4 feature rows of every image into one 192-lane row -------
    img_id = jax.lax.broadcasted_iota(jnp.int32, (bt, rows), 0)
    row_id = jax.lax.broadcasted_iota(jnp.int32, (bt, rows), 1)
    feats = jnp.concatenate(
        [jnp.dot((row_id == img_id * 32 + 4 * q).astype(f32), p2,
                 preferred_element_type=f32)
         for q in range(4)], axis=1)                            # (bt, 192)

    # ---- fc1 -> fc2 -> out, batched over the Bt images ------------------------
    h1 = jnp.maximum(
        jnp.dot(feats.astype(bf16), wfc1_ref[...], preferred_element_type=f32)
        + bfc1_ref[...], 0.0)
    h2 = jnp.maximum(
        jnp.dot(h1.astype(bf16), wfc2_ref[...], preferred_element_type=f32)
        + bfc2_ref[...], 0.0)
    o_ref[...] = (jnp.dot(h2.astype(bf16), wout_ref[...],
                          preferred_element_type=f32) + bout_ref[...])


# -----------------------------------------------------------------------------
# One-time parameter repacking (outside the jitted forward)
# -----------------------------------------------------------------------------
def _banded_conv_weight(w, in_w):
    """w: (O, C, 5, 5) torch-OIHW -> (5*in_w*C, out_w*O) K-fused banded matrix with
    W[kh*in_w*C + (j+kw)*C + c, j*O + o] = w[o, c, kh, kw]."""
    O, C, KH, KW = w.shape
    out_w = in_w - KW + 1
    kh_i, j_i, kw_i, c_i, o_i = jnp.meshgrid(
        jnp.arange(KH), jnp.arange(out_w), jnp.arange(KW),
        jnp.arange(C), jnp.arange(O), indexing="ij")
    vals = w[o_i, c_i, kh_i, kw_i]
    row_i = (j_i + kw_i) * C + c_i
    col_i = j_i * O + o_i
    wb = jnp.zeros((KH, in_w * C, out_w * O), w.dtype)
    wb = wb.at[kh_i, row_i, col_i].set(vals)
    return wb.reshape(KH * in_w * C, out_w * O)


def _lane_pool_selector(w_sp, c):
    """(w_sp*c, (w_sp//2)*c) 0/1 matrix compacting even x-positions out of a lane
    layout l = x*c + ch (right-multiplication)."""
    wp = w_sp // 2
    j_i, c_i = jnp.meshgrid(jnp.arange(wp), jnp.arange(c), indexing="ij")
    sel = jnp.zeros((w_sp * c, wp * c), jnp.float32)
    return sel.at[(2 * j_i) * c + c_i, j_i * c + c_i].set(1.0)


def prepare_params(params):
    """Repack torch-layout parameters into the kernel's VMEM-resident matrices."""
    f32, bf16 = jnp.float32, jnp.bfloat16
    w1 = params["conv1_w"].astype(f32)      # (6, 1, 5, 5)
    b1 = params["conv1_b"].astype(f32)
    w2 = params["conv2_w"].astype(f32)      # (12, 6, 5, 5)
    b2 = params["conv2_b"].astype(f32)
    fc1_w = params["fc1_w"].astype(f32)     # (120, 192)
    fc1_b = params["fc1_b"].astype(f32)
    fc2_w = params["fc2_w"].astype(f32)     # (60, 120)
    fc2_b = params["fc2_b"].astype(f32)
    out_w = params["out_w"].astype(f32)     # (10, 60)
    out_b = params["out_b"].astype(f32)

    w1cat = _banded_conv_weight(w1, in_w=28).astype(bf16)    # (140, 144)
    w2cat = _banded_conv_weight(w2, in_w=12).astype(bf16)    # (360, 96)
    b1row = jnp.tile(b1, 24)[None, :]                        # (1, 144), lane = x*6+ch
    b2row = jnp.tile(b2, 8)[None, :]                         # (1, 96),  lane = x*12+ch

    ls1 = _lane_pool_selector(24, 6)                         # (144, 72) f32
    ls2 = _lane_pool_selector(8, 12)                         # (96, 48)  f32

    # fc1 weight permuted to the kernel's (row q=m, lane = n*12 + o) feature layout,
    # flattened to (192, 120) with row index m*48 + n*12 + o.
    # PyTorch flatten order of the (12, 4, 4) feature map is f = o*16 + m*4 + n.
    m_i, n_i, o_i = jnp.meshgrid(jnp.arange(4), jnp.arange(4), jnp.arange(12),
                                 indexing="ij")
    flat = o_i * 16 + m_i * 4 + n_i
    wfc1 = fc1_w.T[flat].reshape(192, 120).astype(bf16)
    bfc1 = fc1_b[None, :]                                    # (1, 120)

    wfc2 = fc2_w.T.astype(bf16)                              # (120, 60)
    bfc2 = fc2_b[None, :]                                    # (1, 60)

    wout = jnp.zeros((60, 128), f32).at[:, :10].set(out_w.T).astype(bf16)
    bout = jnp.zeros((1, 128), f32).at[0, :10].set(out_b)

    return (w1cat, b1row, ls1, w2cat, b2row, ls2,
            wfc1, bfc1, wfc2, bfc2, wout, bout)


# -----------------------------------------------------------------------------
# Forward pass wrapper (single pallas_call, batch-tiled grid)
# -----------------------------------------------------------------------------
def lenet_pallas_forward(prepared, x_nchw, *, bt=8):
    """x_nchw: (B, 1, 28, 28) -> (B, 10) logits.  bt = images per grid step (sweepable)."""
    B = x_nchw.shape[0]
    bpad = ((B + bt - 1) // bt) * bt
    x = x_nchw.reshape(B, 28, 28).astype(jnp.float32)
    # 32-row slot per image (28 real rows + 4 zero rows) stacked along sublanes;
    # batch zero-padded to a multiple of the per-step tile Bt.
    x = jnp.pad(x, ((0, bpad - B), (0, 4), (0, 0)))
    x_tall = x.reshape(bpad * 32, 28)

    in_specs = [pl.BlockSpec((bt * 32, 28), lambda i: (i, 0))]
    # Constant index maps -> repacked weights stay resident in VMEM across all steps.
    in_specs += [pl.BlockSpec(tuple(p.shape), lambda i, _n=p.ndim: (0,) * _n)
                 for p in prepared]

    out_pad = pl.pallas_call(
        functools.partial(_lenet_fused_kernel, bt=bt),
        out_shape=jax.ShapeDtypeStruct((bpad, 128), jnp.float32),
        grid=(bpad // bt,),
        in_specs=in_specs,
        out_specs=pl.BlockSpec((bt, 128), lambda i: (i, 0)),
        compiler_params=pltpu.CompilerParams(
            dimension_semantics=("parallel",)),
    )(x_tall, *prepared)
    return out_pad[:B, :10]


# -----------------------------------------------------------------------------
# Parameter init (deterministic, PyTorch-like uniform fan-in init)
# -----------------------------------------------------------------------------
def init_params(key):
    ks = jax.random.split(key, 10)

    def u(k, shape, fan_in):
        bound = 1.0 / float(fan_in) ** 0.5
        return jax.random.uniform(k, shape, jnp.float32, -bound, bound)

    return dict(
        conv1_w=u(ks[0], (6, 1, 5, 5), 1 * 25),
        conv1_b=u(ks[1], (6,), 1 * 25),
        conv2_w=u(ks[2], (12, 6, 5, 5), 6 * 25),
        conv2_b=u(ks[3], (12,), 6 * 25),
        fc1_w=u(ks[4], (120, 12 * 4 * 4), 12 * 4 * 4),
        fc1_b=u(ks[5], (120,), 12 * 4 * 4),
        fc2_w=u(ks[6], (60, 120), 120),
        fc2_b=u(ks[7], (60,), 120),
        out_w=u(ks[8], (10, 60), 60),
        out_b=u(ks[9], (10,), 60),
    )


# Pure-JAX reference (HIGHEST precision) for the correctness check.
def reference_forward(params, x_nchw):
    hp = jax.lax.Precision.HIGHEST

    def conv(x, w, b):
        y = jax.lax.conv_general_dilated(
            x, w, (1, 1), "VALID",
            dimension_numbers=("NCHW", "OIHW", "NCHW"), precision=hp)
        return jax.nn.relu(y + b[None, :, None, None])

    def pool(x):
        return jax.lax.reduce_window(x, -jnp.inf, jax.lax.max,
                                     (1, 1, 2, 2), (1, 1, 2, 2), "VALID")

    t = pool(conv(x_nchw, params["conv1_w"], params["conv1_b"]))
    t = pool(conv(t, params["conv2_w"], params["conv2_b"]))
    t = t.reshape(t.shape[0], -1)
    t = jax.nn.relu(jnp.dot(t, params["fc1_w"].T, precision=hp) + params["fc1_b"])
    t = jax.nn.relu(jnp.dot(t, params["fc2_w"].T, precision=hp) + params["fc2_b"])
    return jnp.dot(t, params["out_w"].T, precision=hp) + params["out_b"]


if __name__ == "__main__":
    key = jax.random.PRNGKey(0)
    k_param, k_x = jax.random.split(key)
    params = init_params(k_param)
    prepared = prepare_params(params)            # one-time weight repacking
    B = 16                                       # 2 grid steps at Bt=8 (keeps both v7x TCs busy)
    x = jax.random.normal(k_x, (B, 1, 28, 28), jnp.float32)

    fwd = jax.jit(functools.partial(lenet_pallas_forward, bt=8))
    out = jax.block_until_ready(fwd(prepared, x))
    assert out.shape == (B, 10)

    ref = reference_forward(params, x)
    err = float(jnp.max(jnp.abs(out - ref)))
    # Conv/FC matmuls use bf16 operands (f32 accumulation); selector matmuls and
    # elementwise math stay f32, so logits agree with the f32 reference to ~1e-3.
    assert err < 2e-2, f"mismatch vs reference: max abs err = {err}"

    print("KERNEL_OK")
</pallas_src>

<mosaic_0001>
module attributes {stable_mosaic.version = 11 : i64} {
  func.func @_lenet_fused_kernel(%arg0: i32, %arg1: memref<256x28xf32, #tpu.memory_space<vmem>>, %arg2: memref<140x144xbf16, #tpu.memory_space<vmem>>, %arg3: memref<1x144xf32, #tpu.memory_space<vmem>>, %arg4: memref<144x72xf32, #tpu.memory_space<vmem>>, %arg5: memref<360x96xbf16, #tpu.memory_space<vmem>>, %arg6: memref<1x96xf32, #tpu.memory_space<vmem>>, %arg7: memref<96x48xf32, #tpu.memory_space<vmem>>, %arg8: memref<192x120xbf16, #tpu.memory_space<vmem>>, %arg9: memref<1x120xf32, #tpu.memory_space<vmem>>, %arg10: memref<120x60xbf16, #tpu.memory_space<vmem>>, %arg11: memref<1x60xf32, #tpu.memory_space<vmem>>, %arg12: memref<60x128xbf16, #tpu.memory_space<vmem>>, %arg13: memref<1x128xf32, #tpu.memory_space<vmem>>, %arg14: memref<8x128xf32, #tpu.memory_space<vmem>>) attributes {dimension_semantics = [#tpu.dimension_semantics<parallel>], iteration_bounds = array<i64: 2>, scalar_prefetch = 0 : i64, scratch_operands = 0 : i64, tpu.core_type = #tpu.core_type<tc>, window_params = [{transform_indices = @transform_0, window_bounds = array<i64: 256, 28>}, {pipeline_mode = #tpu.pipeline_mode<synchronous>, transform_indices = @transform_1, window_bounds = array<i64: 140, 144>}, {pipeline_mode = #tpu.pipeline_mode<synchronous>, transform_indices = @transform_2, window_bounds = array<i64: 1, 144>}, {pipeline_mode = #tpu.pipeline_mode<synchronous>, transform_indices = @transform_3, window_bounds = array<i64: 144, 72>}, {pipeline_mode = #tpu.pipeline_mode<synchronous>, transform_indices = @transform_4, window_bounds = array<i64: 360, 96>}, {pipeline_mode = #tpu.pipeline_mode<synchronous>, transform_indices = @transform_5, window_bounds = array<i64: 1, 96>}, {pipeline_mode = #tpu.pipeline_mode<synchronous>, transform_indices = @transform_6, window_bounds = array<i64: 96, 48>}, {pipeline_mode = #tpu.pipeline_mode<synchronous>, transform_indices = @transform_7, window_bounds = array<i64: 192, 120>}, {pipeline_mode = #tpu.pipeline_mode<synchronous>, transform_indices = @transform_8, window_bounds = array<i64: 1, 120>}, {pipeline_mode = #tpu.pipeline_mode<synchronous>, transform_indices = @transform_9, window_bounds = array<i64: 120, 60>}, {pipeline_mode = #tpu.pipeline_mode<synchronous>, transform_indices = @transform_10, window_bounds = array<i64: 1, 60>}, {pipeline_mode = #tpu.pipeline_mode<synchronous>, transform_indices = @transform_11, window_bounds = array<i64: 60, 128>}, {pipeline_mode = #tpu.pipeline_mode<synchronous>, transform_indices = @transform_12, window_bounds = array<i64: 1, 128>}, {transform_indices = @transform_13, window_bounds = array<i64: 8, 128>}]} {
    %c0 = arith.constant 0 : index
    %c0_0 = arith.constant 0 : index
    %0 = vector.load %arg1[%c0, %c0_0] : memref<256x28xf32, #tpu.memory_space<vmem>>, vector<256x28xf32>
    %cst = arith.constant 0.000000e+00 : f32
    %1 = vector.broadcast %cst : f32 to vector<1x28xf32>
    %2 = vector.extract_strided_slice %0 {offsets = [1, 0], sizes = [255, 28], strides = [1, 1]} : vector<256x28xf32> to vector<255x28xf32>
    %3 = tpu.concatenate %2, %1 in 0 : vector<255x28xf32>, vector<1x28xf32> -> vector<256x28xf32>
    %cst_1 = arith.constant 0.000000e+00 : f32
    %4 = vector.broadcast %cst_1 : f32 to vector<2x28xf32>
    %5 = vector.extract_strided_slice %0 {offsets = [2, 0], sizes = [254, 28], strides = [1, 1]} : vector<256x28xf32> to vector<254x28xf32>
    %6 = tpu.concatenate %5, %4 in 0 : vector<254x28xf32>, vector<2x28xf32> -> vector<256x28xf32>
    %cst_2 = arith.constant 0.000000e+00 : f32
    %7 = vector.broadcast %cst_2 : f32 to vector<3x28xf32>
    %8 = vector.extract_strided_slice %0 {offsets = [3, 0], sizes = [253, 28], strides = [1, 1]} : vector<256x28xf32> to vector<253x28xf32>
    %9 = tpu.concatenate %8, %7 in 0 : vector<253x28xf32>, vector<3x28xf32> -> vector<256x28xf32>
    %cst_3 = arith.constant 0.000000e+00 : f32
    %10 = vector.broadcast %cst_3 : f32 to vector<4x28xf32>
    %11 = vector.extract_strided_slice %0 {offsets = [4, 0], sizes = [252, 28], strides = [1, 1]} : vector<256x28xf32> to vector<252x28xf32>
    %12 = tpu.concatenate %11, %10 in 0 : vector<252x28xf32>, vector<4x28xf32> -> vector<256x28xf32>
    %13 = tpu.concatenate %0, %3, %6, %9, %12 in 1 : vector<256x28xf32>, vector<256x28xf32>, vector<256x28xf32>, vector<256x28xf32>, vector<256x28xf32> -> vector<256x140xf32>
    %14 = arith.truncf %13 : vector<256x140xf32> to vector<256x140xbf16>
    %c0_4 = arith.constant 0 : index
    %c0_5 = arith.constant 0 : index
    %15 = vector.load %arg2[%c0_4, %c0_5] : memref<140x144xbf16, #tpu.memory_space<vmem>>, vector<140x144xbf16>
    %cst_6 = arith.constant dense<0.000000e+00> : vector<256x144xf32>
    %16 = tpu.matmul %14, %15, %cst_6 {dimension_numbers = #tpu.dot_dimension_numbers<[1], [0], [0], [1], [0, 0, 1, 1], [], []>} : vector<256x140xbf16>, vector<140x144xbf16>, vector<256x144xf32> -> vector<256x144xf32>
    %c0_7 = arith.constant 0 : index
    %c0_8 = arith.constant 0 : index
    %17 = vector.load %arg3[%c0_7, %c0_8] : memref<1x144xf32, #tpu.memory_space<vmem>>, vector<1x144xf32>
    %18 = vector.broadcast %17 : vector<1x144xf32> to vector<256x144xf32>
    %19 = arith.addf %16, %18 : vector<256x144xf32>
    %cst_9 = arith.constant 0.000000e+00 : f32
    %20 = vector.broadcast %cst_9 : f32 to vector<256x144xf32>
    %21 = arith.maximumf %19, %20 : vector<256x144xf32>
    %cst_10 = arith.constant 0.000000e+00 : f32
    %22 = vector.broadcast %cst_10 : f32 to vector<1x144xf32>
    %23 = vector.extract_strided_slice %21 {offsets = [1, 0], sizes = [255, 144], strides = [1, 1]} : vector<256x144xf32> to vector<255x144xf32>
    %24 = tpu.concatenate %23, %22 in 0 : vector<255x144xf32>, vector<1x144xf32> -> vector<256x144xf32>
    %25 = arith.maximumf %21, %24 : vector<256x144xf32>
    %cst_11 = arith.constant 0.000000e+00 : f32
    %26 = vector.broadcast %cst_11 : f32 to vector<256x6xf32>
    %27 = vector.extract_strided_slice %25 {offsets = [0, 6], sizes = [256, 138], strides = [1, 1]} : vector<256x144xf32> to vector<256x138xf32>
    %28 = tpu.concatenate %27, %26 in 1 : vector<256x138xf32>, vector<256x6xf32> -> vector<256x144xf32>
    %29 = arith.maximumf %25, %28 : vector<256x144xf32>
    %c0_12 = arith.constant 0 : index
    %c0_13 = arith.constant 0 : index
    %30 = vector.load %arg4[%c0_12, %c0_13] : memref<144x72xf32, #tpu.memory_space<vmem>>, vector<144x72xf32>
    %cst_14 = arith.constant dense<0.000000e+00> : vector<256x72xf32>
    %31 = tpu.matmul %29, %30, %cst_14 {dimension_numbers = #tpu.dot_dimension_numbers<[1], [0], [0], [1], [0, 0, 1, 1], [], []>} : vector<256x144xf32>, vector<144x72xf32>, vector<256x72xf32> -> vector<256x72xf32>
    %cst_15 = arith.constant 0.000000e+00 : f32
    %32 = vector.broadcast %cst_15 : f32 to vector<2x72xf32>
    %33 = vector.extract_strided_slice %31 {offsets = [2, 0], sizes = [254, 72], strides = [1, 1]} : vector<256x72xf32> to vector<254x72xf32>
    %34 = tpu.concatenate %33, %32 in 0 : vector<254x72xf32>, vector<2x72xf32> -> vector<256x72xf32>
    %cst_16 = arith.constant 0.000000e+00 : f32
    %35 = vector.broadcast %cst_16 : f32 to vector<4x72xf32>
    %36 = vector.extract_strided_slice %31 {offsets = [4, 0], sizes = [252, 72], strides = [1, 1]} : vector<256x72xf32> to vector<252x72xf32>
    %37 = tpu.concatenate %36, %35 in 0 : vector<252x72xf32>, vector<4x72xf32> -> vector<256x72xf32>
    %cst_17 = arith.constant 0.000000e+00 : f32
    %38 = vector.broadcast %cst_17 : f32 to vector<6x72xf32>
    %39 = vector.extract_strided_slice %31 {offsets = [6, 0], sizes = [250, 72], strides = [1, 1]} : vector<256x72xf32> to vector<250x72xf32>
    %40 = tpu.concatenate %39, %38 in 0 : vector<250x72xf32>, vector<6x72xf32> -> vector<256x72xf32>
    %cst_18 = arith.constant 0.000000e+00 : f32
    %41 = vector.broadcast %cst_18 : f32 to vector<8x72xf32>
    %42 = vector.extract_strided_slice %31 {offsets = [8, 0], sizes = [248, 72], strides = [1, 1]} : vector<256x72xf32> to vector<248x72xf32>
    %43 = tpu.concatenate %42, %41 in 0 : vector<248x72xf32>, vector<8x72xf32> -> vector<256x72xf32>
    %44 = tpu.concatenate %31, %34, %37, %40, %43 in 1 : vector<256x72xf32>, vector<256x72xf32>, vector<256x72xf32>, vector<256x72xf32>, vector<256x72xf32> -> vector<256x360xf32>
    %45 = arith.truncf %44 : vector<256x360xf32> to vector<256x360xbf16>
    %c0_19 = arith.constant 0 : index
    %c0_20 = arith.constant 0 : index
    %46 = vector.load %arg5[%c0_19, %c0_20] : memref<360x96xbf16, #tpu.memory_space<vmem>>, vector<360x96xbf16>
    %cst_21 = arith.constant dense<0.000000e+00> : vector<256x96xf32>
    %47 = tpu.matmul %45, %46, %cst_21 {dimension_numbers = #tpu.dot_dimension_numbers<[1], [0], [0], [1], [0, 0, 1, 1], [], []>} : vector<256x360xbf16>, vector<360x96xbf16>, vector<256x96xf32> -> vector<256x96xf32>
    %c0_22 = arith.constant 0 : index
    %c0_23 = arith.constant 0 : index
    %48 = vector.load %arg6[%c0_22, %c0_23] : memref<1x96xf32, #tpu.memory_space<vmem>>, vector<1x96xf32>
    %49 = vector.broadcast %48 : vector<1x96xf32> to vector<256x96xf32>
    %50 = arith.addf %47, %49 : vector<256x96xf32>
    %cst_24 = arith.constant 0.000000e+00 : f32
    %51 = vector.broadcast %cst_24 : f32 to vector<256x96xf32>
    %52 = arith.maximumf %50, %51 : vector<256x96xf32>
    %cst_25 = arith.constant 0.000000e+00 : f32
    %53 = vector.broadcast %cst_25 : f32 to vector<2x96xf32>
    %54 = vector.extract_strided_slice %52 {offsets = [2, 0], sizes = [254, 96], strides = [1, 1]} : vector<256x96xf32> to vector<254x96xf32>
    %55 = tpu.concatenate %54, %53 in 0 : vector<254x96xf32>, vector<2x96xf32> -> vector<256x96xf32>
    %56 = arith.maximumf %52, %55 : vector<256x96xf32>
    %cst_26 = arith.constant 0.000000e+00 : f32
    %57 = vector.broadcast %cst_26 : f32 to vector<256x12xf32>
    %58 = vector.extract_strided_slice %56 {offsets = [0, 12], sizes = [256, 84], strides = [1, 1]} : vector<256x96xf32> to vector<256x84xf32>
    %59 = tpu.concatenate %58, %57 in 1 : vector<256x84xf32>, vector<256x12xf32> -> vector<256x96xf32>
    %60 = arith.maximumf %56, %59 : vector<256x96xf32>
    %c0_27 = arith.constant 0 : index
    %c0_28 = arith.constant 0 : index
    %61 = vector.load %arg7[%c0_27, %c0_28] : memref<96x48xf32, #tpu.memory_space<vmem>>, vector<96x48xf32>
    %cst_29 = arith.constant dense<0.000000e+00> : vector<256x48xf32>
    %62 = tpu.matmul %60, %61, %cst_29 {dimension_numbers = #tpu.dot_dimension_numbers<[1], [0], [0], [1], [0, 0, 1, 1], [], []>} : vector<256x96xf32>, vector<96x48xf32>, vector<256x48xf32> -> vector<256x48xf32>
    %63 = tpu.iota {dimensions = array<i32: 0>} : vector<8x256xi32>
    %64 = tpu.iota {dimensions = array<i32: 1>} : vector<8x256xi32>
    %c32_i32 = arith.constant 32 : i32
    %65 = vector.broadcast %c32_i32 : i32 to vector<8x256xi32>
    %66 = arith.muli %63, %65 : vector<8x256xi32>
    %c0_i32 = arith.constant 0 : i32
    %67 = vector.broadcast %c0_i32 : i32 to vector<8x256xi32>
    %68 = arith.addi %66, %67 : vector<8x256xi32>
    %69 = arith.cmpi eq, %64, %68 : vector<8x256xi32>
    %70 = arith.extui %69 : vector<8x256xi1> to vector<8x256xi32>
    %71 = arith.sitofp %70 : vector<8x256xi32> to vector<8x256xf32>
    %cst_30 = arith.constant dense<0.000000e+00> : vector<8x48xf32>
    %72 = tpu.matmul %71, %62, %cst_30 {dimension_numbers = #tpu.dot_dimension_numbers<[1], [0], [0], [1], [0, 0, 1, 1], [], []>} : vector<8x256xf32>, vector<256x48xf32>, vector<8x48xf32> -> vector<8x48xf32>
    %c32_i32_31 = arith.constant 32 : i32
    %73 = vector.broadcast %c32_i32_31 : i32 to vector<8x256xi32>
    %74 = arith.muli %63, %73 : vector<8x256xi32>
    %c4_i32 = arith.constant 4 : i32
    %75 = vector.broadcast %c4_i32 : i32 to vector<8x256xi32>
    %76 = arith.addi %74, %75 : vector<8x256xi32>
    %77 = arith.cmpi eq, %64, %76 : vector<8x256xi32>
    %78 = arith.extui %77 : vector<8x256xi1> to vector<8x256xi32>
    %79 = arith.sitofp %78 : vector<8x256xi32> to vector<8x256xf32>
    %cst_32 = arith.constant dense<0.000000e+00> : vector<8x48xf32>
    %80 = tpu.matmul %79, %62, %cst_32 {dimension_numbers = #tpu.dot_dimension_numbers<[1], [0], [0], [1], [0, 0, 1, 1], [], []>} : vector<8x256xf32>, vector<256x48xf32>, vector<8x48xf32> -> vector<8x48xf32>
    %c32_i32_33 = arith.constant 32 : i32
    %81 = vector.broadcast %c32_i32_33 : i32 to vector<8x256xi32>
    %82 = arith.muli %63, %81 : vector<8x256xi32>
    %c8_i32 = arith.constant 8 : i32
    %83 = vector.broadcast %c8_i32 : i32 to vector<8x256xi32>
    %84 = arith.addi %82, %83 : vector<8x256xi32>
    %85 = arith.cmpi eq, %64, %84 : vector<8x256xi32>
    %86 = arith.extui %85 : vector<8x256xi1> to vector<8x256xi32>
    %87 = arith.sitofp %86 : vector<8x256xi32> to vector<8x256xf32>
    %cst_34 = arith.constant dense<0.000000e+00> : vector<8x48xf32>
    %88 = tpu.matmul %87, %62, %cst_34 {dimension_numbers = #tpu.dot_dimension_numbers<[1], [0], [0], [1], [0, 0, 1, 1], [], []>} : vector<8x256xf32>, vector<256x48xf32>, vector<8x48xf32> -> vector<8x48xf32>
    %c32_i32_35 = arith.constant 32 : i32
    %89 = vector.broadcast %c32_i32_35 : i32 to vector<8x256xi32>
    %90 = arith.muli %63, %89 : vector<8x256xi32>
    %c12_i32 = arith.constant 12 : i32
    %91 = vector.broadcast %c12_i32 : i32 to vector<8x256xi32>
    %92 = arith.addi %90, %91 : vector<8x256xi32>
    %93 = arith.cmpi eq, %64, %92 : vector<8x256xi32>
    %94 = arith.extui %93 : vector<8x256xi1> to vector<8x256xi32>
    %95 = arith.sitofp %94 : vector<8x256xi32> to vector<8x256xf32>
    %cst_36 = arith.constant dense<0.000000e+00> : vector<8x48xf32>
    %96 = tpu.matmul %95, %62, %cst_36 {dimension_numbers = #tpu.dot_dimension_numbers<[1], [0], [0], [1], [0, 0, 1, 1], [], []>} : vector<8x256xf32>, vector<256x48xf32>, vector<8x48xf32> -> vector<8x48xf32>
    %97 = tpu.concatenate %72, %80, %88, %96 in 1 : vector<8x48xf32>, vector<8x48xf32>, vector<8x48xf32>, vector<8x48xf32> -> vector<8x192xf32>
    %98 = arith.truncf %97 : vector<8x192xf32> to vector<8x192xbf16>
    %c0_37 = arith.constant 0 : index
    %c0_38 = arith.constant 0 : index
    %99 = vector.load %arg8[%c0_37, %c0_38] : memref<192x120xbf16, #tpu.memory_space<vmem>>, vector<192x120xbf16>
    %cst_39 = arith.constant dense<0.000000e+00> : vector<8x120xf32>
    %100 = tpu.matmul %98, %99, %cst_39 {dimension_numbers = #tpu.dot_dimension_numbers<[1], [0], [0], [1], [0, 0, 1, 1], [], []>} : vector<8x192xbf16>, vector<192x120xbf16>, vector<8x120xf32> -> vector<8x120xf32>
    %c0_40 = arith.constant 0 : index
    %c0_41 = arith.constant 0 : index
    %101 = vector.load %arg9[%c0_40, %c0_41] : memref<1x120xf32, #tpu.memory_space<vmem>>, vector<1x120xf32>
    %102 = vector.broadcast %101 : vector<1x120xf32> to vector<8x120xf32>
    %103 = arith.addf %100, %102 : vector<8x120xf32>
    %cst_42 = arith.constant 0.000000e+00 : f32
    %104 = vector.broadcast %cst_42 : f32 to vector<8x120xf32>
    %105 = arith.maximumf %103, %104 : vector<8x120xf32>
    %106 = arith.truncf %105 : vector<8x120xf32> to vector<8x120xbf16>
    %c0_43 = arith.constant 0 : index
    %c0_44 = arith.constant 0 : index
    %107 = vector.load %arg10[%c0_43, %c0_44] : memref<120x60xbf16, #tpu.memory_space<vmem>>, vector<120x60xbf16>
    %cst_45 = arith.constant dense<0.000000e+00> : vector<8x60xf32>
    %108 = tpu.matmul %106, %107, %cst_45 {dimension_numbers = #tpu.dot_dimension_numbers<[1], [0], [0], [1], [0, 0, 1, 1], [], []>} : vector<8x120xbf16>, vector<120x60xbf16>, vector<8x60xf32> -> vector<8x60xf32>
    %c0_46 = arith.constant 0 : index
    %c0_47 = arith.constant 0 : index
    %109 = vector.load %arg11[%c0_46, %c0_47] : memref<1x60xf32, #tpu.memory_space<vmem>>, vector<1x60xf32>
    %110 = vector.broadcast %109 : vector<1x60xf32> to vector<8x60xf32>
    %111 = arith.addf %108, %110 : vector<8x60xf32>
    %cst_48 = arith.constant 0.000000e+00 : f32
    %112 = vector.broadcast %cst_48 : f32 to vector<8x60xf32>
    %113 = arith.maximumf %111, %112 : vector<8x60xf32>
    %114 = arith.truncf %113 : vector<8x60xf32> to vector<8x60xbf16>
    %c0_49 = arith.constant 0 : index
    %c0_50 = arith.constant 0 : index
    %115 = vector.load %arg12[%c0_49, %c0_50] : memref<60x128xbf16, #tpu.memory_space<vmem>>, vector<60x128xbf16>
    %cst_51 = arith.constant dense<0.000000e+00> : vector<8x128xf32>
    %116 = tpu.matmul %114, %115, %cst_51 {dimension_numbers = #tpu.dot_dimension_numbers<[1], [0], [0], [1], [0, 0, 1, 1], [], []>} : vector<8x60xbf16>, vector<60x128xbf16>, vector<8x128xf32> -> vector<8x128xf32>
    %c0_52 = arith.constant 0 : index
    %c0_53 = arith.constant 0 : index
    %117 = vector.load %arg13[%c0_52, %c0_53] : memref<1x128xf32, #tpu.memory_space<vmem>>, vector<1x128xf32>
    %118 = vector.broadcast %117 : vector<1x128xf32> to vector<8x128xf32>
    %119 = arith.addf %116, %118 : vector<8x128xf32>
    %c0_54 = arith.constant 0 : index
    %c0_55 = arith.constant 0 : index
    %120 = vector.load %arg14[%c0_54, %c0_55] : memref<8x128xf32, #tpu.memory_space<vmem>>, vector<8x128xf32>
    tpu.vector_store %arg14[%c0_54, %c0_55], %119 {strides = array<i32>} : memref<8x128xf32, #tpu.memory_space<vmem>>, vector<8x128xf32>,
    return
  }
  func.func @transform_0(%arg0: i32) -> (i32, i32) {
    %c0_i32 = arith.constant 0 : i32
    %c0_i32_0 = arith.constant 0 : i32
    return %arg0, %c0_i32 : i32, i32
  }
  func.func @transform_1(%arg0: i32) -> (i32, i32) {
    %c0_i32 = arith.constant 0 : i32
    %c0_i32_0 = arith.constant 0 : i32
    %c0_i32_1 = arith.constant 0 : i32
    return %c0_i32, %c0_i32_0 : i32, i32
  }
  func.func @transform_2(%arg0: i32) -> (i32, i32) {
    %c0_i32 = arith.constant 0 : i32
    %c0_i32_0 = arith.constant 0 : i32
    %c0_i32_1 = arith.constant 0 : i32
    return %c0_i32, %c0_i32_0 : i32, i32
  }
  func.func @transform_3(%arg0: i32) -> (i32, i32) {
    %c0_i32 = arith.constant 0 : i32
    %c0_i32_0 = arith.constant 0 : i32
    %c0_i32_1 = arith.constant 0 : i32
    return %c0_i32, %c0_i32_0 : i32, i32
  }
  func.func @transform_4(%arg0: i32) -> (i32, i32) {
    %c0_i32 = arith.constant 0 : i32
    %c0_i32_0 = arith.constant 0 : i32
    %c0_i32_1 = arith.constant 0 : i32
    return %c0_i32, %c0_i32_0 : i32, i32
  }
  func.func @transform_5(%arg0: i32) -> (i32, i32) {
    %c0_i32 = arith.constant 0 : i32
    %c0_i32_0 = arith.constant 0 : i32
    %c0_i32_1 = arith.constant 0 : i32
    return %c0_i32, %c0_i32_0 : i32, i32
  }
  func.func @transform_6(%arg0: i32) -> (i32, i32) {
    %c0_i32 = arith.constant 0 : i32
    %c0_i32_0 = arith.constant 0 : i32
    %c0_i32_1 = arith.constant 0 : i32
    return %c0_i32, %c0_i32_0 : i32, i32
  }
  func.func @transform_7(%arg0: i32) -> (i32, i32) {
    %c0_i32 = arith.constant 0 : i32
    %c0_i32_0 = arith.constant 0 : i32
    %c0_i32_1 = arith.constant 0 : i32
    return %c0_i32, %c0_i32_0 : i32, i32
  }
  func.func @transform_8(%arg0: i32) -> (i32, i32) {
    %c0_i32 = arith.constant 0 : i32
    %c0_i32_0 = arith.constant 0 : i32
    %c0_i32_1 = arith.constant 0 : i32
    return %c0_i32, %c0_i32_0 : i32, i32
  }
  func.func @transform_9(%arg0: i32) -> (i32, i32) {
    %c0_i32 = arith.constant 0 : i32
    %c0_i32_0 = arith.constant 0 : i32
    %c0_i32_1 = arith.constant 0 : i32
    return %c0_i32, %c0_i32_0 : i32, i32
  }
  func.func @transform_10(%arg0: i32) -> (i32, i32) {
    %c0_i32 = arith.constant 0 : i32
    %c0_i32_0 = arith.constant 0 : i32
    %c0_i32_1 = arith.constant 0 : i32
    return %c0_i32, %c0_i32_0 : i32, i32
  }
  func.func @transform_11(%arg0: i32) -> (i32, i32) {
    %c0_i32 = arith.constant 0 : i32
    %c0_i32_0 = arith.constant 0 : i32
    %c0_i32_1 = arith.constant 0 : i32
    return %c0_i32, %c0_i32_0 : i32, i32
  }
  func.func @transform_12(%arg0: i32) -> (i32, i32) {
    %c0_i32 = arith.constant 0 : i32
    %c0_i32_0 = arith.constant 0 : i32
    %c0_i32_1 = arith.constant 0 : i32
    return %c0_i32, %c0_i32_0 : i32, i32
  }
  func.func @transform_13(%arg0: i32) -> (i32, i32) {
    %c0_i32 = arith.constant 0 : i32
    %c0_i32_0 = arith.constant 0 : i32
    return %arg0, %c0_i32 : i32, i32
  }
}

</mosaic_0001>

<bundles_post_ra>
// kernel: lenet_pallas_forward.1
= control target key start
LH: loop header
LB: loop body
LE: loop exit
PB: predicated region body
PF: predicated region fallthrough
CT: control target
= control target key end

     0   :  { %18 = vsyncpa [#allocation3], 0  ;;  %s9866_s0 = inlined_call_operand.vmem [shape: f32[512,28], index: 0, kind: input, shape index: {}]   ;;  %s9867_s1 = inlined_call_operand.vmem [shape: bf16[140,144], index: 1, kind: input, shape index: {}]   ;;  %s9868_s2 = inlined_call_operand.vmem [shape: f32[1,144], index: 2, kind: input, shape index: {}]   ;;  %s9869_s3 = inlined_call_operand.vmem [shape: f32[144,72], index: 3, kind: input, shape index: {}]   ;;  %s9870_s4 = inlined_call_operand.vmem [shape: bf16[360,96], index: 4, kind: input, shape index: {}]   ;;  %s9871_s5 = inlined_call_operand.vmem [shape: f32[1,96], index: 5, kind: input, shape index: {}]   ;;  %s9872_s6 = inlined_call_operand.vmem [shape: f32[96,48], index: 6, kind: input, shape index: {}]   ;;  %s9873_s7 = inlined_call_operand.vmem [shape: bf16[192,120], index: 7, kind: input, shape index: {}]   ;;  %s9874_s8 = inlined_call_operand.vmem [shape: f32[1,120], index: 8, kind: input, shape index: {}]   ;;  %s9875_s9 = inlined_call_operand.vmem [shape: bf16[120,60], index: 9, kind: input, shape index: {}]   ;;  %s9876_s10 = inlined_call_operand.vmem [shape: f32[1,60], index: 10, kind: input, shape index: {}]   ;;  %s9877_s11 = inlined_call_operand.vmem [shape: bf16[60,128], index: 11, kind: input, shape index: {}]   ;;  %s9878_s12 = inlined_call_operand.vmem [shape: f32[1,128], index: 12, kind: input, shape index: {}]   ;;  %s9879_s13 = inlined_call_operand.hbm [shape: f32[16,128], index: 13, kind: output, shape index: {}]  }
   0x1   :  { %20 = vsyncpa [#allocation3 + $0x1], 0  ;;  %s7238_s25 = smov 0   ;;  %s7240_s26 = smov 0  }
   0x2   :  { %s7242_s27 = smov 0   ;;  %s7244_s28 = smov 0  }
   0x3 LB: > { %9903 = sst [smem:[#allocation5_spill]] %s7145_s27  ;;  %s7259_s29 = sadd.s32 4294967295, %s7149_s28   ;;  %s7149_s28 = sphi %s7244_s28, %s9944_s28   ;;  %s7145_s27 = sphi %s7242_s27, %s9946_s27   ;;  %s7141_s26 = sphi %s7240_s26, %s9948_s26   ;;  %s7137_s25 = sphi %s7238_s25, %s9947_s25  }
   0x4   : > { %s5627_s30 = sadd.s32 4294967294, %s7149_s28   ;;  %s7263_s14 = sadd.s32 1, %s7149_s28  }
   0x5   : > { %9904 = sst [smem:[#allocation6_spill]] %s7263_s14  ;;  %s311_s15 = sadd.s32 1, %s7145_s27 }
   0x6   : > { %s308_s16 = ssub.s32 %s7149_s28, %s7263_s14  ;;  %p321_p0 = scmp.ne.s32.totalorder %s7145_s27, %s7141_s26 }
   0x7   : > { %p309_p1 = scmp.eq.s32.totalorder %s308_s16, 0  ;;  %p322_p2 = scmp.eq.s32.totalorder %s7259_s29, 1 }
   0x8   : > { %p327_p3 = scmp.ne.s32.totalorder %s7141_s26, %s7137_s25  ;;  %p328_p4 = scmp.eq.s32.totalorder %s5627_s30, 1 }
   0x9   : > { %s7274_s17 = scalar_select %p309_p1, %s7145_s27, %s311_s15  }
   0xa   : > { %p7276_p5 = por %p322_p2, %p321_p0  ;;  %p7280_p6 = por %p328_p4, %p327_p3 }
   0xb   : > { %9905 = sst [smem:[#allocation7_spill]] %s7274_s17  ;;  %p5630_p7 = scmp.ge.s32.totalorder %s7149_s28, 1 }
   0xc   : > { %p391_p8 = scmp.lt.s32.totalorder %s7149_s28, 3 }
   0xe   : > { %p392_p9 = pnand %p5630_p7, %p391_p8 }
  0x10   : > { %395 = sbr.rel (%p392_p9) target bundleno = 2453 (0x995), region = 72 }
  0x15   : > { %s5632_s20 = sshll.u32 %s7259_s29, 5  ;;  %v7002_v0 = vld [vmem:[%s9867_s1 + $0x74] ss:$8 sps:$4 sm:$0xff]   ;;  %v7004_v1 = vld [vmem:[%s9867_s1 + $0x70] ss:$8 sps:$4 sm:$0xff]   ;;  %vm506_vm0 = vcmask 1046528  }
  0x16   : > { %p436_p10 = scmp.lt.s32.totalorder %s5632_s20, 63  ;;  %1495 = vmatprep.subr.bf16.mxu0 %v7002_v0  ;;  %v7005_v2 = vld [vmem:[%s9867_s1 + $0x64] ss:$8 sps:$4 sm:$0xff]   ;;  %v7007_v3 = vld [vmem:[%s9867_s1 + $0x60] ss:$8 sps:$4 sm:$0xff]   ;;  %vm638_vm1 = vcmask 1044480  }
  0x17   : > { %1496 = vmatpush1.bf16.msra.mxu0 %v7004_v1  ;;  %v7008_v4 = vld [vmem:[%s9867_s1 + $0x54] ss:$8 sps:$4 sm:$0xff]   ;;  %vm572_vm2 = vcmask 1045504   ;;  %vm704_vm3 = vcmask 1043456   ;;  %v7010_v12 = vld [vmem:[%s9867_s1 + $0x50] ss:$8 sps:$4 sm:$0xff]  }
  0x18   : > { %s9950_s20 = smov (!%p436_p10, %s5632_s20), 63  ;;  %1497 = vmatprep.subr.bf16.mxu0 %v7005_v2  ;;  %v7011_v17 = vld [vmem:[%s9867_s1 + $0x44] ss:$8 sps:$4 sm:$0xff]   ;;  %v7013_v32 = vld [vmem:[%s9867_s1 + $0x40] ss:$8 sps:$4 sm:$0xff]   ;;  %s7151_s16 = smov 28  }
  0x19   : > { %s5633_s27 = sshll.u32 %s9950_s20, 3  ;;  %s7152_s21 = smov 84   ;;  %v7014_v53 = vld [vmem:[%s9867_s1 + $0x34] ss:$8 sps:$4 sm:$0xff]   ;;  %v7016_v58 = vld [vmem:[%s9867_s1 + $0x30] ss:$8 sps:$4 sm:$0xff]  }
  0x1a   : > { %s7305_s24 = scalar_lea.vmem %s9866_s0, %s5633_s27  ;;  %s7153_s22 = smov 56   ;;  %v7017_v63 = vld [vmem:[%s9867_s1 + $0x24] ss:$8 sps:$4 sm:$0xff]   ;;  %v7019_v0 = vld [vmem:[%s9867_s1 + $0x20] ss:$8 sps:$4 sm:$0xff]   ;;  %vm1158_vm4 = vcmask 228352  }
  0x1b   : > { %v442_v5 = vld [vmem:[%s7305_s24] sm:$0xff]  ;;  %v443_v6 = vld [vmem:[%s7305_s24 + $0x8] sm:$0xff]  ;;  %v7310_v7 = vld [vmem:[%s7305_s24 + $0x10] sm:$0xff]  ;;  %1498 = vmatpush1.bf16.msra.mxu0 %v7007_v3  ;;  %s7154_s14 = smov 112   ;;  %vm1191_vm5 = vcmask 457728   ;;  %vm1224_vm6 = vcmask 687104  }
  0x1c   : > { %v507_v8 = vrot.slane %v442_v5, 1  ;;  %v508_v9 = vrot.slane %v443_v6, 1  ;;  %v510_v10 = vrot.slane %v7310_v7, 1  ;;  %v639_v11 = vrot.slane %v442_v5, 3  ;;  %1499 = vmatprep.subr.bf16.mxu0 %v7008_v4  ;;  %v445_v22 = vld [vmem:[%s7305_s24 + $0x18] sm:$0xff]  ;;  %v7325_v23 = vld [vmem:[%s7305_s24 + $0x20] sm:$0xff] }
  0x1d   : > { %v640_v13 = vrot.slane %v443_v6, 3  ;;  %v642_v14 = vrot.slane %v7310_v7, 3  ;;  %v573_v15 = vrot.slane %v442_v5, 2  ;;  %v574_v16 = vrot.slane %v443_v6, 2  ;;  %v7342_v41 = vld [vmem:[%s7305_s24 + $0x28] sm:$0xff]  ;;  %v7348_v46 = vld [vmem:[%s7305_s24 + $0x30] sm:$0xff] }
  0x1e   : > { %v509_v18 = vsel %vm506_vm0, %v507_v8, %v508_v9  ;;  %v511_v19 = vsel %vm506_vm0, %v508_v9, %v510_v10  ;;  %v576_v20 = vrot.slane %v7310_v7, 2  ;;  %v705_v21 = vrot.slane %v442_v5, 4  ;;  %v7383_v8 = vld [vmem:[%s7305_s24 + $0x40] sm:$0xff]  ;;  %v7020_v9 = vld [vmem:[%s9867_s1 + $0x14] ss:$8 sps:$4 sm:$0xff]   ;;  %s7156_s17 = smov 122  }
  0x1f   : > { %v6362_v24 = vpack.i.bf16 %v511_v19, %v509_v18  ;;  %v641_v25 = vsel %vm638_vm1, %v639_v11, %v640_v13  ;;  %v643_v26 = vsel %vm638_vm1, %v640_v13, %v642_v14  ;;  %v575_v27 = vsel %vm572_vm2, %v573_v15, %v574_v16  ;;  %1500 = vmatpush1.bf16.msra.mxu0 %v7010_v12  ;;  %v7022_v15 = vld [vmem:[%s9867_s1 + $0x10] ss:$8 sps:$4 sm:$0xff]   ;;  %s7159_s15 = smov 88   ;;  %s7165_s27 = smov 96  }
  0x20   : > { %v6372_v28 = vpack.i.bf16 %v643_v26, %v641_v25  ;;  %v577_v29 = vsel %vm572_vm2, %v574_v16, %v576_v20  ;;  %v706_v30 = vrot.slane %v443_v6, 4  ;;  %v708_v31 = vrot.slane %v7310_v7, 4  ;;  %1501 = vmatprep.subr.bf16.mxu0 %v7011_v17  ;;  %v449_v7 = vld [vmem:[%s7305_s24 + $0x38] sm:$0xff] }
  0x21   : > { %6363 = vrot.lane.b32.xlu0 %v6362_v24, %s7151_s16  ;;  %v6367_v33 = vpack.i.bf16 %v577_v29, %v575_v27  ;;  %v512_v34 = vrot.slane %v445_v22, 1  ;;  %v514_v35 = vrot.slane %v7325_v23, 1  ;;  %v578_v36 = vrot.slane %v445_v22, 2  ;;  %v7409_v29 = vld [vmem:[%s7305_s24 + $0x50] sm:$0xff] }
  0x22   : > { %6373 = vrot.lane.b32.xlu1 %v6372_v28, %s7152_s21  ;;  %v707_v37 = vsel %vm704_vm3, %v705_v21, %v706_v30  ;;  %v709_v38 = vsel %vm704_vm3, %v706_v30, %v708_v31  ;;  %v580_v39 = vrot.slane %v7325_v23, 2  ;;  %v644_v40 = vrot.slane %v445_v22, 3  ;;  %v451_v28 = vld [vmem:[%s7305_s24 + $0x48] sm:$0xff] }
  0x23   : > { %v6377_v42 = vpack.i.bf16 %v709_v38, %v707_v37  ;;  %v513_v43 = vsel %vm506_vm0, %v510_v10, %v512_v34  ;;  %v515_v44 = vsel %vm506_vm0, %v512_v34, %v514_v35  ;;  %v579_v45 = vsel %vm572_vm2, %v576_v20, %v578_v36  ;;  %1502 = vmatpush1.bf16.msra.mxu0 %v7013_v32  ;;  %v7025_v30 = vld [vmem:[%s9867_s1] ss:$8 sps:$4 sm:$0xff]  }
  0x24   : > { %v581_v47 = vsel %vm572_vm2, %v578_v36, %v580_v39  ;;  %v646_v48 = vrot.slane %v7325_v23, 3  ;;  %v6382_v49 = vpack.i.bf16 %v515_v44, %v513_v43  ;;  %v710_v50 = vrot.slane %v445_v22, 4  ;;  %1503 = vmatprep.subr.bf16.mxu0 %v7014_v53 }
  0x25   : > { %6368 = vrot.lane.b32.xlu0 %v6367_v33, %s7153_s22  ;;  %v712_v51 = vrot.slane %v7325_v23, 4  ;;  %v516_v52 = vrot.slane %v7342_v41, 1  ;;  %v6387_v54 = vpack.i.bf16 %v581_v47, %v579_v45  ;;  %v645_v55 = vsel %vm638_vm1, %v642_v14, %v644_v40  ;;  %v7023_v23 = vld [vmem:[%s9867_s1 + $0x4] ss:$8 sps:$4 sm:$0xff]  }
  0x26   : > { %6378 = vrot.lane.b32.xlu1 %v6377_v42, %s7154_s14  ;;  %v647_v56 = vsel %vm638_vm1, %v644_v40, %v646_v48  ;;  %v518_v57 = vrot.slane %v7348_v46, 1  ;;  %v711_v59 = vsel %vm704_vm3, %v708_v31, %v710_v50  ;;  %v582_v61 = vrot.slane %v7342_v41, 2  ;;  %v7026_v31 = vld [vmem:[%s9867_s1 + $0x84] ss:$8 sps:$4 sm:$0x3f]  }
  0x27   : > { %v713_v60 = vsel %vm704_vm3, %v710_v50, %v712_v51  ;;  %v584_v62 = vrot.slane %v7348_v46, 2  ;;  %1504 = vmatpush1.bf16.msra.mxu0 %v7016_v58  ;;  %v6392_v1 = vpack.i.bf16 %v647_v56, %v645_v55  ;;  %v517_v2 = vsel %vm506_vm0, %v514_v35, %v516_v52  ;;  %v7438_v56 = vld [vmem:[%s7305_s24 + $0x58] sm:$0xff] }
  0x28   : > { %v519_v3 = vsel %vm506_vm0, %v516_v52, %v518_v57  ;;  %1505 = vmatprep.subr.bf16.mxu0 %v7017_v63  ;;  %v6397_v4 = vpack.i.bf16 %v713_v60, %v711_v59  ;;  %v648_v5 = vrot.slane %v7342_v41, 3  ;;  %v650_v6 = vrot.slane %v7348_v46, 3 }
  0x29   : > { %6383 = vrot.lane.b32.xlu0 %v6382_v49, %s7151_s16  ;;  %v583_v10 = vsel %vm572_vm2, %v580_v39, %v582_v61  ;;  %v585_v11 = vsel %vm572_vm2, %v582_v61, %v584_v62  ;;  %v714_v12 = vrot.slane %v7342_v41, 4  ;;  %v716_v13 = vrot.slane %v7348_v46, 4 }
  0x2a   : > { %6388 = vrot.lane.b32.xlu1 %v6387_v54, %s7153_s22  ;;  %v6402_v14 = vpack.i.bf16 %v519_v3, %v517_v2  ;;  %v520_v16 = vrot.slane %v449_v7, 1  ;;  %v522_v17 = vrot.slane %v7383_v8, 1  ;;  %v586_v18 = vrot.slane %v449_v7, 2 }
  0x2b   : > { %1506 = vmatpush1.bf16.msra.mxu0 %v7019_v0  ;;  %v588_v19 = vrot.slane %v7383_v8, 2  ;;  %v6407_v20 = vpack.i.bf16 %v585_v11, %v583_v10  ;;  %v649_v21 = vsel %vm638_vm1, %v646_v48, %v648_v5  ;;  %v651_v22 = vsel %vm638_vm1, %v648_v5, %v650_v6 }
  0x2c   : > { %1507 = vmatprep.subr.bf16.mxu0 %v7020_v9  ;;  %v715_v24 = vsel %vm704_vm3, %v712_v51, %v714_v12  ;;  %v717_v25 = vsel %vm704_vm3, %v714_v12, %v716_v13  ;;  %v652_v26 = vrot.slane %v449_v7, 3  ;;  %v654_v27 = vrot.slane %v7383_v8, 3 }
  0x2d   : > { %6393 = vrot.lane.b32.xlu0 %v6392_v1, %s7152_s21  ;;  %v718_v32 = vrot.slane %v449_v7, 4  ;;  %v720_v33 = vrot.slane %v7383_v8, 4  ;;  %v6412_v34 = vpack.i.bf16 %v651_v22, %v649_v21  ;;  %v521_v35 = vsel %vm506_vm0, %v518_v57, %v520_v16  ;;  %v7441_v57 = vld [vmem:[%s7305_s24 + $0x60] sm:$0xff]  ;;  %v7459_v7 = vld [vmem:[%s7305_s24 + $0x70] sm:$0xff] }
  0x2e   : > { %6398 = vrot.lane.b32.xlu1 %v6397_v4, %s7154_s14  ;;  %v523_v36 = vsel %vm506_vm0, %v520_v16, %v522_v17  ;;  %v6417_v37 = vpack.i.bf16 %v717_v25, %v715_v24  ;;  %v587_v38 = vsel %vm572_vm2, %v584_v62, %v586_v18  ;;  %v589_v39 = vsel %vm572_vm2, %v586_v18, %v588_v19 }
  0x2f   : > { %1508 = vmatpush1.bf16.msra.mxu0 %v7022_v15  ;;  %v6422_v40 = vpack.i.bf16 %v523_v36, %v521_v35  ;;  %v524_v41 = vrot.slane %v451_v28, 1  ;;  %v526_v42 = vrot.slane %v7409_v29, 1  ;;  %v653_v43 = vsel %vm638_vm1, %v650_v6, %v652_v26  ;;  %v7456_v6 = vld [vmem:[%s7305_s24 + $0x68] sm:$0xff] }
  0x30   : > { %1509 = vmatprep.subr.bf16.mxu0 %v7023_v23  ;;  %v655_v44 = vsel %vm638_vm1, %v652_v26, %v654_v27  ;;  %v590_v45 = vrot.slane %v451_v28, 2  ;;  %v592_v46 = vrot.slane %v7409_v29, 2  ;;  %v6427_v47 = vpack.i.bf16 %v589_v39, %v587_v38 }
  0x31   : > { %6403 = vrot.lane.b32.xlu0 %v6402_v14, %s7151_s16  ;;  %v719_v48 = vsel %vm704_vm3, %v716_v13, %v718_v32  ;;  %v721_v49 = vsel %vm704_vm3, %v718_v32, %v720_v33  ;;  %v6432_v50 = vpack.i.bf16 %v655_v44, %v653_v43  ;;  %v525_v51 = vsel %vm506_vm0, %v522_v17, %v524_v41 }
  0x32   : > { %6408 = vrot.lane.b32.xlu1 %v6407_v20, %s7153_s22  ;;  %v6437_v52 = vpack.i.bf16 %v721_v49, %v719_v48  ;;  %v527_v53 = vsel %vm506_vm0, %v524_v41, %v526_v42  ;;  %v656_v54 = vrot.slane %v451_v28, 3  ;;  %v658_v55 = vrot.slane %v7409_v29, 3  ;;  %v7505_v48 = vld [vmem:[%s7305_s24 + $0x88] sm:$0xff]  ;;  %v7508_v49 = vld [vmem:[%s7305_s24 + $0x90] sm:$0xff] }
  0x33   : > { %1510 = vmatpush1.bf16.msra.mxu0 %v7025_v30  ;;  %v591_v58 = vsel %vm572_vm2, %v588_v19, %v590_v45  ;;  %v593_v59 = vsel %vm572_vm2, %v590_v45, %v592_v46  ;;  %v722_v60 = vrot.slane %v451_v28, 4  ;;  %v724_v61 = vrot.slane %v7409_v29, 4 }
  0x34   : > { %5652 = vmatprep.subr.msk.bf16.mxu0 %vm572_vm2, %v7026_v31  ;;  %v6442_v62 = vpack.i.bf16 %v527_v53, %v525_v51  ;;  %v6447_v63 = vpack.i.bf16 %v593_v59, %v591_v58  ;;  %v528_v0 = vrot.slane %v7438_v56, 1  ;;  %v530_v1 = vrot.slane %v7441_v57, 1 }
  0x35   : > { %6413 = vrot.lane.b32.xlu0 %v6412_v34, %s7152_s21  ;;  %v657_v2 = vsel %vm638_vm1, %v654_v27, %v656_v54  ;;  %v659_v3 = vsel %vm638_vm1, %v656_v54, %v658_v55  ;;  %v594_v4 = vrot.slane %v7438_v56, 2  ;;  %v596_v5 = vrot.slane %v7441_v57, 2  ;;  %v7489_v34 = vld [vmem:[%s7305_s24 + $0x80] sm:$0xff] }
  0x36   : > { %6418 = vrot.lane.b32.xlu1 %v6417_v37, %s7154_s14  ;;  %v723_v8 = vsel %vm704_vm3, %v720_v33, %v722_v60  ;;  %v725_v9 = vsel %vm704_vm3, %v722_v60, %v724_v61  ;;  %v660_v10 = vrot.slane %v7438_v56, 3  ;;  %v662_v11 = vrot.slane %v7441_v57, 3  ;;  %v7486_v33 = vld [vmem:[%s7305_s24 + $0x78] sm:$0xff] }
  0x37   : > { %v6452_v12 = vpack.i.bf16 %v659_v3, %v657_v2  ;;  %v529_v13 = vsel %vm506_vm0, %v526_v42, %v528_v0  ;;  %v6457_v14 = vpack.i.bf16 %v725_v9, %v723_v8  ;;  %v531_v15 = vsel %vm506_vm0, %v528_v0, %v530_v1 }
  0x38   : > { %v595_v16 = vsel %vm572_vm2, %v592_v46, %v594_v4  ;;  %v597_v17 = vsel %vm572_vm2, %v594_v4, %v596_v5  ;;  %v726_v18 = vrot.slane %v7438_v56, 4  ;;  %v728_v19 = vrot.slane %v7441_v57, 4 }
  0x39   : > { %6423 = vrot.lane.b32.xlu0 %v6422_v40, %s7151_s16  ;;  %v532_v20 = vrot.slane %v7456_v6, 1  ;;  %v534_v21 = vrot.slane %v7459_v7, 1  ;;  %v598_v22 = vrot.slane %v7456_v6, 2  ;;  %v600_v23 = vrot.slane %v7459_v7, 2 }
  0x3a   : > { %6428 = vrot.lane.b32.xlu1 %v6427_v47, %s7153_s22  ;;  %v6462_v24 = vpack.i.bf16 %v531_v15, %v529_v13  ;;  %v661_v25 = vsel %vm638_vm1, %v658_v55, %v660_v10  ;;  %v663_v26 = vsel %vm638_vm1, %v660_v10, %v662_v11  ;;  %v6467_v27 = vpack.i.bf16 %v597_v17, %v595_v16 }
  0x3b   : > { %v727_v28 = vsel %vm704_vm3, %v724_v61, %v726_v18  ;;  %v729_v29 = vsel %vm704_vm3, %v726_v18, %v728_v19  ;;  %v6472_v30 = vpack.i.bf16 %v663_v26, %v661_v25  ;;  %v664_v31 = vrot.slane %v7456_v6, 3 }
  0x3c   : > { %v666_v32 = vrot.slane %v7459_v7, 3  ;;  %v533_v35 = vsel %vm506_vm0, %v530_v1, %v532_v20  ;;  %v535_v36 = vsel %vm506_vm0, %v532_v20, %v534_v21  ;;  %v730_v37 = vrot.slane %v7456_v6, 4 }
  0x3d   : > { %6433 = vrot.lane.b32.xlu0 %v6432_v50, %s7152_s21  ;;  %v732_v38 = vrot.slane %v7459_v7, 4  ;;  %v6477_v39 = vpack.i.bf16 %v729_v29, %v727_v28  ;;  %v599_v40 = vsel %vm572_vm2, %v596_v5, %v598_v22  ;;  %v601_v41 = vsel %vm572_vm2, %v598_v22, %v600_v23  ;;  %v7546_v22 = vld [vmem:[%s7305_s24 + $0x98] sm:$0xff] }
  0x3e   : > { %6438 = vrot.lane.b32.xlu1 %v6437_v52, %s7154_s14  ;;  %v6482_v42 = vpack.i.bf16 %v535_v36, %v533_v35  ;;  %v536_v43 = vrot.slane %v7486_v33, 1  ;;  %v6487_v44 = vpack.i.bf16 %v601_v41, %v599_v40  ;;  %v665_v45 = vsel %vm638_vm1, %v662_v11, %v664_v31 }
  0x3f   : > { %v667_v46 = vsel %vm638_vm1, %v664_v31, %v666_v32  ;;  %v538_v47 = vrot.slane %v7489_v34, 1  ;;  %v731_v50 = vsel %vm704_vm3, %v728_v19, %v730_v37  ;;  %v733_v51 = vsel %vm704_vm3, %v730_v37, %v732_v38 }
  0x40   : > { %v602_v52 = vrot.slane %v7486_v33, 2  ;;  %v604_v53 = vrot.slane %v7489_v34, 2  ;;  %v6492_v54 = vpack.i.bf16 %v667_v46, %v665_v45  ;;  %v537_v55 = vsel %vm506_vm0, %v534_v21, %v536_v43 }
  0x41   : > { %6443 = vrot.lane.b32.xlu0 %v6442_v62, %s7151_s16  ;;  %v6497_v57 = vpack.i.bf16 %v733_v51, %v731_v50  ;;  %v539_v58 = vsel %vm506_vm0, %v536_v43, %v538_v47  ;;  %v668_v59 = vrot.slane %v7486_v33, 3  ;;  %v670_v60 = vrot.slane %v7489_v34, 3  ;;  %v7028_v50 = vld [vmem:[%s9867_s1 + $0x80] ss:$8 sps:$4 sm:$0x3f]  }
  0x42   : > { %6448 = vrot.lane.b32.xlu1 %v6447_v63, %s7153_s22  ;;  %v734_v61 = vrot.slane %v7486_v33, 4  ;;  %v736_v62 = vrot.slane %v7489_v34, 4  ;;  %v540_v63 = vrot.slane %v7505_v48, 1  ;;  %v542_v0 = vrot.slane %v7508_v49, 1 }
  0x43   : > { %v603_v1 = vsel %vm572_vm2, %v600_v23, %v602_v52  ;;  %v605_v2 = vsel %vm572_vm2, %v602_v52, %v604_v53  ;;  %v606_v3 = vrot.slane %v7505_v48, 2  ;;  %v608_v4 = vrot.slane %v7508_v49, 2  ;;  %v7549_v23 = vld [vmem:[%s7305_s24 + $0xa0] sm:$0xff] }
  0x44   : > { %v6502_v5 = vpack.i.bf16 %v539_v58, %v537_v55  ;;  %v669_v7 = vsel %vm638_vm1, %v666_v32, %v668_v59  ;;  %v671_v8 = vsel %vm638_vm1, %v668_v59, %v670_v60  ;;  %v6507_v9 = vpack.i.bf16 %v605_v2, %v603_v1 }
  0x45   : > { %6453 = vrot.lane.b32.xlu0 %v6452_v12, %s7152_s21  ;;  %v735_v10 = vsel %vm704_vm3, %v732_v38, %v734_v61  ;;  %v737_v11 = vsel %vm704_vm3, %v734_v61, %v736_v62  ;;  %v6512_v12 = vpack.i.bf16 %v671_v8, %v669_v7  ;;  %v541_v13 = vsel %vm506_vm0, %v538_v47, %v540_v63  ;;  %v7575_v47 = vld [vmem:[%s7305_s24 + $0xb0] sm:$0xff] }
  0x46   : > { %6458 = vrot.lane.b32.xlu1 %v6457_v14, %s7154_s14  ;;  %v543_v14 = vsel %vm506_vm0, %v540_v63, %v542_v0  ;;  %v607_v15 = vsel %vm572_vm2, %v604_v53, %v606_v3  ;;  %v609_v16 = vsel %vm572_vm2, %v606_v3, %v608_v4  ;;  %v672_v17 = vrot.slane %v7505_v48, 3 }
  0x47   : > { %v674_v18 = vrot.slane %v7508_v49, 3  ;;  %v6517_v19 = vpack.i.bf16 %v737_v11, %v735_v10  ;;  %v738_v20 = vrot.slane %v7505_v48, 4  ;;  %v740_v21 = vrot.slane %v7508_v49, 4  ;;  %v7605_v11 = vld [vmem:[%s7305_s24 + $0xc0] sm:$0xff] }
  0x48   : > { %v6527_v25 = vpack.i.bf16 %v609_v16, %v607_v15  ;;  %v673_v26 = vsel %vm638_vm1, %v670_v60, %v672_v17  ;;  %v544_v28 = vrot.slane %v7546_v22, 1  ;;  %v546_v29 = vrot.slane %v7549_v23, 1 }
  0x49   : > { %6463 = vrot.lane.b32.xlu0 %v6462_v24, %s7151_s16  ;;  %v6522_v24 = vpack.i.bf16 %v543_v14, %v541_v13  ;;  %v741_v31 = vsel %vm704_vm3, %v738_v20, %v740_v21  ;;  %v610_v32 = vrot.slane %v7546_v22, 2  ;;  %v612_v35 = vrot.slane %v7549_v23, 2 }
  0x4a   : > { %6468 = vrot.lane.b32.xlu1 %v6467_v27, %s7153_s22  ;;  %v675_v27 = vsel %vm638_vm1, %v672_v17, %v674_v18  ;;  %v545_v38 = vsel %vm506_vm0, %v542_v0, %v544_v28  ;;  %v678_v43 = vrot.slane %v7549_v23, 3  ;;  %v742_v45 = vrot.slane %v7546_v22, 4 }
  0x4b   : > { %v6532_v36 = vpack.i.bf16 %v675_v27, %v673_v26  ;;  %v611_v40 = vsel %vm572_vm2, %v608_v4, %v610_v32  ;;  %v613_v41 = vsel %vm572_vm2, %v610_v32, %v612_v35  ;;  %v744_v46 = vrot.slane %v7549_v23, 4 }
  0x4c   : > { %v6547_v52 = vpack.i.bf16 %v613_v41, %v611_v40  ;;  %v743_v59 = vsel %vm704_vm3, %v740_v21, %v742_v45  ;;  %v616_v61 = vrot.slane %v7575_v47, 2  ;;  %v682_v4 = vrot.slane %v7575_v47, 3 }
  0x4d   : > { %6473 = vrot.lane.b32.xlu0 %v6472_v30, %s7152_s21  ;;  %v739_v30 = vsel %vm704_vm3, %v736_v62, %v738_v20  ;;  %v745_v60 = vsel %vm704_vm3, %v742_v45, %v744_v46  ;;  %v1490_v62 = vsel %vm572_vm2, %v7028_v50, 0  ;;  %v748_v10 = vrot.slane %v7575_v47, 4 }
  0x4e   : > { %6478 = vrot.lane.b32.xlu1 %v6477_v39, %s7154_s14  ;;  %v6537_v37 = vpack.i.bf16 %v741_v31, %v739_v30  ;;  %v547_v39 = vsel %vm506_vm0, %v544_v28, %v546_v29  ;;  %1526 = vmatpush2.bf16.msra.mxu0 %v1490_v62  ;;  %v6557_v1 = vpack.i.bf16 %v745_v60, %v743_v59  ;;  %v554_v17 = vrot.slane %v7605_v11, 1  ;;  %v7624_v30 = vld [vmem:[%s7305_s24 + $0xc8] sm:$0xff]  ;;  %v7650_v59 = vld [vmem:[%s7305_s24 + $0xd8] sm:$0xff] }
  0x4f   : > { %v6542_v51 = vpack.i.bf16 %v547_v39, %v545_v38  ;;  %v620_v21 = vrot.slane %v7605_v11, 2  ;;  %v556_v39 = vrot.slane %v7624_v30, 1  ;;  %v622_v50 = vrot.slane %v7624_v30, 2 }
  0x50   : > { %v754_v62 = vrot.slane %v7624_v30, 4  ;;  %vm1257_vm7 = vcmask 916480   ;;  %vm1440_vm8 = vcmask 97280   ;;  %vm2264_vm9 = vcmask 998400  }
  0x51   : > { %6483 = vrot.lane.b32.xlu0 %v6482_v42, %s7151_s16  ;;  %v676_v42 = vrot.slane %v7546_v22, 3  ;;  %v623_v60 = vsel %vm572_vm2, %v620_v21, %v622_v50  ;;  %vm2361_vm10 = vcmask 80896   ;;  %vm2476_vm11 = vcmask 130048  }
  0x52   : > { %6488 = vrot.lane.b32.xlu1 %v6487_v44, %s7153_s22  ;;  %v7570_v44 = vld [vmem:[%s7305_s24 + $0xa8] sm:$0xff]  ;;  %vm2960_vm12 = vcmask 1041408   ;;  %vm3414_vm13 = vcmask 588800   ;;  %vm3479_vm14 = vcmask 719872   ;;  %vm3512_vm15 = vcmask 261120  }
  0x53   : > { %v548_v53 = vrot.slane %v7570_v44, 1  ;;  %v679_v55 = vsel %vm638_vm1, %v676_v42, %v678_v43  ;;  %v614_v58 = vrot.slane %v7570_v44, 2  ;;  %v680_v3 = vrot.slane %v7570_v44, 3 }
  0x55   : > { %6493 = vrot.lane.b32.xlu0 %v6492_v54, %s7152_s21  ;;  %v677_v54 = vsel %vm638_vm1, %v674_v18, %v676_v42  ;;  %v549_v0 = vsel %vm506_vm0, %v546_v29, %v548_v53  ;;  %v615_v7 = vsel %vm572_vm2, %v612_v35, %v614_v58  ;;  %v617_v8 = vsel %vm572_vm2, %v614_v58, %v616_v61 }
  0x56   : > { %6498 = vrot.lane.b32.xlu1 %v6497_v57, %s7154_s14  ;;  %v550_v57 = vrot.slane %v7575_v47, 1  ;;  %v6552_v63 = vpack.i.bf16 %v679_v55, %v677_v54  ;;  %v6567_v14 = vpack.i.bf16 %v617_v8, %v615_v7  ;;  %v681_v15 = vsel %vm638_vm1, %v678_v43, %v680_v3 }
  0x57   : > { %v683_v16 = vsel %vm638_vm1, %v680_v3, %v682_v4  ;;  %v686_v29 = vrot.slane %v7605_v11, 3 }
  0x58   : > { %v551_v2 = vsel %vm506_vm0, %v548_v53, %v550_v57  ;;  %v557_v53 = vsel %vm506_vm0, %v554_v17, %v556_v39 }
  0x59   : > { %6503 = vrot.lane.b32.xlu0 %v6502_v5, %s7151_s16  ;;  %v7598_v5 = vld [vmem:[%s7305_s24 + $0xb8] sm:$0xff] }
  0x5a   : > { %6508 = vrot.lane.b32.xlu1 %v6507_v9, %s7153_s22  ;;  %v746_v9 = vrot.slane %v7570_v44, 4  ;;  %v552_v13 = vrot.slane %v7598_v5, 1  ;;  %v618_v20 = vrot.slane %v7598_v5, 2  ;;  %v684_v28 = vrot.slane %v7598_v5, 3 }
  0x5b   : > { %v750_v35 = vrot.slane %v7598_v5, 4 }
  0x5c   : > { %v747_v18 = vsel %vm704_vm3, %v744_v46, %v746_v9  ;;  %v555_v27 = vsel %vm506_vm0, %v552_v13, %v554_v17  ;;  %v619_v31 = vsel %vm572_vm2, %v616_v61, %v618_v20  ;;  %v621_v32 = vsel %vm572_vm2, %v618_v20, %v620_v21  ;;  %v7676_v20 = vld [vmem:[%s7305_s24 + $0xe8] sm:$0xff] }
  0x5d   : > { %6513 = vrot.lane.b32.xlu0 %v6512_v12, %s7152_s21  ;;  %v6562_v12 = vpack.i.bf16 %v551_v2, %v549_v0  ;;  %v6587_v40 = vpack.i.bf16 %v621_v32, %v619_v31  ;;  %v685_v41 = vsel %vm638_vm1, %v682_v4, %v684_v28  ;;  %v687_v42 = vsel %vm638_vm1, %v684_v28, %v686_v29  ;;  %v7657_v0 = vld [vmem:[%s7305_s24 + $0xe0] sm:$0xff] }
  0x5e   : > { %6518 = vrot.lane.b32.xlu1 %v6517_v19, %s7154_s14  ;;  %v749_v19 = vsel %vm704_vm3, %v746_v9, %v748_v10  ;;  %v751_v45 = vsel %vm704_vm3, %v748_v10, %v750_v35  ;;  %v560_v2 = vrot.slane %v7650_v59, 1  ;;  %v562_v8 = vrot.slane %v7657_v0, 1 }
  0x5f   : > { %v6577_v26 = vpack.i.bf16 %v749_v19, %v747_v18  ;;  %v692_v18 = vrot.slane %v7650_v59, 3  ;;  %v694_v19 = vrot.slane %v7657_v0, 3 }
  0x60   : > { %v563_v17 = vsel %vm506_vm0, %v560_v2, %v562_v8 }
  0x61   : > { %6523 = vrot.lane.b32.xlu0 %v6522_v24, %s7151_s16  ;;  %v6572_v24 = vpack.i.bf16 %v683_v16, %v681_v15 }
  0x62   : > { %6528 = vrot.lane.b32.xlu1 %v6527_v25, %s7153_s22  ;;  %v553_v25 = vsel %vm506_vm0, %v550_v57, %v552_v13  ;;  %v688_v57 = vrot.slane %v7624_v30, 3  ;;  %v628_v13 = vrot.slane %v7657_v0, 2 }
  0x63   : > { %v6582_v38 = vpack.i.bf16 %v555_v27, %v553_v25  ;;  %v758_v25 = vrot.slane %v7650_v59, 4  ;;  %v7683_v27 = vld [vmem:[%s7305_s24 + $0xf0] sm:$0xff] }
  0x64   : > { %v689_v4 = vsel %vm638_vm1, %v686_v29, %v688_v57  ;;  %v564_v29 = vrot.slane %v7676_v20, 1 }
  0x65   : > { %6533 = vrot.lane.b32.xlu0 %v6532_v36, %s7152_s21  ;;  %v752_v36 = vrot.slane %v7605_v11, 4 }
  0x66   : > { %6538 = vrot.lane.b32.xlu1 %v6537_v37, %s7154_s14  ;;  %v7631_v37 = vld [vmem:[%s7305_s24 + $0xd0] sm:$0xff] }
  0x67   : > { %v558_v43 = vrot.slane %v7631_v37, 1  ;;  %v753_v46 = vsel %vm704_vm3, %v750_v35, %v752_v36  ;;  %v690_v58 = vrot.slane %v7631_v37, 3  ;;  %v755_v9 = vsel %vm704_vm3, %v752_v36, %v754_v62 }
  0x68   : > { %v6597_v54 = vpack.i.bf16 %v753_v46, %v751_v45  ;;  %v695_v35 = vsel %vm638_vm1, %v692_v18, %v694_v19  ;;  %v566_v36 = vrot.slane %v7683_v27, 1 }
  0x69   : > { %6543 = vrot.lane.b32.xlu0 %v6542_v51, %s7151_s16  ;;  %v624_v51 = vrot.slane %v7631_v37, 2  ;;  %v559_v55 = vsel %vm506_vm0, %v556_v39, %v558_v43  ;;  %v691_v7 = vsel %vm638_vm1, %v688_v57, %v690_v58  ;;  %v561_v15 = vsel %vm506_vm0, %v558_v43, %v560_v2  ;;  %v7706_v57 = vld [vmem:[%s7305_s24 + $0xf8] sm:$0xff] }
  0x6a   : > { %6548 = vrot.lane.b32.xlu1 %v6547_v52, %s7153_s22  ;;  %v6592_v52 = vpack.i.bf16 %v687_v42, %v685_v41  ;;  %v6622_v28 = vpack.i.bf16 %v563_v17, %v561_v15  ;;  %v693_v32 = vsel %vm638_vm1, %v690_v58, %v692_v18  ;;  %v632_v41 = vrot.slane %v7683_v27, 2 }
  0x6b   : > { %v625_v61 = vsel %vm572_vm2, %v622_v50, %v624_v51  ;;  %v6632_v42 = vpack.i.bf16 %v695_v35, %v693_v32  ;;  %v565_v43 = vsel %vm506_vm0, %v562_v8, %v564_v29  ;;  %v567_v46 = vsel %vm506_vm0, %v564_v29, %v566_v36 }
  0x6c   : > { %v6607_v3 = vpack.i.bf16 %v625_v61, %v623_v60  ;;  %v696_v50 = vrot.slane %v7676_v20, 3  ;;  %v6642_v58 = vpack.i.bf16 %v567_v46, %v565_v43  ;;  %v766_v15 = vrot.slane %v7706_v57, 4 }
  0x6d   : > { %6553 = vrot.lane.b32.xlu0 %v6552_v63, %s7152_s21  ;;  %v756_v63 = vrot.slane %v7631_v37, 4 }
  0x6e   : > { %6558 = vrot.lane.b32.xlu1 %v6557_v1, %s7154_s14  ;;  %v6602_v1 = vpack.i.bf16 %v559_v55, %v557_v53  ;;  %v764_v55 = vrot.slane %v7683_v27, 4  ;;  %v697_v61 = vsel %vm638_vm1, %v694_v19, %v696_v50 }
  0x6f   : > { %v757_v10 = vsel %vm704_vm3, %v754_v62, %v756_v63 }
  0x70   : > { %v6617_v16 = vpack.i.bf16 %v757_v10, %v755_v9  ;;  %v767_v29 = vsel %vm704_vm3, %v764_v55, %v766_v15 }
  0x71   : > { %6563 = vrot.lane.b32.xlu0 %v6562_v12, %s7151_s16  ;;  %v626_v12 = vrot.slane %v7650_v59, 2 }
  0x72   : > { %6568 = vrot.lane.b32.xlu1 %v6567_v14, %s7153_s22  ;;  %v6612_v14 = vpack.i.bf16 %v691_v7, %v689_v4  ;;  %v700_v4 = vrot.slane %v7706_v57, 3 }
  0x73   : > { %v627_v21 = vsel %vm572_vm2, %v624_v51, %v626_v12  ;;  %v698_v51 = vrot.slane %v7683_v27, 3 }
  0x74   : > { %v703_v18 = vsel %vm638_vm1, %v700_v4, 0.0 }
  0x75   : > { %6573 = vrot.lane.b32.xlu0 %v6572_v24, %s7152_s21  ;;  %v629_v24 = vsel %vm572_vm2, %v626_v12, %v628_v13  ;;  %v699_v62 = vsel %vm638_vm1, %v696_v50, %v698_v51  ;;  %v701_v17 = vsel %vm638_vm1, %v698_v51, %v700_v4  ;;  %vm4550_vm1 = vcmask 785408  }
  0x76   : > { %6578 = vrot.lane.b32.xlu1 %v6577_v26, %s7154_s14  ;;  %v760_v26 = vrot.slane %v7657_v0, 4  ;;  %v6627_v31 = vpack.i.bf16 %v629_v24, %v627_v21  ;;  %v6652_v7 = vpack.i.bf16 %v699_v62, %v697_v61 }
  0x78   : > { %v761_v39 = vsel %vm704_vm3, %v758_v25, %v760_v26 }
  0x79   : > { %6583 = vrot.lane.b32.xlu0 %v6582_v38, %s7151_s16  ;;  %v759_v38 = vsel %vm704_vm3, %v756_v63, %v758_v25  ;;  %v568_v63 = vrot.slane %v7706_v57, 1 }
  0x7a   : > { %6588 = vrot.lane.b32.xlu1 %v6587_v40, %s7153_s22  ;;  %v630_v40 = vrot.slane %v7676_v20, 2  ;;  %v6637_v45 = vpack.i.bf16 %v761_v39, %v759_v38 }
  0x7b   : > { %v569_v9 = vsel %vm506_vm0, %v566_v36, %v568_v63  ;;  %v571_v10 = vsel %vm506_vm0, %v568_v63, 0.0 }
  0x7c   : > { %v633_v53 = vsel %vm572_vm2, %v630_v40, %v632_v41  ;;  %v6662_v24 = vpack.i.bf16 %v571_v10, %v569_v9  ;;  %v7079_v9 = vld [vmem:[%s7305_s24 + $0x10] sm:$0xff] }
  0x7d   : > { %6593 = vrot.lane.b32.xlu0 %v6592_v52, %s7152_s21  ;;  %v631_v52 = vsel %vm572_vm2, %v628_v13, %v630_v40  ;;  %v7076_v40 = vld [vmem:[%s7305_s24 + $0x8] sm:$0xff] }
  0x7e   : > { %6598 = vrot.lane.b32.xlu1 %v6597_v54, %s7154_s14  ;;  %v762_v54 = vrot.slane %v7676_v20, 4  ;;  %v6647_v60 = vpack.i.bf16 %v633_v53, %v631_v52 }
  0x80   : > { %v765_v2 = vsel %vm704_vm3, %v762_v54, %v764_v55 }
  0x81   : > { %6603 = vrot.lane.b32.xlu0 %v6602_v1, %s7151_s16  ;;  %v763_v1 = vsel %vm704_vm3, %v760_v26, %v762_v54 }
  0x82   : > { %6608 = vrot.lane.b32.xlu1 %v6607_v3, %s7153_s22  ;;  %v634_v3 = vrot.slane %v7706_v57, 2  ;;  %v6657_v8 = vpack.i.bf16 %v765_v2, %v763_v1 }
  0x84   : > { %v635_v13 = vsel %vm572_vm2, %v632_v41, %v634_v3 }
  0x85   : > { %6613 = vrot.lane.b32.xlu0 %v6612_v14, %s7152_s21  ;;  %v637_v14 = vsel %vm572_vm2, %v634_v3, 0.0 }
  0x86   : > { %6618 = vrot.lane.b32.xlu1 %v6617_v16, %s7154_s14  ;;  %v6667_v25 = vpack.i.bf16 %v637_v14, %v635_v13 }
  0x89   : > { %6623 = vrot.lane.b32.xlu0 %v6622_v28, %s7151_s16  ;;  %v6672_v28 = vpack.i.bf16 %v703_v18, %v701_v17 }
  0x8a   : > { %6628 = vrot.lane.b32.xlu1 %v6627_v31, %s7153_s22  ;;  %v769_v31 = vsel %vm704_vm3, %v766_v15, 0.0 }
  0x8b   : > { %v6677_v52 = vpack.i.bf16 %v769_v31, %v767_v29 }
  0x8d   : > { %6633 = vrot.lane.b32.xlu0 %v6632_v42, %s7152_s21  ;;  %v7077_v42 = vld [vmem:[%s7305_s24] sm:$0xff] }
  0x8e   : > { %6638 = vrot.lane.b32.xlu1 %v6637_v45, %s7154_s14 }
  0x91   : > { %6643 = vrot.lane.b32.xlu0 %v6642_v58, %s7151_s16 }
  0x92   : > { %6648 = vrot.lane.b32.xlu1 %v6647_v60, %s7153_s22 }
  0x93   : > { %v6364_v12 = vpop.permute.xlu0 %6363 }
  0x94   : > { %v6374_v16 = vpop.permute.xlu1 %6373  ;;  %v6366_v19 = vunpack.i.h.bf16 %v6364_v12  ;;  %v6365_v21 = vunpack.i.l.bf16 %v6364_v12 }
  0x95   : > { %6653 = vrot.lane.b32.xlu0 %v6652_v7, %s7152_s21  ;;  %v6376_v32 = vunpack.i.h.bf16 %v6374_v16  ;;  %v6375_v35 = vunpack.i.l.bf16 %v6374_v16  ;;  %v7078_v7 = vld [vmem:[%s7305_s24 + $0x18] sm:$0xff] }
  0x96   : > { %6658 = vrot.lane.b32.xlu1 %v6657_v8, %s7154_s14  ;;  %v1160_v41 = vsel %vm1158_vm4, %v7076_v40, %v6366_v19  ;;  %v1159_v43 = vsel %vm1158_vm4, %v7077_v42, %v6365_v21  ;;  %v7080_v40 = vld [vmem:[%s7305_s24 + $0x28] sm:$0xff]  ;;  %v7081_v42 = vld [vmem:[%s7305_s24 + $0x20] sm:$0xff] }
  0x97   : > { %v6369_v26 = vpop.permute.xlu0 %6368 }
  0x98   : > { %v6371_v36 = vunpack.i.h.bf16 %v6369_v26  ;;  %v6370_v38 = vunpack.i.l.bf16 %v6369_v26  ;;  %v6379_v39 = vpop.permute.xlu1 %6378 }
  0x99   : > { %6663 = vrot.lane.b32.xlu0 %v6662_v24, %s7151_s16  ;;  %v6381_v45 = vunpack.i.h.bf16 %v6379_v39  ;;  %v6380_v46 = vunpack.i.l.bf16 %v6379_v39 }
  0x9a   : > { %v1192_v50 = vsel %vm1191_vm5, %v1159_v43, %v6370_v38  ;;  %v1193_v51 = vsel %vm1191_vm5, %v1160_v41, %v6371_v36  ;;  %6668 = vrot.lane.b32.xlu1 %v6667_v25, %s7153_s22 }
  0x9b   : > { %v6384_v53 = vpop.permute.xlu0 %6383  ;;  %v1291_v54 = vpack.c.bf16 %v6381_v45, %v6380_v46  ;;  %v1225_v55 = vsel %vm1224_vm6, %v1192_v50, %v6375_v35  ;;  %v1226_v58 = vsel %vm1224_vm6, %v1193_v51, %v6376_v32 }
  0x9c   : > { %v6386_v60 = vunpack.i.h.bf16 %v6384_v53  ;;  %v6385_v61 = vunpack.i.l.bf16 %v6384_v53  ;;  %v6389_v62 = vpop.permute.xlu1 %6388  ;;  %v1258_v63 = vsel %vm1257_vm7, %v1225_v55, %v6380_v46  ;;  %v1259_v1 = vsel %vm1257_vm7, %v1226_v58, %v6381_v45 }
  0x9d   : > { %v6391_v2 = vunpack.i.h.bf16 %v6389_v62  ;;  %v6390_v3 = vunpack.i.l.bf16 %v6389_v62  ;;  %5653 = vmatprep.mubr.msk.bf16.mxu0 %vm1440_vm8, %v1291_v54  ;;  %6673 = vrot.lane.b32.xlu0 %v6672_v28, %s7152_s21  ;;  %v1290_v4 = vpack.c.bf16 %v1259_v1, %v1258_v63  ;;  %s7164_s21 = smov 48  }
  0x9e   : > { %v1162_v8 = vsel %vm1158_vm4, %v7078_v7, %v6386_v60  ;;  %v1161_v10 = vsel %vm1158_vm4, %v7079_v9, %v6385_v61  ;;  %6678 = vrot.lane.b32.xlu1 %v6677_v52, %s7154_s14  ;;  %s7157_s14 = smov 16  }
  0x9f   : > { %v1194_v12 = vsel %vm1191_vm5, %v1161_v10, %v6390_v3  ;;  %v1195_v13 = vsel %vm1191_vm5, %v1162_v8, %v6391_v2  ;;  %v6394_v14 = vpop.permute.xlu0 %6393  ;;  %1528 = vmatmul.mubr.bf16.vlgmr.msra.gmra.mxu0 %v1290_v4  ;;  %v7082_v10 = vld [vmem:[%s7305_s24 + $0x38] sm:$0xff] }
  0xa0   : > { %v6396_v15 = vunpack.i.h.bf16 %v6394_v14  ;;  %v6395_v16 = vunpack.i.l.bf16 %v6394_v14  ;;  %v6399_v17 = vpop.permute.xlu1 %6398 }
  0xa1   : > { %v6401_v18 = vunpack.i.h.bf16 %v6399_v17  ;;  %v6400_v19 = vunpack.i.l.bf16 %v6399_v17 }
  0xa2   : > { %v1227_v21 = vsel %vm1224_vm6, %v1194_v12, %v6395_v16  ;;  %v1228_v24 = vsel %vm1224_vm6, %v1195_v13, %v6396_v15  ;;  %v7083_v13 = vld [vmem:[%s7305_s24 + $0x30] sm:$0xff] }
  0xa3   : > { %v1293_v25 = vpack.c.bf16 %v6401_v18, %v6400_v19  ;;  %v6404_v26 = vpop.permute.xlu0 %6403  ;;  %v1260_v28 = vsel %vm1257_vm7, %v1227_v21, %v6400_v19  ;;  %v1261_v29 = vsel %vm1257_vm7, %v1228_v24, %v6401_v18 }
  0xa4   : > { %v6406_v31 = vunpack.i.h.bf16 %v6404_v26  ;;  %v6405_v32 = vunpack.i.l.bf16 %v6404_v26  ;;  %v6409_v35 = vpop.permute.xlu1 %6408  ;;  %v1292_v36 = vpack.c.bf16 %v1261_v29, %v1260_v28 }
  0xa5   : > { %v6411_v38 = vunpack.i.h.bf16 %v6409_v35  ;;  %v6410_v39 = vunpack.i.l.bf16 %v6409_v35  ;;  %5654 = vmatprep.mubr.msk.bf16.mxu0 %vm1440_vm8, %v1293_v25 }
  0xa6   : > { %v1164_v41 = vsel %vm1158_vm4, %v7080_v40, %v6406_v31  ;;  %v1163_v43 = vsel %vm1158_vm4, %v7081_v42, %v6405_v32 }
  0xa7   : > { %v1196_v45 = vsel %vm1191_vm5, %v1163_v43, %v6410_v39  ;;  %v1197_v46 = vsel %vm1191_vm5, %v1164_v41, %v6411_v38  ;;  %v6414_v50 = vpop.permute.xlu0 %6413  ;;  %1538 = vmatmul.mubr.bf16.gmra.mxu0 %v1292_v36  ;;  %v7084_v43 = vld [vmem:[%s7305_s24 + $0x48] sm:$0xff] }
  0xa8   : > { %v6416_v51 = vunpack.i.h.bf16 %v6414_v50  ;;  %v6415_v52 = vunpack.i.l.bf16 %v6414_v50  ;;  %v6419_v53 = vpop.permute.xlu1 %6418 }
  0xa9   : > { %v6421_v54 = vunpack.i.h.bf16 %v6419_v53  ;;  %v6420_v55 = vunpack.i.l.bf16 %v6419_v53 }
  0xaa   : > { %v1229_v58 = vsel %vm1224_vm6, %v1196_v45, %v6415_v52  ;;  %v1230_v60 = vsel %vm1224_vm6, %v1197_v46, %v6416_v51  ;;  %v7085_v46 = vld [vmem:[%s7305_s24 + $0x40] sm:$0xff] }
  0xab   : > { %v1295_v61 = vpack.c.bf16 %v6421_v54, %v6420_v55  ;;  %v6424_v62 = vpop.permute.xlu0 %6423  ;;  %v1262_v63 = vsel %vm1257_vm7, %v1229_v58, %v6420_v55  ;;  %v1263_v1 = vsel %vm1257_vm7, %v1230_v60, %v6421_v54 }
  0xac   : > { %v6426_v2 = vunpack.i.h.bf16 %v6424_v62  ;;  %v6425_v3 = vunpack.i.l.bf16 %v6424_v62  ;;  %v6429_v4 = vpop.permute.xlu1 %6428  ;;  %v1294_v7 = vpack.c.bf16 %v1263_v1, %v1262_v63 }
  0xad   : > { %v6431_v8 = vunpack.i.h.bf16 %v6429_v4  ;;  %v6430_v9 = vunpack.i.l.bf16 %v6429_v4  ;;  %5655 = vmatprep.mubr.msk.bf16.mxu0 %vm1440_vm8, %v1295_v61 }
  0xae   : > { %v1166_v12 = vsel %vm1158_vm4, %v7082_v10, %v6426_v2  ;;  %v1165_v14 = vsel %vm1158_vm4, %v7083_v13, %v6425_v3 }
  0xaf   : > { %v1198_v15 = vsel %vm1191_vm5, %v1165_v14, %v6430_v9  ;;  %v1199_v16 = vsel %vm1191_vm5, %v1166_v12, %v6431_v8  ;;  %v6434_v17 = vpop.permute.xlu0 %6433  ;;  %1548 = vmatmul.mubr.bf16.gmra.mxu0 %v1294_v7 }
  0xb0   : > { %v6436_v18 = vunpack.i.h.bf16 %v6434_v17  ;;  %v6435_v19 = vunpack.i.l.bf16 %v6434_v17  ;;  %v6439_v21 = vpop.permute.xlu1 %6438 }
  0xb1   : > { %v6441_v24 = vunpack.i.h.bf16 %v6439_v21  ;;  %v6440_v25 = vunpack.i.l.bf16 %v6439_v21 }
  0xb2   : > { %v1231_v26 = vsel %vm1224_vm6, %v1198_v15, %v6435_v19  ;;  %v1232_v28 = vsel %vm1224_vm6, %v1199_v16, %v6436_v18  ;;  %v7086_v15 = vld [vmem:[%s7305_s24 + $0x50] sm:$0xff] }
  0xb3   : > { %v1297_v29 = vpack.c.bf16 %v6441_v24, %v6440_v25  ;;  %v6444_v31 = vpop.permute.xlu0 %6443  ;;  %v1264_v32 = vsel %vm1257_vm7, %v1231_v26, %v6440_v25  ;;  %v1265_v35 = vsel %vm1257_vm7, %v1232_v28, %v6441_v24 }
  0xb4   : > { %v6446_v36 = vunpack.i.h.bf16 %v6444_v31  ;;  %v6445_v38 = vunpack.i.l.bf16 %v6444_v31  ;;  %v6449_v39 = vpop.permute.xlu1 %6448  ;;  %v1296_v40 = vpack.c.bf16 %v1265_v35, %v1264_v32 }
  0xb5   : > { %v6451_v41 = vunpack.i.h.bf16 %v6449_v39  ;;  %v6450_v42 = vunpack.i.l.bf16 %v6449_v39  ;;  %5656 = vmatprep.mubr.msk.bf16.mxu0 %vm1440_vm8, %v1297_v29 }
  0xb6   : > { %v1168_v45 = vsel %vm1158_vm4, %v7084_v43, %v6446_v36  ;;  %v1167_v50 = vsel %vm1158_vm4, %v7085_v46, %v6445_v38  ;;  %v7087_v46 = vld [vmem:[%s7305_s24 + $0x60] sm:$0xff] }
  0xb7   : > { %v1200_v51 = vsel %vm1191_vm5, %v1167_v50, %v6450_v42  ;;  %v1201_v52 = vsel %vm1191_vm5, %v1168_v45, %v6451_v41  ;;  %v6454_v53 = vpop.permute.xlu0 %6453  ;;  %1558 = vmatmul.mubr.bf16.gmra.mxu0 %v1296_v40 }
  0xb8   : > { %v6456_v54 = vunpack.i.h.bf16 %v6454_v53  ;;  %v6455_v55 = vunpack.i.l.bf16 %v6454_v53  ;;  %v6459_v58 = vpop.permute.xlu1 %6458 }
  0xb9   : > { %v6461_v60 = vunpack.i.h.bf16 %v6459_v58  ;;  %v6460_v61 = vunpack.i.l.bf16 %v6459_v58 }
  0xba   : > { %v1233_v62 = vsel %vm1224_vm6, %v1200_v51, %v6455_v55  ;;  %v1234_v63 = vsel %vm1224_vm6, %v1201_v52, %v6456_v54 }
  0xbb   : > { %v1299_v1 = vpack.c.bf16 %v6461_v60, %v6460_v61  ;;  %v6464_v2 = vpop.permute.xlu0 %6463  ;;  %v1266_v3 = vsel %vm1257_vm7, %v1233_v62, %v6460_v61  ;;  %v1267_v4 = vsel %vm1257_vm7, %v1234_v63, %v6461_v60 }
  0xbc   : > { %v6466_v7 = vunpack.i.h.bf16 %v6464_v2  ;;  %v6465_v8 = vunpack.i.l.bf16 %v6464_v2  ;;  %v6469_v9 = vpop.permute.xlu1 %6468  ;;  %v1298_v10 = vpack.c.bf16 %v1267_v4, %v1266_v3 }
  0xbd   : > { %v6471_v12 = vunpack.i.h.bf16 %v6469_v9  ;;  %v6470_v13 = vunpack.i.l.bf16 %v6469_v9  ;;  %5657 = vmatprep.mubr.msk.bf16.mxu0 %vm1440_vm8, %v1299_v1 }
  0xbe   : > { %v1170_v14 = vsel %vm1158_vm4, %v7438_v56, %v6466_v7  ;;  %v1169_v16 = vsel %vm1158_vm4, %v7086_v15, %v6465_v8 }
  0xbf   : > { %v1202_v17 = vsel %vm1191_vm5, %v1169_v16, %v6470_v13  ;;  %v1203_v18 = vsel %vm1191_vm5, %v1170_v14, %v6471_v12  ;;  %v6474_v19 = vpop.permute.xlu0 %6473  ;;  %1568 = vmatmul.mubr.bf16.gmra.mxu0 %v1298_v10  ;;  %v7088_v14 = vld [vmem:[%s7305_s24 + $0x70] sm:$0xff]  ;;  %s7160_s24 = smov 32  }
  0xc0   : > { %v6476_v21 = vunpack.i.h.bf16 %v6474_v19  ;;  %v6475_v24 = vunpack.i.l.bf16 %v6474_v19  ;;  %v6479_v25 = vpop.permute.xlu1 %6478 }
  0xc1   : > { %v6481_v26 = vunpack.i.h.bf16 %v6479_v25  ;;  %v6480_v28 = vunpack.i.l.bf16 %v6479_v25 }
  0xc2   : > { %v1235_v29 = vsel %vm1224_vm6, %v1202_v17, %v6475_v24  ;;  %v1236_v31 = vsel %vm1224_vm6, %v1203_v18, %v6476_v21 }
  0xc3   : > { %v1301_v56 = vpack.c.bf16 %v6481_v26, %v6480_v28  ;;  %v6484_v32 = vpop.permute.xlu0 %6483  ;;  %v1268_v35 = vsel %vm1257_vm7, %v1235_v29, %v6480_v28  ;;  %v1269_v36 = vsel %vm1257_vm7, %v1236_v31, %v6481_v26 }
  0xc4   : > { %v6486_v38 = vunpack.i.h.bf16 %v6484_v32  ;;  %v6485_v39 = vunpack.i.l.bf16 %v6484_v32  ;;  %v6489_v40 = vpop.permute.xlu1 %6488  ;;  %v1300_v41 = vpack.c.bf16 %v1269_v36, %v1268_v35 }
  0xc5   : > { %v6491_v42 = vunpack.i.h.bf16 %v6489_v40  ;;  %v6490_v43 = vunpack.i.l.bf16 %v6489_v40  ;;  %5658 = vmatprep.mubr.msk.bf16.mxu0 %vm1440_vm8, %v1301_v56 }
  0xc6   : > { %v1172_v45 = vsel %vm1158_vm4, %v7456_v6, %v6486_v38  ;;  %v1171_v50 = vsel %vm1158_vm4, %v7087_v46, %v6485_v39 }
  0xc7   : > { %v1204_v51 = vsel %vm1191_vm5, %v1171_v50, %v6490_v43  ;;  %v1205_v52 = vsel %vm1191_vm5, %v1172_v45, %v6491_v42  ;;  %v6494_v53 = vpop.permute.xlu0 %6493  ;;  %1578 = vmatmul.mubr.bf16.gmra.mxu0 %v1300_v41 }
  0xc8   : > { %v6496_v54 = vunpack.i.h.bf16 %v6494_v53  ;;  %v6495_v55 = vunpack.i.l.bf16 %v6494_v53  ;;  %v6499_v58 = vpop.permute.xlu1 %6498 }
  0xc9   : > { %v6501_v60 = vunpack.i.h.bf16 %v6499_v58  ;;  %v6500_v61 = vunpack.i.l.bf16 %v6499_v58 }
  0xca   : > { %v1237_v62 = vsel %vm1224_vm6, %v1204_v51, %v6495_v55  ;;  %v1238_v63 = vsel %vm1224_vm6, %v1205_v52, %v6496_v54 }
  0xcb   : > { %v1303_v6 = vpack.c.bf16 %v6501_v60, %v6500_v61  ;;  %v6504_v1 = vpop.permute.xlu0 %6503  ;;  %v1270_v2 = vsel %vm1257_vm7, %v1237_v62, %v6500_v61  ;;  %v1271_v3 = vsel %vm1257_vm7, %v1238_v63, %v6501_v60 }
  0xcc   : > { %v6506_v4 = vunpack.i.h.bf16 %v6504_v1  ;;  %v6505_v7 = vunpack.i.l.bf16 %v6504_v1  ;;  %v6509_v8 = vpop.permute.xlu1 %6508  ;;  %v1302_v9 = vpack.c.bf16 %v1271_v3, %v1270_v2 }
  0xcd   : > { %v6511_v10 = vunpack.i.h.bf16 %v6509_v8  ;;  %v6510_v12 = vunpack.i.l.bf16 %v6509_v8  ;;  %5659 = vmatprep.mubr.msk.bf16.mxu0 %vm1440_vm8, %v1303_v6 }
  0xce   : > { %v1174_v13 = vsel %vm1158_vm4, %v7486_v33, %v6506_v4  ;;  %v1173_v15 = vsel %vm1158_vm4, %v7088_v14, %v6505_v7 }
  0xcf   : > { %v1206_v16 = vsel %vm1191_vm5, %v1173_v15, %v6510_v12  ;;  %v1207_v17 = vsel %vm1191_vm5, %v1174_v13, %v6511_v10  ;;  %v6514_v18 = vpop.permute.xlu0 %6513  ;;  %1588 = vmatmul.mubr.bf16.gmra.mxu0 %v1302_v9 }
  0xd0   : > { %v6516_v19 = vunpack.i.h.bf16 %v6514_v18  ;;  %v6515_v21 = vunpack.i.l.bf16 %v6514_v18  ;;  %v6519_v24 = vpop.permute.xlu1 %6518 }
  0xd1   : > { %v6521_v25 = vunpack.i.h.bf16 %v6519_v24  ;;  %v6520_v26 = vunpack.i.l.bf16 %v6519_v24 }
  0xd2   : > { %v1239_v28 = vsel %vm1224_vm6, %v1206_v16, %v6515_v21  ;;  %v1240_v29 = vsel %vm1224_vm6, %v1207_v17, %v6516_v19 }
  0xd3   : > { %v1305_v31 = vpack.c.bf16 %v6521_v25, %v6520_v26  ;;  %v6524_v33 = vpop.permute.xlu0 %6523  ;;  %v1272_v56 = vsel %vm1257_vm7, %v1239_v28, %v6520_v26  ;;  %v1273_v32 = vsel %vm1257_vm7, %v1240_v29, %v6521_v25 }
  0xd4   : > { %v6526_v35 = vunpack.i.h.bf16 %v6524_v33  ;;  %v6525_v36 = vunpack.i.l.bf16 %v6524_v33  ;;  %v6529_v38 = vpop.permute.xlu1 %6528  ;;  %v1304_v39 = vpack.c.bf16 %v1273_v32, %v1272_v56 }
  0xd5   : > { %v6531_v40 = vunpack.i.h.bf16 %v6529_v38  ;;  %v6530_v41 = vunpack.i.l.bf16 %v6529_v38  ;;  %5660 = vmatprep.mubr.msk.bf16.mxu0 %vm1440_vm8, %v1305_v31 }
  0xd6   : > { %v1176_v42 = vsel %vm1158_vm4, %v7505_v48, %v6526_v35  ;;  %v1175_v43 = vsel %vm1158_vm4, %v7489_v34, %v6525_v36 }
  0xd7   : > { %v1208_v45 = vsel %vm1191_vm5, %v1175_v43, %v6530_v41  ;;  %v1209_v46 = vsel %vm1191_vm5, %v1176_v42, %v6531_v40  ;;  %v6534_v50 = vpop.permute.xlu0 %6533  ;;  %1598 = vmatmul.mubr.bf16.gmra.mxu0 %v1304_v39 }
  0xd8   : > { %v6536_v51 = vunpack.i.h.bf16 %v6534_v50  ;;  %v6535_v52 = vunpack.i.l.bf16 %v6534_v50  ;;  %v6539_v53 = vpop.permute.xlu1 %6538 }
  0xd9   : > { %v6541_v54 = vunpack.i.h.bf16 %v6539_v53  ;;  %v6540_v55 = vunpack.i.l.bf16 %v6539_v53 }
  0xda   : > { %v1241_v58 = vsel %vm1224_vm6, %v1208_v45, %v6535_v52  ;;  %v1242_v60 = vsel %vm1224_vm6, %v1209_v46, %v6536_v51 }
  0xdb   : > { %v1307_v61 = vpack.c.bf16 %v6541_v54, %v6540_v55  ;;  %v6544_v48 = vpop.permute.xlu0 %6543  ;;  %v1274_v62 = vsel %vm1257_vm7, %v1241_v58, %v6540_v55  ;;  %v1275_v34 = vsel %vm1257_vm7, %v1242_v60, %v6541_v54 }
  0xdc   : > { %v6546_v63 = vunpack.i.h.bf16 %v6544_v48  ;;  %v6545_v6 = vunpack.i.l.bf16 %v6544_v48  ;;  %v6549_v1 = vpop.permute.xlu1 %6548  ;;  %v1306_v2 = vpack.c.bf16 %v1275_v34, %v1274_v62 }
  0xdd   : > { %v6551_v3 = vunpack.i.h.bf16 %v6549_v1  ;;  %v6550_v4 = vunpack.i.l.bf16 %v6549_v1  ;;  %5661 = vmatprep.mubr.msk.bf16.mxu0 %vm1440_vm8, %v1307_v61 }
  0xde   : > { %v1178_v7 = vsel %vm1158_vm4, %v7546_v22, %v6546_v63  ;;  %v1177_v8 = vsel %vm1158_vm4, %v7508_v49, %v6545_v6 }
  0xdf   : > { %v1210_v9 = vsel %vm1191_vm5, %v1177_v8, %v6550_v4  ;;  %v1211_v10 = vsel %vm1191_vm5, %v1178_v7, %v6551_v3  ;;  %v6554_v12 = vpop.permute.xlu0 %6553  ;;  %1608 = vmatmul.mubr.bf16.gmra.mxu0 %v1306_v2 }
  0xe0   : > { %v6556_v13 = vunpack.i.h.bf16 %v6554_v12  ;;  %v6555_v14 = vunpack.i.l.bf16 %v6554_v12  ;;  %v6559_v15 = vpop.permute.xlu1 %6558 }
  0xe1   : > { %v6561_v16 = vunpack.i.h.bf16 %v6559_v15  ;;  %v6560_v17 = vunpack.i.l.bf16 %v6559_v15 }
  0xe2   : > { %v1243_v18 = vsel %vm1224_vm6, %v1210_v9, %v6555_v14  ;;  %v1244_v19 = vsel %vm1224_vm6, %v1211_v10, %v6556_v13 }
  0xe3   : > { %v1309_v21 = vpack.c.bf16 %v6561_v16, %v6560_v17  ;;  %v6564_v22 = vpop.permute.xlu0 %6563  ;;  %v1276_v24 = vsel %vm1257_vm7, %v1243_v18, %v6560_v17  ;;  %v1277_v49 = vsel %vm1257_vm7, %v1244_v19, %v6561_v16 }
  0xe4   : > { %v6566_v25 = vunpack.i.h.bf16 %v6564_v22  ;;  %v6565_v26 = vunpack.i.l.bf16 %v6564_v22  ;;  %v6569_v28 = vpop.permute.xlu1 %6568  ;;  %v1308_v29 = vpack.c.bf16 %v1277_v49, %v1276_v24 }
  0xe5   : > { %v6571_v31 = vunpack.i.h.bf16 %v6569_v28  ;;  %v6570_v33 = vunpack.i.l.bf16 %v6569_v28  ;;  %5662 = vmatprep.mubr.msk.bf16.mxu0 %vm1440_vm8, %v1309_v21 }
  0xe6   : > { %v1180_v56 = vsel %vm1158_vm4, %v7570_v44, %v6566_v25  ;;  %v1179_v32 = vsel %vm1158_vm4, %v7549_v23, %v6565_v26 }
  0xe7   : > { %v1212_v35 = vsel %vm1191_vm5, %v1179_v32, %v6570_v33  ;;  %v1213_v36 = vsel %vm1191_vm5, %v1180_v56, %v6571_v31  ;;  %v6574_v38 = vpop.permute.xlu0 %6573  ;;  %1618 = vmatmul.mubr.bf16.gmra.mxu0 %v1308_v29 }
  0xe8   : > { %v6576_v39 = vunpack.i.h.bf16 %v6574_v38  ;;  %v6575_v40 = vunpack.i.l.bf16 %v6574_v38  ;;  %v6579_v41 = vpop.permute.xlu1 %6578 }
  0xe9   : > { %v6581_v42 = vunpack.i.h.bf16 %v6579_v41  ;;  %v6580_v43 = vunpack.i.l.bf16 %v6579_v41 }
  0xea   : > { %v1245_v45 = vsel %vm1224_vm6, %v1212_v35, %v6575_v40  ;;  %v1246_v46 = vsel %vm1224_vm6, %v1213_v36, %v6576_v39 }
  0xeb   : > { %v1311_v50 = vpack.c.bf16 %v6581_v42, %v6580_v43  ;;  %v6584_v44 = vpop.permute.xlu0 %6583  ;;  %v1278_v51 = vsel %vm1257_vm7, %v1245_v45, %v6580_v43  ;;  %v1279_v23 = vsel %vm1257_vm7, %v1246_v46, %v6581_v42 }
  0xec   : > { %v6586_v52 = vunpack.i.h.bf16 %v6584_v44  ;;  %v6585_v53 = vunpack.i.l.bf16 %v6584_v44  ;;  %v6589_v54 = vpop.permute.xlu1 %6588  ;;  %v1310_v55 = vpack.c.bf16 %v1279_v23, %v1278_v51 }
  0xed   : > { %v6591_v58 = vunpack.i.h.bf16 %v6589_v54  ;;  %v6590_v60 = vunpack.i.l.bf16 %v6589_v54  ;;  %5663 = vmatprep.mubr.msk.bf16.mxu0 %vm1440_vm8, %v1311_v50 }
  0xee   : > { %v1182_v61 = vsel %vm1158_vm4, %v7598_v5, %v6586_v52  ;;  %v1181_v48 = vsel %vm1158_vm4, %v7575_v47, %v6585_v53 }
  0xef   : > { %v1214_v62 = vsel %vm1191_vm5, %v1181_v48, %v6590_v60  ;;  %v1215_v34 = vsel %vm1191_vm5, %v1182_v61, %v6591_v58  ;;  %v6594_v63 = vpop.permute.xlu0 %6593  ;;  %1628 = vmatmul.mubr.bf16.gmra.mxu0 %v1310_v55 }
  0xf0   : > { %v6596_v6 = vunpack.i.h.bf16 %v6594_v63  ;;  %v6595_v1 = vunpack.i.l.bf16 %v6594_v63  ;;  %v6599_v2 = vpop.permute.xlu1 %6598 }
  0xf1   : > { %v6601_v3 = vunpack.i.h.bf16 %v6599_v2  ;;  %v6600_v4 = vunpack.i.l.bf16 %v6599_v2 }
  0xf2   : > { %v1247_v7 = vsel %vm1224_vm6, %v1214_v62, %v6595_v1  ;;  %v1248_v8 = vsel %vm1224_vm6, %v1215_v34, %v6596_v6 }
  0xf3   : > { %v1313_v9 = vpack.c.bf16 %v6601_v3, %v6600_v4  ;;  %v6604_v5 = vpop.permute.xlu0 %6603  ;;  %v1280_v10 = vsel %vm1257_vm7, %v1247_v7, %v6600_v4  ;;  %v1281_v47 = vsel %vm1257_vm7, %v1248_v8, %v6601_v3 }
  0xf4   : > { %v6606_v12 = vunpack.i.h.bf16 %v6604_v5  ;;  %v6605_v13 = vunpack.i.l.bf16 %v6604_v5  ;;  %v6609_v14 = vpop.permute.xlu1 %6608  ;;  %v1312_v15 = vpack.c.bf16 %v1281_v47, %v1280_v10 }
  0xf5   : > { %v6611_v16 = vunpack.i.h.bf16 %v6609_v14  ;;  %v6610_v17 = vunpack.i.l.bf16 %v6609_v14  ;;  %5664 = vmatprep.mubr.msk.bf16.mxu0 %vm1440_vm8, %v1313_v9 }
  0xf6   : > { %v1184_v18 = vsel %vm1158_vm4, %v7624_v30, %v6606_v12  ;;  %v1183_v19 = vsel %vm1158_vm4, %v7605_v11, %v6605_v13 }
  0xf7   : > { %v1216_v21 = vsel %vm1191_vm5, %v1183_v19, %v6610_v17  ;;  %v1217_v22 = vsel %vm1191_vm5, %v1184_v18, %v6611_v16  ;;  %v6614_v24 = vpop.permute.xlu0 %6613  ;;  %1638 = vmatmul.mubr.bf16.gmra.mxu0 %v1312_v15 }
  0xf8   : > { %v6616_v49 = vunpack.i.h.bf16 %v6614_v24  ;;  %v6615_v25 = vunpack.i.l.bf16 %v6614_v24  ;;  %v6619_v26 = vpop.permute.xlu1 %6618 }
  0xf9   : > { %v6621_v28 = vunpack.i.h.bf16 %v6619_v26  ;;  %v6620_v29 = vunpack.i.l.bf16 %v6619_v26 }
  0xfa   : > { %v1249_v31 = vsel %vm1224_vm6, %v1216_v21, %v6615_v25  ;;  %v1250_v33 = vsel %vm1224_vm6, %v1217_v22, %v6616_v49 }
  0xfb   : > { %v1315_v56 = vpack.c.bf16 %v6621_v28, %v6620_v29  ;;  %v6624_v30 = vpop.permute.xlu0 %6623  ;;  %v1282_v32 = vsel %vm1257_vm7, %v1249_v31, %v6620_v29  ;;  %v1283_v11 = vsel %vm1257_vm7, %v1250_v33, %v6621_v28 }
  0xfc   : > { %v6626_v35 = vunpack.i.h.bf16 %v6624_v30  ;;  %v6625_v36 = vunpack.i.l.bf16 %v6624_v30  ;;  %v6629_v38 = vpop.permute.xlu1 %6628  ;;  %v1314_v39 = vpack.c.bf16 %v1283_v11, %v1282_v32 }
  0xfd   : > { %v6631_v40 = vunpack.i.h.bf16 %v6629_v38  ;;  %v6630_v41 = vunpack.i.l.bf16 %v6629_v38  ;;  %5665 = vmatprep.mubr.msk.bf16.mxu0 %vm1440_vm8, %v1315_v56  ;;  %v9884_v38 = vmov 0.0  }
  0xfe   : > { %v1186_v42 = vsel %vm1158_vm4, %v7650_v59, %v6626_v35  ;;  %v1185_v43 = vsel %vm1158_vm4, %v7631_v37, %v6625_v36  ;;  %2573 = vmatprep.subr.mxu1 %v9884_v38 }
  0xff   : > { %v1218_v45 = vsel %vm1191_vm5, %v1185_v43, %v6630_v41  ;;  %v1219_v46 = vsel %vm1191_vm5, %v1186_v42, %v6631_v40  ;;  %v6634_v50 = vpop.permute.xlu0 %6633  ;;  %1648 = vmatmul.mubr.bf16.gmra.mxu0 %v1314_v39  ;;  %v2473_v39 = vld [vmem:[%s9869_s3 + $0x78] sm:$0xff]  ;;  %v2472_v40 = vld [vmem:[%s9869_s3 + $0x70] sm:$0xff]  ;;  %v2471_v41 = vld [vmem:[%s9869_s3 + $0x68] sm:$0xff] }
 0x100   : > { %v6636_v44 = vunpack.i.h.bf16 %v6634_v50  ;;  %v6635_v51 = vunpack.i.l.bf16 %v6634_v50  ;;  %v6639_v23 = vpop.permute.xlu1 %6638  ;;  %2574 = vmatpush1.msra.mxu1 %v2473_v39  ;;  %v2470_v42 = vld [vmem:[%s9869_s3 + $0x60] sm:$0xff]  ;;  %v2469_v43 = vld [vmem:[%s9869_s3 + $0x58] sm:$0xff]  ;;  %v9883_v50 = vlaneseq }
 0x101   : > { %v6641_v52 = vunpack.i.h.bf16 %v6639_v23  ;;  %v6640_v53 = vunpack.i.l.bf16 %v6639_v23  ;;  %2575 = vmatprep.subr.mxu1 %v9884_v38 }
 0x102   : > { %v1251_v54 = vsel %vm1224_vm6, %v1218_v45, %v6635_v51  ;;  %v1252_v55 = vsel %vm1224_vm6, %v1219_v46, %v6636_v44  ;;  %2576 = vmatpush1.msra.mxu1 %v2472_v40  ;;  %v2468_v45 = vld [vmem:[%s9869_s3 + $0x50] sm:$0xff]  ;;  %v2467_v46 = vld [vmem:[%s9869_s3 + $0x48] sm:$0xff]  ;;  %v2466_v44 = vld [vmem:[%s9869_s3 + $0x40] sm:$0xff]  ;;  %v7947_v23 = vshrl.u32 %v9883_v50, 7 }
 0x103   : > { %v1317_v58 = vpack.c.bf16 %v6641_v52, %v6640_v53  ;;  %v6644_v59 = vpop.permute.xlu0 %6643  ;;  %v1284_v60 = vsel %vm1257_vm7, %v1251_v54, %v6640_v53  ;;  %v1285_v37 = vsel %vm1257_vm7, %v1252_v55, %v6641_v52  ;;  %2577 = vmatprep.subr.mxu1 %v9884_v38  ;;  %v2465_v51 = vld [vmem:[%s9869_s3 + $0x38] sm:$0xff]  ;;  %v2464_v52 = vld [vmem:[%s9869_s3 + $0x30] sm:$0xff]  ;;  %v2463_v53 = vld [vmem:[%s9869_s3 + $0x28] sm:$0xff] }
 0x104   : > { %v6646_v61 = vunpack.i.h.bf16 %v6644_v59  ;;  %v6645_v48 = vunpack.i.l.bf16 %v6644_v59  ;;  %v6649_v62 = vpop.permute.xlu1 %6648  ;;  %v1316_v34 = vpack.c.bf16 %v1285_v37, %v1284_v60  ;;  %2578 = vmatpush1.msra.mxu1 %v2471_v41  ;;  %9908 = vst [vmem:[#allocation8_spill] sm:$0xff] %v7947_v23  ;;  %v1344_v54 = vsub.s32 0, %v7947_v23  ;;  %v2462_v55 = vld [vmem:[%s9869_s3 + $0x20] sm:$0xff]  ;;  %v2461_v60 = vld [vmem:[%s9869_s3 + $0x18] sm:$0xff] }
 0x105   : > { %v6651_v63 = vunpack.i.h.bf16 %v6649_v62  ;;  %v6650_v6 = vunpack.i.l.bf16 %v6649_v62  ;;  %5666 = vmatprep.mubr.msk.bf16.mxu0 %vm1440_vm8, %v1317_v58  ;;  %2579 = vmatprep.subr.mxu1 %v9884_v38  ;;  %v1340_v58 = vld [vmem:[%s9868_s2] sm:$0x3]  ;;  %v1348_v59 = vsub.s32 1, %v7947_v23  ;;  %v2459_v62 = vld [vmem:[%s9869_s3 + $0x8] sm:$0xff] }
 0x106   : > { %v1188_v1 = vsel %vm1158_vm4, %v7676_v20, %v6646_v61  ;;  %v1187_v2 = vsel %vm1158_vm4, %v7657_v0, %v6645_v48  ;;  %2580 = vmatpush1.msra.mxu1 %v2470_v42  ;;  %v7970_v37 = vrot.slane %v1340_v58, %v1344_v54  ;;  %v2460_v61 = vld [vmem:[%s9869_s3 + $0x10] sm:$0xff] }
 0x107   : > { %v1220_v3 = vsel %vm1191_vm5, %v1187_v2, %v6650_v6  ;;  %v1221_v4 = vsel %vm1191_vm5, %v1188_v1, %v6651_v63  ;;  %v6654_v7 = vpop.permute.xlu0 %6653  ;;  %1658 = vmatmul.mubr.bf16.gmra.mxu0 %v1316_v34  ;;  %2581 = vmatprep.subr.mxu1 %v9884_v38  ;;  %v7976_v48 = vrot.slane %v1340_v58, %v1348_v59  ;;  %v2458_v6 = vld [vmem:[%s9869_s3] sm:$0xff] }
 0x108   : > { %v6656_v8 = vunpack.i.h.bf16 %v6654_v7  ;;  %v6655_v9 = vunpack.i.l.bf16 %v6654_v7  ;;  %v6659_v5 = vpop.permute.xlu1 %6658  ;;  %2582 = vmatpush1.msra.mxu1 %v2469_v43 }
 0x109   : > { %v6661_v10 = vunpack.i.h.bf16 %v6659_v5  ;;  %v6660_v47 = vunpack.i.l.bf16 %v6659_v5  ;;  %2583 = vmatprep.subr.mxu1 %v9884_v38 }
 0x10a   : > { %v1253_v12 = vsel %vm1224_vm6, %v1220_v3, %v6655_v9  ;;  %v1254_v13 = vsel %vm1224_vm6, %v1221_v4, %v6656_v8  ;;  %2584 = vmatpush1.msra.mxu1 %v2468_v45  ;;  %v2475_v3 = vld [vmem:[%s9869_s3 + $0x88] sm:$0xff]  ;;  %v2474_v9 = vld [vmem:[%s9869_s3 + $0x80] sm:$0xff] }
 0x10b   : > { %v1319_v14 = vpack.c.bf16 %v6661_v10, %v6660_v47  ;;  %v6664_v20 = vpop.permute.xlu0 %6663  ;;  %v1286_v15 = vsel %vm1257_vm7, %v1253_v12, %v6660_v47  ;;  %v1287_v0 = vsel %vm1257_vm7, %v1254_v13, %v6661_v10  ;;  %2585 = vmatprep.subr.mxu1 %v9884_v38 }
 0x10c   : > { %v6666_v16 = vunpack.i.h.bf16 %v6664_v20  ;;  %v6665_v17 = vunpack.i.l.bf16 %v6664_v20  ;;  %v6669_v18 = vpop.permute.xlu1 %6668  ;;  %v1318_v19 = vpack.c.bf16 %v1287_v0, %v1286_v15  ;;  %2586 = vmatpush1.msra.mxu1 %v2467_v46 }
 0x10d   : > { %v6671_v21 = vunpack.i.h.bf16 %v6669_v18  ;;  %v6670_v22 = vunpack.i.l.bf16 %v6669_v18  ;;  %5667 = vmatprep.mubr.msk.bf16.mxu0 %vm1440_vm8, %v1319_v14  ;;  %2587 = vmatprep.subr.mxu1 %v9884_v38 }
 0x10e   : > { %v1190_v24 = vsel %vm1158_vm4, %v7706_v57, %v6666_v16  ;;  %v1189_v49 = vsel %vm1158_vm4, %v7683_v27, %v6665_v17  ;;  %2588 = vmatpush1.msra.mxu1 %v2466_v44 }
 0x10f   : > { %v1222_v25 = vsel %vm1191_vm5, %v1189_v49, %v6670_v22  ;;  %v1223_v26 = vsel %vm1191_vm5, %v1190_v24, %v6671_v21  ;;  %1668 = vmatmul.mubr.bf16.gmra.mxu0 %v1318_v19  ;;  %v6674_v28 = vpop.permute.xlu0 %6673  ;;  %2589 = vmatprep.subr.mxu1 %v9884_v38 }
 0x110   : > { %v6676_v29 = vunpack.i.h.bf16 %v6674_v28  ;;  %v6675_v31 = vunpack.i.l.bf16 %v6674_v28  ;;  %v6679_v33 = vpop.permute.xlu1 %6678  ;;  %2590 = vmatpush1.msra.mxu1 %v2465_v51 }
 0x111   : > { %v6681_v56 = vunpack.i.h.bf16 %v6679_v33  ;;  %v6680_v30 = vunpack.i.l.bf16 %v6679_v33  ;;  %2591 = vmatprep.subr.mxu1 %v9884_v38 }
 0x112   : > { %v1255_v32 = vsel %vm1224_vm6, %v1222_v25, %v6675_v31  ;;  %v1256_v11 = vsel %vm1224_vm6, %v1223_v26, %v6676_v29  ;;  %2592 = vmatpush1.msra.mxu1 %v2464_v52 }
 0x113   : > { %v1321_v35 = vpack.c.bf16 %v6681_v56, %v6680_v30  ;;  %v1288_v57 = vsel %vm1257_vm7, %v1255_v32, %v6680_v30  ;;  %v1289_v27 = vsel %vm1257_vm7, %v1256_v11, %v6681_v56  ;;  %2593 = vmatprep.subr.mxu1 %v9884_v38 }
 0x114   : > { %v1320_v36 = vpack.c.bf16 %v1289_v27, %v1288_v57  ;;  %2594 = vmatpush1.msra.mxu1 %v2463_v53 }
 0x115   : > { %5668 = vmatprep.mubr.msk.bf16.mxu0 %vm1440_vm8, %v1321_v35  ;;  %2595 = vmatprep.subr.mxu1 %v9884_v38 }
 0x116   : > { %2596 = vmatpush1.msra.mxu1 %v2462_v55 }
 0x117   : > { %1678 = vmatmul.mubr.bf16.gmra.mxu0 %v1320_v36  ;;  %2597 = vmatprep.subr.mxu1 %v9884_v38 }
 0x118   : > { %2598 = vmatpush1.msra.mxu1 %v2461_v60 }
 0x119   : > { %2599 = vmatprep.subr.mxu1 %v9884_v38 }
 0x11a   : > { %2600 = vmatpush1.msra.mxu1 %v2460_v61 }
 0x11b   : > { %2601 = vmatprep.subr.mxu1 %v9884_v38 }
 0x11c   : > { %2602 = vmatpush1.msra.mxu1 %v2459_v62 }
 0x11d   : > { %2603 = vmatprep.subr.mxu1 %v9884_v38 }
 0x11e   : > { %2604 = vmatpush1.msra.mxu1 %v2458_v6 }
 0x11f   : > { %2633 = vmatprep.subr.mxu1 %v9884_v38 }
 0x120   : > { %2634 = vmatpush2.msra.mxu1 %v2475_v3 }
 0x121   : > { %2635 = vmatprep.subr.mxu1 %v9884_v38 }
 0x122   : > { %2636 = vmatpush2.msra.mxu1 %v2474_v9 }
 0x15f   : > { %v1529_v34 = vpop.f32.mrf.mxu0 }
 0x160   : > { %v1530_v63 = vadd.f32 %v1529_v34, %v7970_v37 }
 0x161   : > { %v1531_v1 = vpop.f32.mrf.mxu0 }
 0x162   : > { %v1532_v2 = vadd.f32 %v1531_v1, %v7976_v48  ;;  %v1688_v7 = vmax.f32 %v1530_v63, 0.0 }
 0x163   : > { %v1533_v4 = vpop.f32.mrf.mxu0 }
 0x164   : > { %v1534_v8 = vadd.f32 %v1533_v4, %v7970_v37  ;;  %v1689_v5 = vmax.f32 %v1532_v2, 0.0  ;;  %v1816_v14 = vrot.slane %v1688_v7, 1 }
 0x165   : > { %v1535_v10 = vpop.f32.mrf.mxu0 }
 0x166   : > { %v1690_v47 = vmax.f32 %v1534_v8, 0.0  ;;  %v1536_v12 = vadd.f32 %v1535_v10, %v7976_v48  ;;  %v1819_v16 = vrot.slane %v1689_v5, 1 }
 0x167   : > { %v1539_v13 = vpop.f32.mrf.mxu0 }
 0x168   : > { %v1817_v20 = vrot.slane %v1690_v47, 1  ;;  %v1691_v15 = vmax.f32 %v1536_v12, 0.0  ;;  %v1540_v0 = vadd.f32 %v1539_v13, %v7970_v37 }
 0x169   : > { %v1541_v17 = vpop.f32.mrf.mxu0 }
 0x16a   : > { %v1820_v18 = vrot.slane %v1691_v15, 1  ;;  %v1692_v19 = vmax.f32 %v1540_v0, 0.0  ;;  %v1542_v21 = vadd.f32 %v1541_v17, %v7976_v48  ;;  %v1818_v22 = vsel %vm506_vm0, %v1816_v14, %v1817_v20 }
 0x16b   : > { %v1543_v24 = vpop.f32.mrf.mxu0  ;;  %v8001_v49 = vmax.f32 %v1688_v7, %v1818_v22 }
 0x16c   : > { %v1822_v25 = vrot.slane %v1692_v19, 1  ;;  %v1693_v26 = vmax.f32 %v1542_v21, 0.0  ;;  %v1544_v28 = vadd.f32 %v1543_v24, %v7970_v37  ;;  %v1821_v29 = vsel %vm506_vm0, %v1819_v16, %v1820_v18 }
 0x16d   : > { %v1545_v31 = vpop.f32.mrf.mxu0  ;;  %2136 = vrot.lane.b32.xlu1 %v8001_v49, %s7156_s17  ;;  %v8007_v33 = vmax.f32 %v1689_v5, %v1821_v29 }
 0x16e   : > { %v1824_v56 = vrot.slane %v1693_v26, 1  ;;  %v1694_v30 = vmax.f32 %v1544_v28, 0.0  ;;  %v1546_v32 = vadd.f32 %v1545_v31, %v7976_v48  ;;  %v1823_v11 = vsel %vm506_vm0, %v1817_v20, %v1822_v25 }
 0x16f   : > { %v1549_v35 = vpop.f32.mrf.mxu0  ;;  %2138 = vrot.lane.b32.xlu0 %v8007_v33, %s7156_s17  ;;  %v8013_v57 = vmax.f32 %v1690_v47, %v1823_v11 }
 0x170   : > { %v1826_v27 = vrot.slane %v1694_v30, 1  ;;  %v1695_v36 = vmax.f32 %v1546_v32, 0.0  ;;  %v1550_v39 = vadd.f32 %v1549_v35, %v7970_v37  ;;  %v1825_v40 = vsel %vm506_vm0, %v1820_v18, %v1824_v56 }
 0x171   : > { %v1551_v41 = vpop.f32.mrf.mxu0  ;;  %2140 = vrot.lane.b32.xlu1 %v8013_v57, %s7156_s17  ;;  %v8019_v42 = vmax.f32 %v1691_v15, %v1825_v40 }
 0x172   : > { %v1828_v43 = vrot.slane %v1695_v36, 1  ;;  %v1696_v45 = vmax.f32 %v1550_v39, 0.0  ;;  %v1552_v46 = vadd.f32 %v1551_v41, %v7976_v48  ;;  %v1827_v44 = vsel %vm506_vm0, %v1822_v25, %v1826_v27 }
 0x173   : > { %v1553_v51 = vpop.f32.mrf.mxu0  ;;  %2142 = vrot.lane.b32.xlu0 %v8019_v42, %s7156_s17  ;;  %v8025_v52 = vmax.f32 %v1692_v19, %v1827_v44 }
 0x174   : > { %v1830_v53 = vrot.slane %v1696_v45, 1  ;;  %v1697_v54 = vmax.f32 %v1552_v46, 0.0  ;;  %v1554_v55 = vadd.f32 %v1553_v51, %v7970_v37  ;;  %v1829_v58 = vsel %vm506_vm0, %v1824_v56, %v1828_v43 }
 0x175   : > { %v1555_v59 = vpop.f32.mrf.mxu0  ;;  %2144 = vrot.lane.b32.xlu1 %v8025_v52, %s7156_s17  ;;  %v8031_v60 = vmax.f32 %v1693_v26, %v1829_v58 }
 0x176   : > { %v1832_v61 = vrot.slane %v1697_v54, 1  ;;  %v1698_v62 = vmax.f32 %v1554_v55, 0.0  ;;  %v1556_v34 = vadd.f32 %v1555_v59, %v7976_v48  ;;  %v1831_v63 = vsel %vm506_vm0, %v1826_v27, %v1830_v53 }
 0x177   : > { %v1559_v6 = vpop.f32.mrf.mxu0  ;;  %2146 = vrot.lane.b32.xlu0 %v8031_v60, %s7156_s17  ;;  %v8037_v1 = vmax.f32 %v1694_v30, %v1831_v63 }
 0x178   : > { %v1834_v2 = vrot.slane %v1698_v62, 1  ;;  %v1699_v3 = vmax.f32 %v1556_v34, 0.0  ;;  %v1560_v4 = vadd.f32 %v1559_v6, %v7970_v37  ;;  %v1833_v7 = vsel %vm506_vm0, %v1828_v43, %v1832_v61 }
 0x179   : > { %v1561_v8 = vpop.f32.mrf.mxu0  ;;  %2148 = vrot.lane.b32.xlu1 %v8037_v1, %s7156_s17  ;;  %v8043_v9 = vmax.f32 %v1695_v36, %v1833_v7 }
 0x17a   : > { %v1836_v5 = vrot.slane %v1699_v3, 1  ;;  %v1700_v10 = vmax.f32 %v1560_v4, 0.0  ;;  %v1562_v47 = vadd.f32 %v1561_v8, %v7976_v48  ;;  %v1835_v12 = vsel %vm506_vm0, %v1830_v53, %v1834_v2 }
 0x17b   : > { %v1563_v13 = vpop.f32.mrf.mxu0  ;;  %2150 = vrot.lane.b32.xlu0 %v8043_v9, %s7156_s17  ;;  %v8049_v14 = vmax.f32 %v1696_v45, %v1835_v12 }
 0x17c   : > { %v1838_v20 = vrot.slane %v1700_v10, 1  ;;  %v1701_v15 = vmax.f32 %v1562_v47, 0.0  ;;  %v1564_v0 = vadd.f32 %v1563_v13, %v7970_v37  ;;  %v1837_v16 = vsel %vm506_vm0, %v1832_v61, %v1836_v5 }
 0x17d   : > { %v1565_v17 = vpop.f32.mrf.mxu0  ;;  %2152 = vrot.lane.b32.xlu1 %v8049_v14, %s7156_s17  ;;  %v8055_v18 = vmax.f32 %v1697_v54, %v1837_v16 }
 0x17e   : > { %v1840_v19 = vrot.slane %v1701_v15, 1  ;;  %v1702_v21 = vmax.f32 %v1564_v0, 0.0  ;;  %v1566_v22 = vadd.f32 %v1565_v17, %v7976_v48  ;;  %v1839_v24 = vsel %vm506_vm0, %v1834_v2, %v1838_v20 }
 0x17f   : > { %v1569_v25 = vpop.f32.mrf.mxu0  ;;  %2154 = vrot.lane.b32.xlu0 %v8055_v18, %s7156_s17  ;;  %v8061_v26 = vmax.f32 %v1698_v62, %v1839_v24 }
 0x180   : > { %v1842_v28 = vrot.slane %v1702_v21, 1  ;;  %v1703_v29 = vmax.f32 %v1566_v22, 0.0  ;;  %v1570_v31 = vadd.f32 %v1569_v25, %v7970_v37  ;;  %v1841_v56 = vsel %vm506_vm0, %v1836_v5, %v1840_v19 }
 0x181   : > { %v1571_v30 = vpop.f32.mrf.mxu0  ;;  %2156 = vrot.lane.b32.xlu1 %v8061_v26, %s7156_s17  ;;  %v8067_v32 = vmax.f32 %v1699_v3, %v1841_v56 }
 0x182   : > { %v1844_v11 = vrot.slane %v1703_v29, 1  ;;  %v1704_v35 = vmax.f32 %v1570_v31, 0.0  ;;  %v1572_v27 = vadd.f32 %v1571_v30, %v7976_v48  ;;  %v1843_v36 = vsel %vm506_vm0, %v1838_v20, %v1842_v28 }
 0x183   : > { %v1573_v39 = vpop.f32.mrf.mxu0  ;;  %2158 = vrot.lane.b32.xlu0 %v8067_v32, %s7156_s17  ;;  %v8073_v40 = vmax.f32 %v1700_v10, %v1843_v36 }
 0x184   : > { %v1846_v41 = vrot.slane %v1704_v35, 1  ;;  %v1705_v43 = vmax.f32 %v1572_v27, 0.0  ;;  %v1574_v45 = vadd.f32 %v1573_v39, %v7970_v37  ;;  %v1845_v46 = vsel %vm506_vm0, %v1840_v19, %v1844_v11 }
 0x185   : > { %v1575_v44 = vpop.f32.mrf.mxu0  ;;  %2160 = vrot.lane.b32.xlu1 %v8073_v40, %s7156_s17  ;;  %v8079_v51 = vmax.f32 %v1701_v15, %v1845_v46 }
 0x186   : > { %v1848_v53 = vrot.slane %v1705_v43, 1  ;;  %v1706_v54 = vmax.f32 %v1574_v45, 0.0  ;;  %v1576_v55 = vadd.f32 %v1575_v44, %v7976_v48  ;;  %v1847_v58 = vsel %vm506_vm0, %v1842_v28, %v1846_v41 }
 0x187   : > { %v1579_v59 = vpop.f32.mrf.mxu0  ;;  %2162 = vrot.lane.b32.xlu0 %v8079_v51, %s7156_s17  ;;  %v8085_v61 = vmax.f32 %v1702_v21, %v1847_v58 }
 0x188   : > { %v1850_v62 = vrot.slane %v1706_v54, 1  ;;  %v1707_v34 = vmax.f32 %v1576_v55, 0.0  ;;  %v1580_v63 = vadd.f32 %v1579_v59, %v7970_v37  ;;  %v1849_v6 = vsel %vm506_vm0, %v1844_v11, %v1848_v53 }
 0x189   : > { %v1581_v2 = vpop.f32.mrf.mxu0  ;;  %2164 = vrot.lane.b32.xlu1 %v8085_v61, %s7156_s17  ;;  %v8091_v3 = vmax.f32 %v1703_v29, %v1849_v6 }
 0x18a   : > { %v1852_v4 = vrot.slane %v1707_v34, 1  ;;  %v1708_v7 = vmax.f32 %v1580_v63, 0.0  ;;  %v1582_v8 = vadd.f32 %v1581_v2, %v7976_v48  ;;  %v1851_v5 = vsel %vm506_vm0, %v1846_v41, %v1850_v62 }
 0x18b   : > { %v1583_v10 = vpop.f32.mrf.mxu0  ;;  %2166 = vrot.lane.b32.xlu0 %v8091_v3, %s7156_s17  ;;  %v8097_v47 = vmax.f32 %v1704_v35, %v1851_v5 }
 0x18c   : > { %v1854_v12 = vrot.slane %v1708_v7, 1  ;;  %v1709_v13 = vmax.f32 %v1582_v8, 0.0  ;;  %v1584_v20 = vadd.f32 %v1583_v10, %v7970_v37  ;;  %v1853_v15 = vsel %vm506_vm0, %v1848_v53, %v1852_v4 }
 0x18d   : > { %v1585_v0 = vpop.f32.mrf.mxu0  ;;  %2168 = vrot.lane.b32.xlu1 %v8097_v47, %s7156_s17  ;;  %v8103_v16 = vmax.f32 %v1705_v43, %v1853_v15 }
 0x18e   : > { %v1856_v17 = vrot.slane %v1709_v13, 1  ;;  %v1710_v19 = vmax.f32 %v1584_v20, 0.0  ;;  %v1586_v21 = vadd.f32 %v1585_v0, %v7976_v48  ;;  %v1855_v22 = vsel %vm506_vm0, %v1850_v62, %v1854_v12 }
 0x18f   : > { %v1589_v24 = vpop.f32.mrf.mxu0  ;;  %2170 = vrot.lane.b32.xlu0 %v8103_v16, %s7156_s17  ;;  %v8109_v25 = vmax.f32 %v1706_v54, %v1855_v22 }
 0x190   : > { %v1858_v28 = vrot.slane %v1710_v19, 1  ;;  %v1711_v29 = vmax.f32 %v1586_v21, 0.0  ;;  %v1590_v31 = vadd.f32 %v1589_v24, %v7970_v37  ;;  %v1857_v56 = vsel %vm506_vm0, %v1852_v4, %v1856_v17 }
 0x191   : > { %v1591_v30 = vpop.f32.mrf.mxu0  ;;  %2172 = vrot.lane.b32.xlu1 %v8109_v25, %s7156_s17  ;;  %v8115_v11 = vmax.f32 %v1707_v34, %v1857_v56 }
 0x192   : > { %v1860_v35 = vrot.slane %v1711_v29, 1  ;;  %v1712_v27 = vmax.f32 %v1590_v31, 0.0  ;;  %v1592_v36 = vadd.f32 %v1591_v30, %v7976_v48  ;;  %v1859_v39 = vsel %vm506_vm0, %v1854_v12, %v1858_v28 }
 0x193   : > { %v1593_v41 = vpop.f32.mrf.mxu0  ;;  %2174 = vrot.lane.b32.xlu0 %v8115_v11, %s7156_s17  ;;  %v8121_v43 = vmax.f32 %v1708_v7, %v1859_v39 }
 0x194   : > { %v1862_v45 = vrot.slane %v1712_v27, 1  ;;  %v1713_v46 = vmax.f32 %v1592_v36, 0.0  ;;  %v1594_v44 = vadd.f32 %v1593_v41, %v7970_v37  ;;  %v1861_v53 = vsel %vm506_vm0, %v1856_v17, %v1860_v35 }
 0x195   : > { %v1595_v54 = vpop.f32.mrf.mxu0  ;;  %2176 = vrot.lane.b32.xlu1 %v8121_v43, %s7156_s17  ;;  %v8127_v55 = vmax.f32 %v1709_v13, %v1861_v53 }
 0x196   : > { %v1864_v58 = vrot.slane %v1713_v46, 1  ;;  %v1714_v59 = vmax.f32 %v1594_v44, 0.0  ;;  %v1596_v62 = vadd.f32 %v1595_v54, %v7976_v48  ;;  %v1863_v34 = vsel %vm506_vm0, %v1858_v28, %v1862_v45 }
 0x197   : > { %v1599_v63 = vpop.f32.mrf.mxu0  ;;  %2178 = vrot.lane.b32.xlu0 %v8127_v55, %s7156_s17  ;;  %v8133_v6 = vmax.f32 %v1710_v19, %v1863_v34 }
 0x198   : > { %v1866_v2 = vrot.slane %v1714_v59, 1  ;;  %v1715_v4 = vmax.f32 %v1596_v62, 0.0  ;;  %v1600_v7 = vadd.f32 %v1599_v63, %v7970_v37  ;;  %v1865_v8 = vsel %vm506_vm0, %v1860_v35, %v1864_v58 }
 0x199   : > { %v1601_v5 = vpop.f32.mrf.mxu0  ;;  %2180 = vrot.lane.b32.xlu1 %v8133_v6, %s7156_s17  ;;  %v8139_v10 = vmax.f32 %v1711_v29, %v1865_v8 }
 0x19a   : > { %v1868_v12 = vrot.slane %v1715_v4, 1  ;;  %v1716_v13 = vmax.f32 %v1600_v7, 0.0  ;;  %v1602_v20 = vadd.f32 %v1601_v5, %v7976_v48  ;;  %v1867_v15 = vsel %vm506_vm0, %v1862_v45, %v1866_v2 }
 0x19b   : > { %v1603_v0 = vpop.f32.mrf.mxu0  ;;  %2182 = vrot.lane.b32.xlu0 %v8139_v10, %s7156_s17  ;;  %v8145_v17 = vmax.f32 %v1712_v27, %v1867_v15 }
 0x19c   : > { %v1870_v19 = vrot.slane %v1716_v13, 1  ;;  %v1717_v21 = vmax.f32 %v1602_v20, 0.0  ;;  %v1604_v22 = vadd.f32 %v1603_v0, %v7970_v37  ;;  %v1869_v24 = vsel %vm506_vm0, %v1864_v58, %v1868_v12 }
 0x19d   : > { %v1605_v28 = vpop.f32.mrf.mxu0  ;;  %2184 = vrot.lane.b32.xlu1 %v8145_v17, %s7156_s17  ;;  %v8151_v29 = vmax.f32 %v1713_v46, %v1869_v24 }
 0x19e   : > { %v1872_v31 = vrot.slane %v1717_v21, 1  ;;  %v1718_v56 = vmax.f32 %v1604_v22, 0.0  ;;  %v1606_v30 = vadd.f32 %v1605_v28, %v7976_v48  ;;  %v1871_v35 = vsel %vm506_vm0, %v1866_v2, %v1870_v19 }
 0x19f   : > { %v1609_v27 = vpop.f32.mrf.mxu0  ;;  %2186 = vrot.lane.b32.xlu0 %v8151_v29, %s7156_s17  ;;  %v8157_v36 = vmax.f32 %v1714_v59, %v1871_v35 }
 0x1a0   : > { %v1874_v39 = vrot.slane %v1718_v56, 1  ;;  %v1719_v41 = vmax.f32 %v1606_v30, 0.0  ;;  %v1610_v45 = vadd.f32 %v1609_v27, %v7970_v37  ;;  %v1873_v44 = vsel %vm506_vm0, %v1868_v12, %v1872_v31 }
 0x1a1   : > { %v1611_v46 = vpop.f32.mrf.mxu0  ;;  %2188 = vrot.lane.b32.xlu1 %v8157_v36, %s7156_s17  ;;  %v8163_v53 = vmax.f32 %v1715_v4, %v1873_v44 }
 0x1a2   : > { %v1876_v54 = vrot.slane %v1719_v41, 1  ;;  %v1720_v58 = vmax.f32 %v1610_v45, 0.0  ;;  %v1612_v62 = vadd.f32 %v1611_v46, %v7976_v48  ;;  %v1875_v34 = vsel %vm506_vm0, %v1870_v19, %v1874_v39 }
 0x1a3   : > { %v1613_v59 = vpop.f32.mrf.mxu0  ;;  %2190 = vrot.lane.b32.xlu0 %v8163_v53, %s7156_s17  ;;  %v8169_v63 = vmax.f32 %v1716_v13, %v1875_v34 }
 0x1a4   : > { %v1878_v2 = vrot.slane %v1720_v58, 1  ;;  %v1721_v7 = vmax.f32 %v1612_v62, 0.0  ;;  %v1614_v8 = vadd.f32 %v1613_v59, %v7970_v37  ;;  %v1877_v5 = vsel %vm506_vm0, %v1872_v31, %v1876_v54 }
 0x1a5   : > { %v1615_v4 = vpop.f32.mrf.mxu0  ;;  %2192 = vrot.lane.b32.xlu1 %v8169_v63, %s7156_s17  ;;  %v8175_v12 = vmax.f32 %v1717_v21, %v1877_v5 }
 0x1a6   : > { %v1880_v20 = vrot.slane %v1721_v7, 1  ;;  %v1722_v15 = vmax.f32 %v1614_v8, 0.0  ;;  %v1616_v0 = vadd.f32 %v1615_v4, %v7976_v48  ;;  %v1879_v19 = vsel %vm506_vm0, %v1874_v39, %v1878_v2 }
 0x1a7   : > { %v1619_v13 = vpop.f32.mrf.mxu0  ;;  %2194 = vrot.lane.b32.xlu0 %v8175_v12, %s7156_s17  ;;  %v8181_v22 = vmax.f32 %v1718_v56, %v1879_v19 }
 0x1a8   : > { %v1882_v24 = vrot.slane %v1722_v15, 1  ;;  %v1723_v28 = vmax.f32 %v1616_v0, 0.0  ;;  %v1620_v31 = vadd.f32 %v1619_v13, %v7970_v37  ;;  %v1881_v30 = vsel %vm506_vm0, %v1876_v54, %v1880_v20 }
 0x1a9   : > { %v1621_v21 = vpop.f32.mrf.mxu0  ;;  %2196 = vrot.lane.b32.xlu1 %v8181_v22, %s7156_s17  ;;  %v8187_v35 = vmax.f32 %v1719_v41, %v1881_v30 }
 0x1aa   : > { %v1884_v27 = vrot.slane %v1723_v28, 1  ;;  %v1724_v39 = vmax.f32 %v1620_v31, 0.0  ;;  %v1622_v45 = vadd.f32 %v1621_v21, %v7976_v48  ;;  %v1883_v44 = vsel %vm506_vm0, %v1878_v2, %v1882_v24 }
 0x1ab   : > { %v1623_v56 = vpop.f32.mrf.mxu0  ;;  %2198 = vrot.lane.b32.xlu0 %v8187_v35, %s7156_s17  ;;  %v8193_v46 = vmax.f32 %v1720_v58, %v1883_v44 }
 0x1ac   : > { %v1886_v62 = vrot.slane %v1724_v39, 1  ;;  %v1725_v54 = vmax.f32 %v1622_v45, 0.0  ;;  %v1624_v34 = vadd.f32 %v1623_v56, %v7970_v37  ;;  %v1885_v59 = vsel %vm506_vm0, %v1880_v20, %v1884_v27 }
 0x1ad   : > { %v1625_v41 = vpop.f32.mrf.mxu0  ;;  %2200 = vrot.lane.b32.xlu1 %v8193_v46, %s7156_s17  ;;  %v8199_v8 = vmax.f32 %v1721_v7, %v1885_v59 }
 0x1ae   : > { %v1887_v2 = vsel %vm506_vm0, %v1882_v24, %v1886_v62  ;;  %v1888_v5 = vrot.slane %v1725_v54, 1  ;;  %v1726_v4 = vmax.f32 %v1624_v34, 0.0  ;;  %v1626_v0 = vadd.f32 %v1625_v41, %v7976_v48 }
 0x1af   : > { %v1629_v58 = vpop.f32.mrf.mxu0  ;;  %2202 = vrot.lane.b32.xlu0 %v8199_v8, %s7156_s17  ;;  %v8205_v19 = vmax.f32 %v1722_v15, %v1887_v2 }
 0x1b0   : > { %v1889_v20 = vsel %vm506_vm0, %v1884_v27, %v1888_v5  ;;  %v1890_v13 = vrot.slane %v1726_v4, 1  ;;  %v1727_v31 = vmax.f32 %v1626_v0, 0.0  ;;  %v1630_v30 = vadd.f32 %v1629_v58, %v7970_v37 }
 0x1b1   : > { %v1631_v7 = vpop.f32.mrf.mxu0  ;;  %2204 = vrot.lane.b32.xlu1 %v8205_v19, %s7156_s17  ;;  %v8211_v24 = vmax.f32 %v1723_v28, %v1889_v20 }
 0x1b2   : > { %v1891_v21 = vsel %vm506_vm0, %v1886_v62, %v1890_v13  ;;  %v1892_v45 = vrot.slane %v1727_v31, 1  ;;  %v1728_v44 = vmax.f32 %v1630_v30, 0.0  ;;  %v1632_v56 = vadd.f32 %v1631_v7, %v7976_v48 }
 0x1b3   : > { %v1633_v15 = vpop.f32.mrf.mxu0  ;;  %2206 = vrot.lane.b32.xlu0 %v8211_v24, %s7156_s17  ;;  %v8217_v27 = vmax.f32 %v1724_v39, %v1891_v21 }
 0x1b4   : > { %v1893_v34 = vsel %vm506_vm0, %v1888_v5, %v1892_v45  ;;  %v1894_v59 = vrot.slane %v1728_v44, 1  ;;  %v1729_v41 = vmax.f32 %v1632_v56, 0.0  ;;  %v1634_v2 = vadd.f32 %v1633_v15, %v7970_v37 }
 0x1b5   : > { %v1635_v28 = vpop.f32.mrf.mxu0  ;;  %2208 = vrot.lane.b32.xlu1 %v8217_v27, %s7156_s17  ;;  %v8223_v62 = vmax.f32 %v1725_v54, %v1893_v34 }
 0x1b6   : > { %v1895_v0 = vsel %vm506_vm0, %v1890_v13, %v1894_v59  ;;  %v1896_v58 = vrot.slane %v1729_v41, 1  ;;  %v1730_v20 = vmax.f32 %v1634_v2, 0.0  ;;  %v1636_v30 = vadd.f32 %v1635_v28, %v7976_v48 }
 0x1b7   : > { %v1639_v39 = vpop.f32.mrf.mxu0  ;;  %2210 = vrot.lane.b32.xlu0 %v8223_v62, %s7156_s17  ;;  %v8229_v5 = vmax.f32 %v1726_v4, %v1895_v0 }
 0x1b8   : > { %v1897_v7 = vsel %vm506_vm0, %v1892_v45, %v1896_v58  ;;  %v1898_v21 = vrot.slane %v1730_v20, 1  ;;  %v1731_v56 = vmax.f32 %v1636_v30, 0.0  ;;  %v1640_v15 = vadd.f32 %v1639_v39, %v7970_v37 }
 0x1b9   : > { %v1641_v54 = vpop.f32.mrf.mxu0  ;;  %2212 = vrot.lane.b32.xlu1 %v8229_v5, %s7156_s17  ;;  %v8235_v13 = vmax.f32 %v1727_v31, %v1897_v7 }
 0x1ba   : > { %v1899_v34 = vsel %vm506_vm0, %v1894_v59, %v1898_v21  ;;  %v1900_v2 = vrot.slane %v1731_v56, 1  ;;  %v1732_v28 = vmax.f32 %v1640_v15, 0.0  ;;  %v1642_v50 = vadd.f32 %v1641_v54, %v7976_v48 }
 0x1bb   : > { %v1643_v4 = vpop.f32.mrf.mxu0  ;;  %2214 = vrot.lane.b32.xlu0 %v8235_v13, %s7156_s17  ;;  %v8241_v45 = vmax.f32 %v1728_v44, %v1899_v34 }
 0x1bc   : > { %v1901_v0 = vsel %vm506_vm0, %v1896_v58, %v1900_v2  ;;  %v1902_v30 = vrot.slane %v1732_v28, 1  ;;  %v1733_v39 = vmax.f32 %v1642_v50, 0.0  ;;  %v1644_v38 = vadd.f32 %v1643_v4, %v7970_v37 }
 0x1bd   : > { %9909 = vst [vmem:[#allocation9_spill] sm:$0xff] %v8241_v45  ;;  %v1645_v31 = vpop.f32.mrf.mxu0  ;;  %2216 = vrot.lane.b32.xlu1 %v8241_v45, %s7156_s17  ;;  %v8247_v59 = vmax.f32 %v1729_v41, %v1901_v0 }
 0x1be   : > { %v1903_v7 = vsel %vm506_vm0, %v1898_v21, %v1902_v30  ;;  %v1904_v15 = vrot.slane %v1733_v39, 1  ;;  %v1734_v54 = vmax.f32 %v1644_v38, 0.0  ;;  %v1646_v23 = vadd.f32 %v1645_v31, %v7976_v48 }
 0x1bf   : > { %9910 = vst [vmem:[#allocation10_spill] sm:$0xff] %v8247_v59  ;;  %v1649_v44 = vpop.f32.mrf.mxu0  ;;  %2218 = vrot.lane.b32.xlu0 %v8247_v59, %s7156_s17  ;;  %v8253_v58 = vmax.f32 %v1730_v20, %v1903_v7 }
 0x1c0   : > { %v1905_v50 = vsel %vm506_vm0, %v1900_v2, %v1904_v15  ;;  %v1906_v34 = vrot.slane %v1734_v54, 1  ;;  %v1735_v4 = vmax.f32 %v1646_v23, 0.0  ;;  %v1650_v45 = vadd.f32 %v1649_v44, %v7970_v37 }
 0x1c1   : > { %9911 = vst [vmem:[#allocation11_spill] sm:$0xff] %v8253_v58  ;;  %v1651_v41 = vpop.f32.mrf.mxu0  ;;  %2220 = vrot.lane.b32.xlu1 %v8253_v58, %s7156_s17  ;;  %v8259_v21 = vmax.f32 %v1731_v56, %v1905_v50 }
 0x1c2   : > { %v1907_v38 = vsel %vm506_vm0, %v1902_v30, %v1906_v34  ;;  %v1908_v0 = vrot.slane %v1735_v4, 1  ;;  %v1736_v31 = vmax.f32 %v1650_v45, 0.0  ;;  %v1652_v59 = vadd.f32 %v1651_v41, %v7976_v48 }
 0x1c3   : > { %9912 = vst [vmem:[#allocation12_spill] sm:$0xff] %v8259_v21  ;;  %v1653_v20 = vpop.f32.mrf.mxu0  ;;  %2222 = vrot.lane.b32.xlu0 %v8259_v21, %s7156_s17  ;;  %v8265_v2 = vmax.f32 %v1732_v28, %v1907_v38 }
 0x1c4   : > { %v1909_v23 = vsel %vm506_vm0, %v1904_v15, %v1908_v0  ;;  %v1910_v7 = vrot.slane %v1736_v31, 1  ;;  %v1737_v44 = vmax.f32 %v1652_v59, 0.0  ;;  %v1654_v58 = vadd.f32 %v1653_v20, %v7970_v37 }
 0x1c5   : > { %9913 = vst [vmem:[#allocation13_spill] sm:$0xff] %v8265_v2  ;;  %v1655_v56 = vpop.f32.mrf.mxu0  ;;  %2224 = vrot.lane.b32.xlu1 %v8265_v2, %s7156_s17  ;;  %v8271_v30 = vmax.f32 %v1733_v39, %v1909_v23 }
 0x1c6   : > { %v1911_v45 = vsel %vm506_vm0, %v1906_v34, %v1910_v7  ;;  %v1912_v50 = vrot.slane %v1737_v44, 1  ;;  %v1738_v41 = vmax.f32 %v1654_v58, 0.0  ;;  %v1656_v21 = vadd.f32 %v1655_v56, %v7976_v48 }
 0x1c7   : > { %9914 = vst [vmem:[#allocation14_spill] sm:$0xff] %v8271_v30  ;;  %v1659_v28 = vpop.f32.mrf.mxu0  ;;  %2226 = vrot.lane.b32.xlu0 %v8271_v30, %s7156_s17  ;;  %v8277_v15 = vmax.f32 %v1734_v54, %v1911_v45 }
 0x1c8   : > { %v1913_v59 = vsel %vm506_vm0, %v1908_v0, %v1912_v50  ;;  %v1914_v38 = vrot.slane %v1738_v41, 1  ;;  %v1739_v20 = vmax.f32 %v1656_v21, 0.0  ;;  %v1660_v2 = vadd.f32 %v1659_v28, %v7970_v37 }
 0x1c9   : > { %9915 = vst [vmem:[#allocation15_spill] sm:$0xff] %v8277_v15  ;;  %v1661_v39 = vpop.f32.mrf.mxu0  ;;  %2228 = vrot.lane.b32.xlu1 %v8277_v15, %s7156_s17  ;;  %v8283_v34 = vmax.f32 %v1735_v4, %v1913_v59 }
 0x1ca   : > { %v1915_v58 = vsel %vm506_vm0, %v1910_v7, %v1914_v38  ;;  %v1916_v23 = vrot.slane %v1739_v20, 1  ;;  %v1740_v56 = vmax.f32 %v1660_v2, 0.0  ;;  %v1662_v30 = vadd.f32 %v1661_v39, %v7976_v48 }
 0x1cb   : > { %9916 = vst [vmem:[#allocation16_spill] sm:$0xff] %v8283_v34  ;;  %v1663_v54 = vpop.f32.mrf.mxu0  ;;  %2230 = vrot.lane.b32.xlu0 %v8283_v34, %s7156_s17  ;;  %v8289_v0 = vmax.f32 %v1736_v31, %v1915_v58 }
 0x1cc   : > { %v1917_v21 = vsel %vm506_vm0, %v1912_v50, %v1916_v23  ;;  %v1918_v45 = vrot.slane %v1740_v56, 1  ;;  %v1741_v28 = vmax.f32 %v1662_v30, 0.0  ;;  %v1664_v15 = vadd.f32 %v1663_v54, %v7970_v37 }
 0x1cd   : > { %9917 = vst [vmem:[#allocation17_spill] sm:$0xff] %v8289_v0  ;;  %v1665_v4 = vpop.f32.mrf.mxu0  ;;  %2232 = vrot.lane.b32.xlu1 %v8289_v0, %s7156_s17  ;;  %v8295_v7 = vmax.f32 %v1737_v44, %v1917_v21 }
 0x1ce   : > { %v1919_v2 = vsel %vm506_vm0, %v1914_v38, %v1918_v45  ;;  %v1920_v59 = vrot.slane %v1741_v28, 1  ;;  %v1742_v39 = vmax.f32 %v1664_v15, 0.0  ;;  %v1666_v34 = vadd.f32 %v1665_v4, %v7976_v48 }
 0x1cf   : > { %9918 = vst [vmem:[#allocation18_spill] sm:$0xff] %v8295_v7  ;;  %v1669_v31 = vpop.f32.mrf.mxu0  ;;  %2234 = vrot.lane.b32.xlu0 %v8295_v7, %s7156_s17  ;;  %v8301_v50 = vmax.f32 %v1738_v41, %v1919_v2 }
 0x1d0   : > { %v1921_v30 = vsel %vm506_vm0, %v1916_v23, %v1920_v59  ;;  %v1922_v58 = vrot.slane %v1742_v39, 1  ;;  %v1743_v54 = vmax.f32 %v1666_v34, 0.0  ;;  %v1670_v0 = vadd.f32 %v1669_v31, %v7970_v37 }
 0x1d1   : > { %9919 = vst [vmem:[#allocation19_spill] sm:$0xff] %v8301_v50  ;;  %v1671_v44 = vpop.f32.mrf.mxu0  ;;  %2236 = vrot.lane.b32.xlu1 %v8301_v50, %s7156_s17  ;;  %v8307_v38 = vmax.f32 %v1739_v20, %v1921_v30 }
 0x1d2   : > { %v1923_v15 = vsel %vm506_vm0, %v1918_v45, %v1922_v58  ;;  %v1924_v21 = vrot.slane %v1743_v54, 1  ;;  %v1744_v4 = vmax.f32 %v1670_v0, 0.0  ;;  %v1672_v7 = vadd.f32 %v1671_v44, %v7976_v48 }
 0x1d3   : > { %9920 = vst [vmem:[#allocation20_spill] sm:$0xff] %v8307_v38  ;;  %v1673_v41 = vpop.f32.mrf.mxu0  ;;  %2238 = vrot.lane.b32.xlu0 %v8307_v38, %s7156_s17  ;;  %v8313_v23 = vmax.f32 %v1740_v56, %v1923_v15 }
 0x1d4   : > { %v1925_v34 = vsel %vm506_vm0, %v1920_v59, %v1924_v21  ;;  %v1926_v2 = vrot.slane %v1744_v4, 1  ;;  %v1745_v31 = vmax.f32 %v1672_v7, 0.0  ;;  %v1674_v50 = vadd.f32 %v1673_v41, %v7970_v37 }
 0x1d5   : > { %9921 = vst [vmem:[#allocation21_spill] sm:$0xff] %v8313_v23  ;;  %v1675_v20 = vpop.f32.mrf.mxu0  ;;  %2240 = vrot.lane.b32.xlu1 %v8313_v23, %s7156_s17  ;;  %v8319_v45 = vmax.f32 %v1741_v28, %v1925_v34 }
 0x1d6   : > { %v1927_v0 = vsel %vm506_vm0, %v1922_v58, %v1926_v2  ;;  %v1928_v30 = vrot.slane %v1745_v31, 1  ;;  %v1746_v44 = vmax.f32 %v1674_v50, 0.0  ;;  %v1676_v38 = vadd.f32 %v1675_v20, %v7976_v48 }
 0x1d7   : > { %9922 = vst [vmem:[#allocation22_spill] sm:$0xff] %v8319_v45  ;;  %v1679_v56 = vpop.f32.mrf.mxu0  ;;  %2242 = vrot.lane.b32.xlu0 %v8319_v45, %s7156_s17  ;;  %v8325_v59 = vmax.f32 %v1742_v39, %v1927_v0 }
 0x1d8   : > { %v1929_v7 = vsel %vm506_vm0, %v1924_v21, %v1928_v30  ;;  %v1930_v15 = vrot.slane %v1746_v44, 1  ;;  %v1747_v41 = vmax.f32 %v1676_v38, 0.0  ;;  %v1680_v23 = vadd.f32 %v1679_v56, %v7970_v37 }
 0x1d9   : > { %9923 = vst [vmem:[#allocation23_spill] sm:$0xff] %v8325_v59  ;;  %v1681_v28 = vpop.f32.mrf.mxu0  ;;  %2244 = vrot.lane.b32.xlu1 %v8325_v59, %s7156_s17  ;;  %v8331_v58 = vmax.f32 %v1743_v54, %v1929_v7 }
 0x1da   : > { %v1931_v50 = vsel %vm506_vm0, %v1926_v2, %v1930_v15  ;;  %v1932_v34 = vrot.slane %v1747_v41, 1  ;;  %v1748_v20 = vmax.f32 %v1680_v23, 0.0  ;;  %v1682_v45 = vadd.f32 %v1681_v28, %v7976_v48 }
 0x1db   : > { %9924 = vst [vmem:[#allocation24_spill] sm:$0xff] %v8331_v58  ;;  %v1683_v39 = vpop.f32.mrf.mxu0  ;;  %2246 = vrot.lane.b32.xlu0 %v8331_v58, %s7156_s17  ;;  %v8337_v21 = vmax.f32 %v1744_v4, %v1931_v50 }
 0x1dc   : > { %v1933_v38 = vsel %vm506_vm0, %v1928_v30, %v1932_v34  ;;  %v1934_v0 = vrot.slane %v1748_v20, 1  ;;  %v1749_v56 = vmax.f32 %v1682_v45, 0.0  ;;  %v1684_v59 = vadd.f32 %v1683_v39, %v7970_v37 }
 0x1dd   : > { %v1685_v54 = vpop.f32.mrf.mxu0  ;;  %2248 = vrot.lane.b32.xlu1 %v8337_v21, %s7156_s17  ;;  %v8343_v2 = vmax.f32 %v1745_v31, %v1933_v38 }
 0x1de   : > { %v1935_v23 = vsel %vm506_vm0, %v1930_v15, %v1934_v0  ;;  %v1936_v7 = vrot.slane %v1749_v56, 1  ;;  %v1750_v28 = vmax.f32 %v1684_v59, 0.0  ;;  %v1686_v58 = vadd.f32 %v1685_v54, %v7976_v48 }
 0x1df   : > { %2250 = vrot.lane.b32.xlu0 %v8343_v2, %s7156_s17  ;;  %v2137_v4 = vpop.permute.xlu1 %2136  ;;  %v8349_v45 = vmax.f32 %v1746_v44, %v1935_v23 }
 0x1e0   : > { %v1937_v37 = vsel %vm506_vm0, %v1932_v34, %v1936_v7  ;;  %v1938_v30 = vrot.slane %v1750_v28, 1  ;;  %v1751_v50 = vmax.f32 %v1686_v58, 0.0 }
 0x1e1   : > { %v2139_v31 = vpop.permute.xlu0 %2138  ;;  %2252 = vrot.lane.b32.xlu1 %v8349_v45, %s7156_s17  ;;  %v8354_v15 = vmax.f32 %v1747_v41, %v1937_v37 }
 0x1e2   : > { %v1939_v48 = vsel %vm506_vm0, %v1934_v0, %v1938_v30  ;;  %v1940_v59 = vrot.slane %v1751_v50, 1  ;;  %v2265_v39 = vsel %vm2264_vm9, %v2137_v4, %v2139_v31  ;;  %v2362_v34 = vsel %vm2361_vm10, %v2139_v31, 0.0 }
 0x1e3   : > { %2254 = vrot.lane.b32.xlu0 %v8354_v15, %s7156_s17  ;;  %v2141_v44 = vpop.permute.xlu1 %2140  ;;  %v8361_v58 = vmax.f32 %v1748_v20, %v1939_v48  ;;  %v2394_v38 = vmax.f32 %v8001_v49, %v2265_v39  ;;  %v2006_v54 = vsel %vm506_vm0, %v1938_v30, 0.0  ;;  %v2395_v0 = vmax.f32 %v8007_v33, %v2362_v34 }
 0x1e4   : > { %v1941_v41 = vsel %vm506_vm0, %v1936_v7, %v1940_v59  ;;  %v2007_v37 = vsel %vm506_vm0, %v1940_v59, 0.0  ;;  %v8375_v31 = vmax.f32 %v1750_v28, %v2006_v54  ;;  %vm3780_vm0 = vcmask 850944  }
 0x1e5   : > { %v2143_v23 = vpop.permute.xlu0 %2142  ;;  %2256 = vrot.lane.b32.xlu1 %v8361_v58, %s7156_s17  ;;  %v8369_v4 = vmax.f32 %v1749_v56, %v1941_v41  ;;  %5669 = vmatprep.mubr.msk.f32.mxu1 %vm2476_vm11, %v2395_v0  ;;  %v8381_v30 = vmax.f32 %v1751_v50, %v2007_v37 }
 0x1e6   : > { %v2266_v20 = vsel %vm2264_vm9, %v2141_v44, %v2143_v23  ;;  %v2363_v49 = vsel %vm2361_vm10, %v2143_v23, 0.0  ;;  %2638 = vmatmul.mubr.f32.vlgmr.msra.gmra.mxu1 %v2394_v38 }
 0x1e7   : > { %v2397_v7 = vmax.f32 %v8019_v42, %v2363_v49  ;;  %2258 = vrot.lane.b32.xlu0 %v8369_v4, %s7156_s17  ;;  %v2145_v33 = vpop.permute.xlu1 %2144  ;;  %v2396_v56 = vmax.f32 %v8013_v57, %v2266_v20 }
 0x1e9   : > { %v2147_v48 = vpop.permute.xlu0 %2146  ;;  %2260 = vrot.lane.b32.xlu1 %v8375_v31, %s7156_s17  ;;  %5670 = vmatprep.mubr.msk.f32.mxu1 %vm2476_vm11, %v2397_v7 }
 0x1ea   : > { %v2267_v28 = vsel %vm2264_vm9, %v2145_v33, %v2147_v48  ;;  %v2364_v59 = vsel %vm2361_vm10, %v2147_v48, 0.0  ;;  %2643 = vmatmul.mubr.f32.gmra.mxu1 %v2396_v56 }
 0x1eb   : > { %v2399_v42 = vmax.f32 %v8031_v60, %v2364_v59  ;;  %2262 = vrot.lane.b32.xlu0 %v8381_v30, %s7156_s17  ;;  %v2149_v39 = vpop.permute.xlu1 %2148  ;;  %v2398_v57 = vmax.f32 %v8025_v52, %v2267_v28  ;;  %s7158_s17 = smov 72  }
 0x1ed   : > { %v2151_v50 = vpop.permute.xlu0 %2150  ;;  %5671 = vmatprep.mubr.msk.f32.mxu1 %vm2476_vm11, %v2399_v42 }
 0x1ee   : > { %v2268_v44 = vsel %vm2264_vm9, %v2149_v39, %v2151_v50  ;;  %v2365_v34 = vsel %vm2361_vm10, %v2151_v50, 0.0  ;;  %2648 = vmatmul.mubr.f32.gmra.mxu1 %v2398_v57 }
 0x1ef   : > { %v2401_v38 = vmax.f32 %v8043_v9, %v2365_v34  ;;  %v2153_v54 = vpop.permute.xlu1 %2152  ;;  %v2400_v60 = vmax.f32 %v8037_v1, %v2268_v44 }
 0x1f1   : > { %v2155_v41 = vpop.permute.xlu0 %2154  ;;  %5672 = vmatprep.mubr.msk.f32.mxu1 %vm2476_vm11, %v2401_v38 }
 0x1f2   : > { %v2269_v0 = vsel %vm2264_vm9, %v2153_v54, %v2155_v41  ;;  %v2366_v52 = vsel %vm2361_vm10, %v2155_v41, 0.0  ;;  %2653 = vmatmul.mubr.f32.gmra.mxu1 %v2400_v60 }
 0x1f3   : > { %v2403_v23 = vmax.f32 %v8055_v18, %v2366_v52  ;;  %v2157_v37 = vpop.permute.xlu1 %2156  ;;  %v2402_v20 = vmax.f32 %v8049_v14, %v2269_v0 }
 0x1f5   : > { %v2159_v49 = vpop.permute.xlu0 %2158  ;;  %5673 = vmatprep.mubr.msk.f32.mxu1 %vm2476_vm11, %v2403_v23 }
 0x1f6   : > { %v2270_v9 = vsel %vm2264_vm9, %v2157_v37, %v2159_v49  ;;  %v2367_v1 = vsel %vm2361_vm10, %v2159_v49, 0.0  ;;  %2658 = vmatmul.mubr.f32.gmra.mxu1 %v2402_v20 }
 0x1f7   : > { %v2405_v7 = vmax.f32 %v8067_v32, %v2367_v1  ;;  %v2161_v33 = vpop.permute.xlu1 %2160  ;;  %v2404_v56 = vmax.f32 %v8061_v26, %v2270_v9 }
 0x1f9   : > { %v2163_v48 = vpop.permute.xlu0 %2162  ;;  %5674 = vmatprep.mubr.msk.f32.mxu1 %vm2476_vm11, %v2405_v7 }
 0x1fa   : > { %v2271_v18 = vsel %vm2264_vm9, %v2161_v33, %v2163_v48  ;;  %v2368_v14 = vsel %vm2361_vm10, %v2163_v48, 0.0  ;;  %2663 = vmatmul.mubr.f32.gmra.mxu1 %v2404_v56 }
 0x1fb   : > { %v2407_v28 = vmax.f32 %v8079_v51, %v2368_v14  ;;  %v2165_v59 = vpop.permute.xlu1 %2164  ;;  %v2406_v42 = vmax.f32 %v8073_v40, %v2271_v18 }
 0x1fd   : > { %v2167_v39 = vpop.permute.xlu0 %2166  ;;  %5675 = vmatprep.mubr.msk.f32.mxu1 %vm2476_vm11, %v2407_v28 }
 0x1fe   : > { %v2272_v32 = vsel %vm2264_vm9, %v2165_v59, %v2167_v39  ;;  %v2369_v26 = vsel %vm2361_vm10, %v2167_v39, 0.0  ;;  %2668 = vmatmul.mubr.f32.gmra.mxu1 %v2406_v42 }
 0x1ff   : > { %v2409_v57 = vmax.f32 %v8091_v3, %v2369_v26  ;;  %v2169_v50 = vpop.permute.xlu1 %2168  ;;  %v2408_v44 = vmax.f32 %v8085_v61, %v2272_v32 }
 0x201   : > { %v2171_v34 = vpop.permute.xlu0 %2170  ;;  %5676 = vmatprep.mubr.msk.f32.mxu1 %vm2476_vm11, %v2409_v57 }
 0x202   : > { %v2273_v51 = vsel %vm2264_vm9, %v2169_v50, %v2171_v34  ;;  %v2370_v40 = vsel %vm2361_vm10, %v2171_v34, 0.0  ;;  %2673 = vmatmul.mubr.f32.gmra.mxu1 %v2408_v44 }
 0x203   : > { %v2411_v38 = vmax.f32 %v8103_v16, %v2370_v40  ;;  %v2173_v54 = vpop.permute.xlu1 %2172  ;;  %v2410_v60 = vmax.f32 %v8097_v47, %v2273_v51 }
 0x205   : > { %v2175_v41 = vpop.permute.xlu0 %2174  ;;  %5677 = vmatprep.mubr.msk.f32.mxu1 %vm2476_vm11, %v2411_v38 }
 0x206   : > { %v2274_v3 = vsel %vm2264_vm9, %v2173_v54, %v2175_v41  ;;  %v2371_v61 = vsel %vm2361_vm10, %v2175_v41, 0.0  ;;  %2678 = vmatmul.mubr.f32.gmra.mxu1 %v2410_v60 }
 0x207   : > { %v2413_v0 = vmax.f32 %v8115_v11, %v2371_v61  ;;  %v2177_v52 = vpop.permute.xlu1 %2176  ;;  %v2412_v23 = vmax.f32 %v8109_v25, %v2274_v3 }
 0x209   : > { %v2179_v37 = vpop.permute.xlu0 %2178  ;;  %5678 = vmatprep.mubr.msk.f32.mxu1 %vm2476_vm11, %v2413_v0 }
 0x20a   : > { %v2275_v16 = vsel %vm2264_vm9, %v2177_v52, %v2179_v37  ;;  %v2372_v47 = vsel %vm2361_vm10, %v2179_v37, 0.0  ;;  %2683 = vmatmul.mubr.f32.gmra.mxu1 %v2412_v23 }
 0x20b   : > { %v2415_v20 = vmax.f32 %v8127_v55, %v2372_v47  ;;  %v2181_v49 = vpop.permute.xlu1 %2180  ;;  %v2414_v9 = vmax.f32 %v8121_v43, %v2275_v16 }
 0x20d   : > { %v2183_v1 = vpop.permute.xlu0 %2182  ;;  %5679 = vmatprep.mubr.msk.f32.mxu1 %vm2476_vm11, %v2415_v20 }
 0x20e   : > { %v2276_v11 = vsel %vm2264_vm9, %v2181_v49, %v2183_v1  ;;  %v2373_v25 = vsel %vm2361_vm10, %v2183_v1, 0.0  ;;  %2688 = vmatmul.mubr.f32.gmra.mxu1 %v2414_v9 }
 0x20f   : > { %v2417_v7 = vmax.f32 %v8139_v10, %v2373_v25  ;;  %v2185_v33 = vpop.permute.xlu1 %2184  ;;  %v2416_v56 = vmax.f32 %v8133_v6, %v2276_v11 }
 0x211   : > { %v2187_v48 = vpop.permute.xlu0 %2186  ;;  %5680 = vmatprep.mubr.msk.f32.mxu1 %vm2476_vm11, %v2417_v7  ;;  %v9925_v7 = vld [vmem:[#allocation10_spill] sm:$0xff] }
 0x212   : > { %v2277_v55 = vsel %vm2264_vm9, %v2185_v33, %v2187_v48  ;;  %v2374_v43 = vsel %vm2361_vm10, %v2187_v48, 0.0  ;;  %2693 = vmatmul.mubr.f32.gmra.mxu1 %v2416_v56  ;;  %v9926_v48 = vld [vmem:[#allocation9_spill] sm:$0xff] }
 0x213   : > { %v2419_v18 = vmax.f32 %v8151_v29, %v2374_v43  ;;  %v2189_v14 = vpop.permute.xlu1 %2188  ;;  %v2418_v28 = vmax.f32 %v8145_v17, %v2277_v55 }
 0x215   : > { %v2191_v59 = vpop.permute.xlu0 %2190  ;;  %5681 = vmatprep.mubr.msk.f32.mxu1 %vm2476_vm11, %v2419_v18  ;;  %v9927_v18 = vld [vmem:[#allocation12_spill] sm:$0xff] }
 0x216   : > { %v2278_v10 = vsel %vm2264_vm9, %v2189_v14, %v2191_v59  ;;  %v2375_v6 = vsel %vm2361_vm10, %v2191_v59, 0.0  ;;  %2698 = vmatmul.mubr.f32.gmra.mxu1 %v2418_v28  ;;  %v9928_v59 = vld [vmem:[#allocation11_spill] sm:$0xff] }
 0x217   : > { %v2421_v42 = vmax.f32 %v8163_v53, %v2375_v6  ;;  %v2193_v39 = vpop.permute.xlu1 %2192  ;;  %v2420_v32 = vmax.f32 %v8157_v36, %v2278_v10 }
 0x219   : > { %v2195_v26 = vpop.permute.xlu0 %2194  ;;  %5682 = vmatprep.mubr.msk.f32.mxu1 %vm2476_vm11, %v2421_v42 }
 0x21a   : > { %v2279_v29 = vsel %vm2264_vm9, %v2193_v39, %v2195_v26  ;;  %v2376_v17 = vsel %vm2361_vm10, %v2195_v26, 0.0  ;;  %2703 = vmatmul.mubr.f32.gmra.mxu1 %v2420_v32  ;;  %v9929_v32 = vld [vmem:[#allocation14_spill] sm:$0xff] }
 0x21b   : > { %v2423_v57 = vmax.f32 %v8175_v12, %v2376_v17  ;;  %v2197_v50 = vpop.permute.xlu1 %2196  ;;  %v2422_v44 = vmax.f32 %v8169_v63, %v2279_v29  ;;  %v9930_v17 = vld [vmem:[#allocation13_spill] sm:$0xff] }
 0x21d   : > { %v2199_v34 = vpop.permute.xlu0 %2198  ;;  %5683 = vmatprep.mubr.msk.f32.mxu1 %vm2476_vm11, %v2423_v57 }
 0x21e   : > { %v2280_v53 = vsel %vm2264_vm9, %v2197_v50, %v2199_v34  ;;  %v2377_v36 = vsel %vm2361_vm10, %v2199_v34, 0.0  ;;  %2708 = vmatmul.mubr.f32.gmra.mxu1 %v2422_v44 }
 0x21f   : > { %v2425_v51 = vmax.f32 %v8187_v35, %v2377_v36  ;;  %v2201_v40 = vpop.permute.xlu1 %2200  ;;  %v2424_v38 = vmax.f32 %v8181_v22, %v2280_v53  ;;  %v9931_v53 = vld [vmem:[#allocation16_spill] sm:$0xff] }
 0x221   : > { %v2203_v54 = vpop.permute.xlu0 %2202  ;;  %5684 = vmatprep.mubr.msk.f32.mxu1 %vm2476_vm11, %v2425_v51 }
 0x222   : > { %v2281_v12 = vsel %vm2264_vm9, %v2201_v40, %v2203_v54  ;;  %v2378_v63 = vsel %vm2361_vm10, %v2203_v54, 0.0  ;;  %2713 = vmatmul.mubr.f32.gmra.mxu1 %v2424_v38  ;;  %v9932_v40 = vld [vmem:[#allocation15_spill] sm:$0xff] }
 0x223   : > { %v2427_v60 = vmax.f32 %v8199_v8, %v2378_v63  ;;  %v2205_v41 = vpop.permute.xlu1 %2204  ;;  %v2426_v3 = vmax.f32 %v8193_v46, %v2281_v12 }
 0x225   : > { %v2207_v61 = vpop.permute.xlu0 %2206  ;;  %5685 = vmatprep.mubr.msk.f32.mxu1 %vm2476_vm11, %v2427_v60  ;;  %v9933_v60 = vld [vmem:[#allocation18_spill] sm:$0xff] }
 0x226   : > { %v2282_v35 = vsel %vm2264_vm9, %v2205_v41, %v2207_v61  ;;  %v2379_v22 = vsel %vm2361_vm10, %v2207_v61, 0.0  ;;  %2718 = vmatmul.mubr.f32.gmra.mxu1 %v2426_v3  ;;  %v9934_v61 = vld [vmem:[#allocation17_spill] sm:$0xff] }
 0x227   : > { %v2429_v0 = vmax.f32 %v8211_v24, %v2379_v22  ;;  %v2209_v52 = vpop.permute.xlu1 %2208  ;;  %v2428_v23 = vmax.f32 %v8205_v19, %v2282_v35 }
 0x229   : > { %v2211_v37 = vpop.permute.xlu0 %2210  ;;  %5686 = vmatprep.mubr.msk.f32.mxu1 %vm2476_vm11, %v2429_v0 }
 0x22a   : > { %v2283_v8 = vsel %vm2264_vm9, %v2209_v52, %v2211_v37  ;;  %v2380_v46 = vsel %vm2361_vm10, %v2211_v37, 0.0  ;;  %2723 = vmatmul.mubr.f32.gmra.mxu1 %v2428_v23  ;;  %v9935_v23 = vld [vmem:[#allocation20_spill] sm:$0xff] }
 0x22b   : > { %v2431_v16 = vmax.f32 %v8223_v62, %v2380_v46  ;;  %v2213_v47 = vpop.permute.xlu1 %2212  ;;  %v2430_v20 = vmax.f32 %v8217_v27, %v2283_v8  ;;  %v9936_v46 = vld [vmem:[#allocation19_spill] sm:$0xff] }
 0x22d   : > { %v2215_v49 = vpop.permute.xlu0 %2214  ;;  %5687 = vmatprep.mubr.msk.f32.mxu1 %vm2476_vm11, %v2431_v16 }
 0x22e   : > { %v2284_v24 = vsel %vm2264_vm9, %v2213_v47, %v2215_v49  ;;  %v2381_v19 = vsel %vm2361_vm10, %v2215_v49, 0.0  ;;  %2728 = vmatmul.mubr.f32.gmra.mxu1 %v2430_v20 }
 0x22f   : > { %v2433_v9 = vmax.f32 %v8235_v13, %v2381_v19  ;;  %v2217_v1 = vpop.permute.xlu1 %2216  ;;  %v2432_v11 = vmax.f32 %v8229_v5, %v2284_v24  ;;  %v9937_v24 = vld [vmem:[#allocation22_spill] sm:$0xff] }
 0x231   : > { %v2219_v25 = vpop.permute.xlu0 %2218  ;;  %5688 = vmatprep.mubr.msk.f32.mxu1 %vm2476_vm11, %v2433_v9 }
 0x232   : > { %v2285_v62 = vsel %vm2264_vm9, %v2217_v1, %v2219_v25  ;;  %v2382_v27 = vsel %vm2361_vm10, %v2219_v25, 0.0  ;;  %2733 = vmatmul.mubr.f32.gmra.mxu1 %v2432_v11  ;;  %v9938_v1 = vld [vmem:[#allocation21_spill] sm:$0xff] }
 0x233   : > { %v2435_v33 = vmax.f32 %v9925_v7, %v2382_v27  ;;  %v2221_v56 = vpop.permute.xlu1 %2220  ;;  %v2434_v55 = vmax.f32 %v9926_v48, %v2285_v62  ;;  %v9939_v7 = vld [vmem:[#allocation24_spill] sm:$0xff]  ;;  %v9940_v48 = vld [vmem:[#allocation23_spill] sm:$0xff] }
 0x235   : > { %v2223_v43 = vpop.permute.xlu0 %2222  ;;  %5689 = vmatprep.mubr.msk.f32.mxu1 %vm2476_vm11, %v2435_v33 }
 0x236   : > { %v2286_v13 = vsel %vm2264_vm9, %v2221_v56, %v2223_v43  ;;  %v2383_v5 = vsel %vm2361_vm10, %v2223_v43, 0.0  ;;  %2738 = vmatmul.mubr.f32.gmra.mxu1 %v2434_v55 }
 0x237   : > { %v2437_v14 = vmax.f32 %v9927_v18, %v2383_v5  ;;  %v2225_v28 = vpop.permute.xlu1 %2224  ;;  %v2436_v10 = vmax.f32 %v9928_v59, %v2286_v13 }
 0x239   : > { %v2227_v6 = vpop.permute.xlu0 %2226  ;;  %5690 = vmatprep.mubr.msk.f32.mxu1 %vm2476_vm11, %v2437_v14 }
 0x23a   : > { %v2287_v42 = vsel %vm2264_vm9, %v2225_v28, %v2227_v6  ;;  %v2384_v39 = vsel %vm2361_vm10, %v2227_v6, 0.0  ;;  %2743 = vmatmul.mubr.f32.gmra.mxu1 %v2436_v10 }
 0x23b   : > { %v2439_v26 = vmax.f32 %v9929_v32, %v2384_v39  ;;  %v2229_v29 = vpop.permute.xlu1 %2228  ;;  %v2438_v57 = vmax.f32 %v9930_v17, %v2287_v42 }
 0x23d   : > { %v2231_v50 = vpop.permute.xlu0 %2230  ;;  %5691 = vmatprep.mubr.msk.f32.mxu1 %vm2476_vm11, %v2439_v26 }
 0x23e   : > { %v2288_v44 = vsel %vm2264_vm9, %v2229_v29, %v2231_v50  ;;  %v2385_v34 = vsel %vm2361_vm10, %v2231_v50, 0.0  ;;  %2748 = vmatmul.mubr.f32.gmra.mxu1 %v2438_v57 }
 0x23f   : > { %v2441_v36 = vmax.f32 %v9931_v53, %v2385_v34  ;;  %v2233_v51 = vpop.permute.xlu1 %2232  ;;  %v2440_v38 = vmax.f32 %v9932_v40, %v2288_v44  ;;  %v7033_v53 = vld [vmem:[%s9870_s4 + $0x68] sm:$0xff]   ;;  %v7036_v40 = vld [vmem:[%s9870_s4 + $0x20] sm:$0xff]  }
 0x241   : > { %v2235_v54 = vpop.permute.xlu0 %2234  ;;  %5692 = vmatprep.mubr.msk.f32.mxu1 %vm2476_vm11, %v2441_v36  ;;  %v7034_v36 = vld [vmem:[%s9870_s4 + $0x28] sm:$0xff]  }
 0x242   : > { %v2289_v12 = vsel %vm2264_vm9, %v2233_v51, %v2235_v54  ;;  %v2386_v63 = vsel %vm2361_vm10, %v2235_v54, 0.0  ;;  %2753 = vmatmul.mubr.f32.gmra.mxu1 %v2440_v38  ;;  %v7035_v51 = vld [vmem:[%s9870_s4 + $0x60] sm:$0xff]   ;;  %v7037_v38 = vld [vmem:[%s9870_s4 + $0x58] sm:$0xff]   ;;  %v7038_v54 = vld [vmem:[%s9870_s4 + $0xb0] ss:$0 sps:$4 sm:$0xff]  }
 0x243   : > { %v2443_v41 = vmax.f32 %v9933_v60, %v2386_v63  ;;  %v2237_v3 = vpop.permute.xlu1 %2236  ;;  %v2442_v35 = vmax.f32 %v9934_v61, %v2289_v12  ;;  %v7039_v12 = vld [vmem:[%s9870_s4 + $0x18] sm:$0xff]   ;;  %6306 = vmatprep.subr.msk.bf16.mxu1 %vm704_vm3, %v7038_v54  ;;  %v3830_v63 = vsel %vm704_vm3, %v7038_v54, 0  ;;  %v7040_v60 = vld [vmem:[%s9870_s4 + $0x50] sm:$0xff]  }
 0x244   : > { %6157 = vmatpush3.bf16.msra.mxu1 %v3830_v63 }
 0x245   : > { %v2239_v22 = vpop.permute.xlu0 %2238  ;;  %5693 = vmatprep.mubr.msk.f32.mxu1 %vm2476_vm11, %v2443_v41  ;;  %v7041_v41 = vld [vmem:[%s9870_s4 + $0xa8] sm:$0xff]  }
 0x246   : > { %v2290_v0 = vsel %vm2264_vm9, %v2237_v3, %v2239_v22  ;;  %v2387_v52 = vsel %vm2361_vm10, %v2239_v22, 0.0  ;;  %2758 = vmatmul.mubr.f32.gmra.mxu1 %v2442_v35  ;;  %v7042_v3 = vld [vmem:[%s9870_s4 + $0x10] sm:$0xff]   ;;  %6158 = vmatprep.subr.bf16.mxu1 %v7041_v41  ;;  %v7043_v35 = vld [vmem:[%s9870_s4 + $0x48] sm:$0xff]   ;;  %v7044_v22 = vld [vmem:[%s9870_s4 + $0xa0] sm:$0xff]  }
 0x247   : > { %v2445_v37 = vmax.f32 %v9935_v23, %v2387_v52  ;;  %v2241_v8 = vpop.permute.xlu1 %2240  ;;  %v2444_v16 = vmax.f32 %v9936_v46, %v2290_v0  ;;  %v7045_v52 = vld [vmem:[%s9870_s4 + $0x8] sm:$0xff]  }
 0x248   : > { %6159 = vmatpush3.bf16.msra.mxu1 %v7041_v41 }
 0x249   : > { %v2243_v47 = vpop.permute.xlu0 %2242  ;;  %5694 = vmatprep.mubr.msk.f32.mxu1 %vm2476_vm11, %v2445_v37  ;;  %6160 = vmatprep.subr.bf16.mxu1 %v7044_v22  ;;  %v7046_v37 = vld [vmem:[%s9870_s4 + $0x40] sm:$0xff]  }
 0x24a   : > { %v2291_v20 = vsel %vm2264_vm9, %v2241_v8, %v2243_v47  ;;  %v2388_v49 = vsel %vm2361_vm10, %v2243_v47, 0.0  ;;  %2763 = vmatmul.mubr.f32.gmra.mxu1 %v2444_v16  ;;  %v7047_v8 = vld [vmem:[%s9870_s4 + $0x98] sm:$0xff]   ;;  %v7048_v16 = vld [vmem:[%s9870_s4] sm:$0xff]  }
 0x24b   : > { %v2447_v19 = vmax.f32 %v9937_v24, %v2388_v49  ;;  %v2245_v9 = vpop.permute.xlu1 %2244  ;;  %v2446_v11 = vmax.f32 %v9938_v1, %v2291_v20 }
 0x24c   : > { %6161 = vmatpush3.bf16.msra.mxu1 %v7044_v22 }
 0x24d   : > { %v2247_v25 = vpop.permute.xlu0 %2246  ;;  %5695 = vmatprep.mubr.msk.f32.mxu1 %vm2476_vm11, %v2447_v19  ;;  %6162 = vmatprep.subr.bf16.mxu1 %v7047_v8 }
 0x24e   : > { %v2292_v62 = vsel %vm2264_vm9, %v2245_v9, %v2247_v25  ;;  %v2389_v27 = vsel %vm2361_vm10, %v2247_v25, 0.0  ;;  %2768 = vmatmul.mubr.f32.gmra.mxu1 %v2446_v11 }
 0x24f   : > { %v2449_v33 = vmax.f32 %v9939_v7, %v2389_v27  ;;  %v2249_v56 = vpop.permute.xlu1 %2248  ;;  %v2448_v55 = vmax.f32 %v9940_v48, %v2292_v62  ;;  %v7049_v48 = vld [vmem:[%s9870_s4 + $0x90] sm:$0xff]  }
 0x250   : > { %6163 = vmatpush3.bf16.msra.mxu1 %v7047_v8 }
 0x251   : > { %v2251_v43 = vpop.permute.xlu0 %2250  ;;  %5696 = vmatprep.mubr.msk.f32.mxu1 %vm2476_vm11, %v2449_v33  ;;  %6164 = vmatprep.subr.bf16.mxu1 %v7049_v48 }
 0x252   : > { %v2293_v13 = vsel %vm2264_vm9, %v2249_v56, %v2251_v43  ;;  %v2390_v5 = vsel %vm2361_vm10, %v2251_v43, 0.0  ;;  %2773 = vmatmul.mubr.f32.gmra.mxu1 %v2448_v55 }
 0x253   : > { %v2451_v18 = vmax.f32 %v8343_v2, %v2390_v5  ;;  %v2253_v14 = vpop.permute.xlu1 %2252  ;;  %v2450_v28 = vmax.f32 %v8337_v21, %v2293_v13 }
 0x254   : > { %6165 = vmatpush3.bf16.msra.mxu1 %v7049_v48 }
 0x255   : > { %v2255_v59 = vpop.permute.xlu0 %2254  ;;  %5697 = vmatprep.mubr.msk.f32.mxu1 %vm2476_vm11, %v2451_v18 }
 0x256   : > { %v2294_v10 = vsel %vm2264_vm9, %v2253_v14, %v2255_v59  ;;  %v2391_v6 = vsel %vm2361_vm10, %v2255_v59, 0.0  ;;  %2778 = vmatmul.mubr.f32.gmra.mxu1 %v2450_v28 }
 0x257   : > { %v2453_v42 = vmax.f32 %v8354_v15, %v2391_v6  ;;  %v2257_v39 = vpop.permute.xlu1 %2256  ;;  %v2452_v32 = vmax.f32 %v8349_v45, %v2294_v10  ;;  %v7050_v6 = vld [vmem:[%s9870_s4 + $0x88] sm:$0xff]  }
 0x258   : > { %6166 = vmatprep.subr.bf16.mxu1 %v7050_v6 }
 0x259   : > { %v2259_v26 = vpop.permute.xlu0 %2258  ;;  %5698 = vmatprep.mubr.msk.f32.mxu1 %vm2476_vm11, %v2453_v42  ;;  %6167 = vmatpush3.bf16.msra.mxu1 %v7050_v6 }
 0x25a   : > { %v2295_v2 = vsel %vm2264_vm9, %v2257_v39, %v2259_v26  ;;  %v2392_v21 = vsel %vm2361_vm10, %v2259_v26, 0.0  ;;  %2783 = vmatmul.mubr.f32.gmra.mxu1 %v2452_v32 }
 0x25b   : > { %v2455_v29 = vmax.f32 %v8369_v4, %v2392_v21  ;;  %v2454_v17 = vmax.f32 %v8361_v58, %v2295_v2  ;;  %v2261_v57 = vpop.permute.xlu1 %2260  ;;  %v7029_v58 = vld [vmem:[%s9870_s4 + $0x78] sm:$0xff]  }
 0x25c   : > { %v7030_v4 = vld [vmem:[%s9870_s4 + $0x38] sm:$0xff]   ;;  %5823 = vmatprep.subr.bf16.mxu0 %v7029_v58 }
 0x25d   : > { %v2263_v50 = vpop.permute.xlu0 %2262  ;;  %5699 = vmatprep.mubr.msk.f32.mxu1 %vm2476_vm11, %v2455_v29  ;;  %5824 = vmatpush3.bf16.msra.mxu0 %v7030_v4 }
 0x25e   : > { %v2296_v15 = vsel %vm2264_vm9, %v2261_v57, %v2263_v50  ;;  %v2393_v45 = vsel %vm2361_vm10, %v2263_v50, 0.0  ;;  %2788 = vmatmul.mubr.f32.gmra.mxu1 %v2454_v17 }
 0x25f   : > { %v2457_v44 = vmax.f32 %v8381_v30, %v2393_v45  ;;  %v2456_v34 = vmax.f32 %v8375_v31, %v2296_v15  ;;  %v7031_v30 = vld [vmem:[%s9870_s4 + $0x70] sm:$0xff]   ;;  %v7051_v45 = vld [vmem:[%s9870_s4 + $0x80] sm:$0xff]  }
 0x260   : > { %v7032_v31 = vld [vmem:[%s9870_s4 + $0x30] sm:$0xff]   ;;  %5825 = vmatprep.subr.bf16.mxu0 %v7031_v30  ;;  %6168 = vmatprep.subr.bf16.mxu1 %v7051_v45 }
 0x261   : > { %5700 = vmatprep.mubr.msk.f32.mxu1 %vm2476_vm11, %v2457_v44  ;;  %5826 = vmatpush3.bf16.msra.mxu0 %v7032_v31 }
 0x262   : > { %2793 = vmatmul.mubr.f32.gmra.mxu1 %v2456_v34  ;;  %5827 = vmatprep.subr.bf16.mxu0 %v7033_v53 }
 0x263   : > { %6169 = vmatpush3.bf16.msra.mxu1 %v7051_v45 }
 0x265   : > { %5828 = vmatpush3.bf16.msra.mxu0 %v7034_v36 }
 0x266   : > { %5829 = vmatprep.subr.bf16.mxu0 %v7035_v51 }
 0x269   : > { %5830 = vmatpush3.bf16.msra.mxu0 %v7036_v40 }
 0x26a   : > { %5831 = vmatprep.subr.bf16.mxu0 %v7037_v38 }
 0x26d   : > { %5832 = vmatpush3.bf16.msra.mxu0 %v7039_v12 }
 0x26e   : > { %5833 = vmatprep.subr.bf16.mxu0 %v7040_v60 }
 0x271   : > { %5834 = vmatpush3.bf16.msra.mxu0 %v7042_v3 }
 0x272   : > { %5835 = vmatprep.subr.bf16.mxu0 %v7043_v35 }
 0x275   : > { %5836 = vmatpush3.bf16.msra.mxu0 %v7045_v52 }
 0x276   : > { %5837 = vmatprep.subr.bf16.mxu0 %v7046_v37 }
 0x279   : > { %5838 = vmatpush3.bf16.msra.mxu0 %v7048_v16 }
 0x2a6   : > { %v8582_v61 = vpop.f32.mrf.mxu1 }
 0x2a7   : > { %v2830_v49 = vrot.slane %v8582_v61, 2  ;;  %v2895_v19 = vrot.slane %v8582_v61, 4  ;;  %v2961_v5 = vrot.slane %v8582_v61, 6 }
 0x2a8   : > { %v2641_v0 = vpop.f32.mrf.mxu1 }
 0x2aa   : > { %v8593_v23 = vpop.f32.mrf.mxu1 }
 0x2ab   : > { %v2831_v47 = vrot.slane %v8593_v23, 2  ;;  %v2896_v20 = vrot.slane %v8593_v23, 4  ;;  %v2962_v25 = vrot.slane %v8593_v23, 6 }
 0x2ac   : > { %v2646_v46 = vpop.f32.mrf.mxu1 }
 0x2ad   : > { %v2897_v27 = vsel %vm704_vm3, %v2895_v19, %v2896_v20  ;;  %v2832_v33 = vsel %vm572_vm2, %v2830_v49, %v2831_v47  ;;  %v2963_v10 = vsel %vm2960_vm12, %v2961_v5, %v2962_v25 }
 0x2ae   : > { %v8607_v24 = vpop.f32.mrf.mxu1 }
 0x2af   : > { %v2833_v9 = vrot.slane %v8607_v24, 2  ;;  %v2898_v1 = vrot.slane %v8607_v24, 4  ;;  %v2964_v11 = vrot.slane %v8607_v24, 6  ;;  %v6712_v0 = vpack.i.bf16 %v8607_v24, %v8593_v23 }
 0x2b0   : > { %v2651_v62 = vpop.f32.mrf.mxu1 }
 0x2b1   : > { %v2899_v7 = vsel %vm704_vm3, %v2896_v20, %v2898_v1  ;;  %v2834_v56 = vsel %vm572_vm2, %v2831_v47, %v2833_v9  ;;  %v2965_v18 = vsel %vm2960_vm12, %v2962_v25, %v2964_v11 }
 0x2b2   : > { %v8621_v55 = vpop.f32.mrf.mxu1  ;;  %v6687_v43 = vpack.i.bf16 %v2899_v7, %v2897_v27  ;;  %v6682_v13 = vpack.i.bf16 %v2834_v56, %v2832_v33  ;;  %v6692_v39 = vpack.i.bf16 %v2965_v18, %v2963_v10 }
 0x2b3   : > { %v2835_v28 = vrot.slane %v8621_v55, 2  ;;  %v2900_v59 = vrot.slane %v8621_v55, 4  ;;  %v2966_v21 = vrot.slane %v8621_v55, 6 }
 0x2b4   : > { %6688 = vrot.lane.b32.xlu1 %v6687_v43, %s7157_s14  ;;  %6683 = vrot.lane.b32.xlu0 %v6682_v13, %s7158_s17  ;;  %v2656_v14 = vpop.f32.mrf.mxu1 }
 0x2b5   : > { %v2901_v17 = vsel %vm704_vm3, %v2898_v1, %v2900_v59  ;;  %v2836_v50 = vsel %vm572_vm2, %v2833_v9, %v2835_v28  ;;  %v2967_v53 = vsel %vm2960_vm12, %v2964_v11, %v2966_v21 }
 0x2b6   : > { %v8633_v42 = vpop.f32.mrf.mxu1 }
 0x2b7   : > { %v2837_v32 = vrot.slane %v8633_v42, 2  ;;  %v2902_v26 = vrot.slane %v8633_v42, 4  ;;  %v2968_v2 = vrot.slane %v8633_v42, 6  ;;  %v6717_v51 = vpack.i.bf16 %v8633_v42, %v8621_v55 }
 0x2b8   : > { %6693 = vrot.lane.b32.xlu0 %v6692_v39, %s7159_s15  ;;  %v2661_v29 = vpop.f32.mrf.mxu1 }
 0x2b9   : > { %v2903_v57 = vsel %vm704_vm3, %v2900_v59, %v2902_v26  ;;  %v2838_v15 = vsel %vm572_vm2, %v2835_v28, %v2837_v32  ;;  %v2969_v4 = vsel %vm2960_vm12, %v2966_v21, %v2968_v2 }
 0x2ba   : > { %v8647_v44 = vpop.f32.mrf.mxu1  ;;  %v6702_v34 = vpack.i.bf16 %v2903_v57, %v2901_v17  ;;  %v6697_v58 = vpack.i.bf16 %v2838_v15, %v2836_v50  ;;  %v6707_v40 = vpack.i.bf16 %v2969_v4, %v2967_v53 }
 0x2bb   : > { %v2839_v31 = vrot.slane %v8647_v44, 2  ;;  %v2904_v60 = vrot.slane %v8647_v44, 4  ;;  %v2970_v41 = vrot.slane %v8647_v44, 6 }
 0x2bc   : > { %6703 = vrot.lane.b32.xlu0 %v6702_v34, %s7157_s14  ;;  %6698 = vrot.lane.b32.xlu1 %v6697_v58, %s7158_s17  ;;  %v2666_v30 = vpop.f32.mrf.mxu1 }
 0x2bd   : > { %v2840_v3 = vsel %vm572_vm2, %v2837_v32, %v2839_v31  ;;  %v2905_v20 = vsel %vm704_vm3, %v2902_v26, %v2904_v60  ;;  %v2971_v49 = vsel %vm2960_vm12, %v2968_v2, %v2970_v41 }
 0x2be   : > { %v8654_v36 = vpop.f32.mrf.mxu1 }
 0x2bf   : > { %v2841_v38 = vrot.slane %v8654_v36, 2  ;;  %v2906_v54 = vrot.slane %v8654_v36, 4  ;;  %v2972_v12 = vrot.slane %v8654_v36, 6  ;;  %v6747_v39 = vpack.i.bf16 %v8654_v36, %v8647_v44 }
 0x2c0   : > { %6718 = vrot.lane.b32.xlu0 %v6717_v51, %s7160_s24  ;;  %6708 = vrot.lane.b32.xlu1 %v6707_v40, %s7159_s15  ;;  %v2671_v63 = vpop.f32.mrf.mxu1 }
 0x2c1   : > { %v2842_v35 = vsel %vm572_vm2, %v2839_v31, %v2841_v38  ;;  %v2907_v37 = vsel %vm704_vm3, %v2904_v60, %v2906_v54  ;;  %v2973_v8 = vsel %vm2960_vm12, %v2970_v41, %v2972_v12 }
 0x2c2   : > { %v8667_v22 = vpop.f32.mrf.mxu1  ;;  %v6722_v52 = vpack.i.bf16 %v2842_v35, %v2840_v3  ;;  %v6727_v9 = vpack.i.bf16 %v2907_v37, %v2905_v20  ;;  %v6732_v1 = vpack.i.bf16 %v2973_v8, %v2971_v49 }
 0x2c3   : > { %v2843_v16 = vrot.slane %v8667_v22, 2  ;;  %v2908_v47 = vrot.slane %v8667_v22, 4  ;;  %v2974_v27 = vrot.slane %v8667_v22, 6 }
 0x2c4   : > { %6713 = vrot.lane.b32.xlu1 %v6712_v0, %s7160_s24  ;;  %6723 = vrot.lane.b32.xlu0 %v6722_v52, %s7158_s17  ;;  %v2676_v46 = vpop.f32.mrf.mxu1 }
 0x2c5   : > { %v2909_v33 = vsel %vm704_vm3, %v2906_v54, %v2908_v47  ;;  %v2844_v48 = vsel %vm572_vm2, %v2841_v38, %v2843_v16  ;;  %v2975_v10 = vsel %vm2960_vm12, %v2972_v12, %v2974_v27 }
 0x2c6   : > { %v8679_v19 = vpop.f32.mrf.mxu1 }
 0x2c7   : > { %v2845_v11 = vrot.slane %v8679_v19, 2  ;;  %v2910_v25 = vrot.slane %v8679_v19, 4  ;;  %v2976_v62 = vrot.slane %v8679_v19, 6  ;;  %v6757_v34 = vpack.i.bf16 %v8679_v19, %v8667_v22 }
 0x2c8   : > { %6728 = vrot.lane.b32.xlu1 %v6727_v9, %s7157_s14  ;;  %6733 = vrot.lane.b32.xlu0 %v6732_v1, %s7159_s15  ;;  %v2681_v7 = vpop.f32.mrf.mxu1 }
 0x2c9   : > { %v2911_v56 = vsel %vm704_vm3, %v2908_v47, %v2910_v25  ;;  %v2846_v43 = vsel %vm572_vm2, %v2843_v16, %v2845_v11  ;;  %v2977_v14 = vsel %vm2960_vm12, %v2974_v27, %v2976_v62 }
 0x2ca   : > { %v8691_v13 = vpop.f32.mrf.mxu1  ;;  %v6742_v5 = vpack.i.bf16 %v2911_v56, %v2909_v33  ;;  %v6737_v18 = vpack.i.bf16 %v2846_v43, %v2844_v48  ;;  %v6752_v32 = vpack.i.bf16 %v2977_v14, %v2975_v10 }
 0x2cb   : > { %v2847_v59 = vrot.slane %v8691_v13, 2  ;;  %v2912_v17 = vrot.slane %v8691_v13, 4  ;;  %v2978_v57 = vrot.slane %v8691_v13, 6 }
 0x2cc   : > { %6743 = vrot.lane.b32.xlu0 %v6742_v5, %s7157_s14  ;;  %6738 = vrot.lane.b32.xlu1 %v6737_v18, %s7158_s17  ;;  %v2686_v28 = vpop.f32.mrf.mxu1 }
 0x2cd   : > { %v2848_v50 = vsel %vm572_vm2, %v2845_v11, %v2847_v59  ;;  %v2913_v40 = vsel %vm704_vm3, %v2910_v25, %v2912_v17  ;;  %v2979_v38 = vsel %vm2960_vm12, %v2976_v62, %v2978_v57 }
 0x2ce   : > { %v8698_v6 = vpop.f32.mrf.mxu1 }
 0x2cf   : > { %v2849_v26 = vrot.slane %v8698_v6, 2  ;;  %v2914_v2 = vrot.slane %v8698_v6, 4  ;;  %v2980_v21 = vrot.slane %v8698_v6, 6 }
 0x2d0   : > { %6748 = vrot.lane.b32.xlu0 %v6747_v39, %s7160_s24  ;;  %6753 = vrot.lane.b32.xlu1 %v6752_v32, %s7159_s15  ;;  %v2691_v29 = vpop.f32.mrf.mxu1 }
 0x2d1   : > { %v2850_v15 = vsel %vm572_vm2, %v2847_v59, %v2849_v26  ;;  %v2915_v4 = vsel %vm704_vm3, %v2912_v17, %v2914_v2  ;;  %v2981_v30 = vsel %vm2960_vm12, %v2978_v57, %v2980_v21  ;;  %v6792_v59 = vpack.i.bf16 %v8698_v6, %v8691_v13 }
 0x2d2   : > { %v8711_v45 = vpop.f32.mrf.mxu1  ;;  %v6762_v58 = vpack.i.bf16 %v2850_v15, %v2848_v50  ;;  %v6767_v12 = vpack.i.bf16 %v2915_v4, %v2913_v40  ;;  %v6772_v63 = vpack.i.bf16 %v2981_v30, %v2979_v38 }
 0x2d3   : > { %v2851_v53 = vrot.slane %v8711_v45, 2  ;;  %v2916_v51 = vrot.slane %v8711_v45, 4  ;;  %v2982_v35 = vrot.slane %v8711_v45, 6 }
 0x2d4   : > { %6758 = vrot.lane.b32.xlu1 %v6757_v34, %s7160_s24  ;;  %6763 = vrot.lane.b32.xlu0 %v6762_v58, %s7158_s17  ;;  %v2696_v31 = vpop.f32.mrf.mxu1 }
 0x2d5   : > { %v2917_v52 = vsel %vm704_vm3, %v2914_v2, %v2916_v51  ;;  %v2852_v8 = vsel %vm572_vm2, %v2849_v26, %v2851_v53  ;;  %v2983_v11 = vsel %vm2960_vm12, %v2980_v21, %v2982_v35 }
 0x2d6   : > { %v8723_v54 = vpop.f32.mrf.mxu1 }
 0x2d7   : > { %v2853_v60 = vrot.slane %v8723_v54, 2  ;;  %v2918_v41 = vrot.slane %v8723_v54, 4  ;;  %v2984_v3 = vrot.slane %v8723_v54, 6  ;;  %v6797_v62 = vpack.i.bf16 %v8723_v54, %v8711_v45 }
 0x2d8   : > { %6768 = vrot.lane.b32.xlu1 %v6767_v12, %s7157_s14  ;;  %6773 = vrot.lane.b32.xlu0 %v6772_v63, %s7159_s15  ;;  %v2701_v0 = vpop.f32.mrf.mxu1 }
 0x2d9   : > { %v2919_v37 = vsel %vm704_vm3, %v2916_v51, %v2918_v41  ;;  %v2854_v46 = vsel %vm572_vm2, %v2851_v53, %v2853_v60  ;;  %v2985_v49 = vsel %vm2960_vm12, %v2982_v35, %v2984_v3 }
 0x2da   : > { %v8735_v16 = vpop.f32.mrf.mxu1  ;;  %v6782_v47 = vpack.i.bf16 %v2919_v37, %v2917_v52  ;;  %v6777_v20 = vpack.i.bf16 %v2854_v46, %v2852_v8  ;;  %v6787_v27 = vpack.i.bf16 %v2985_v49, %v2983_v11 }
 0x2db   : > { %v2855_v1 = vrot.slane %v8735_v16, 2  ;;  %v2920_v43 = vrot.slane %v8735_v16, 4  ;;  %v2986_v5 = vrot.slane %v8735_v16, 6 }
 0x2dc   : > { %6783 = vrot.lane.b32.xlu0 %v6782_v47, %s7157_s14  ;;  %6778 = vrot.lane.b32.xlu1 %v6777_v20, %s7158_s17  ;;  %v2706_v9 = vpop.f32.mrf.mxu1 }
 0x2dd   : > { %v2856_v18 = vsel %vm572_vm2, %v2853_v60, %v2855_v1  ;;  %v2921_v29 = vsel %vm704_vm3, %v2918_v41, %v2920_v43  ;;  %v2987_v17 = vsel %vm2960_vm12, %v2984_v3, %v2986_v5 }
 0x2de   : > { %v8742_v25 = vpop.f32.mrf.mxu1 }
 0x2df   : > { %v2857_v7 = vrot.slane %v8742_v25, 2  ;;  %v2922_v33 = vrot.slane %v8742_v25, 4  ;;  %v2988_v56 = vrot.slane %v8742_v25, 6  ;;  %v6827_v37 = vpack.i.bf16 %v8742_v25, %v8735_v16 }
 0x2e0   : > { %6798 = vrot.lane.b32.xlu0 %v6797_v62, %s7160_s24  ;;  %6788 = vrot.lane.b32.xlu1 %v6787_v27, %s7159_s15  ;;  %v2711_v48 = vpop.f32.mrf.mxu1 }
 0x2e1   : > { %v2858_v14 = vsel %vm572_vm2, %v2855_v1, %v2857_v7  ;;  %v2923_v39 = vsel %vm704_vm3, %v2920_v43, %v2922_v33  ;;  %v2989_v32 = vsel %vm2960_vm12, %v2986_v5, %v2988_v56 }
 0x2e2   : > { %v8755_v28 = vpop.f32.mrf.mxu1  ;;  %v6802_v10 = vpack.i.bf16 %v2858_v14, %v2856_v18  ;;  %v6807_v50 = vpack.i.bf16 %v2923_v39, %v2921_v29  ;;  %v6812_v15 = vpack.i.bf16 %v2989_v32, %v2987_v17 }
 0x2e3   : > { %v2859_v2 = vrot.slane %v8755_v28, 2  ;;  %v2924_v21 = vrot.slane %v8755_v28, 4  ;;  %v2990_v30 = vrot.slane %v8755_v28, 6 }
 0x2e4   : > { %6793 = vrot.lane.b32.xlu1 %v6792_v59, %s7160_s24  ;;  %6803 = vrot.lane.b32.xlu0 %v6802_v10, %s7158_s17  ;;  %v2716_v26 = vpop.f32.mrf.mxu1 }
 0x2e5   : > { %v2925_v53 = vsel %vm704_vm3, %v2922_v33, %v2924_v21  ;;  %v2860_v40 = vsel %vm572_vm2, %v2857_v7, %v2859_v2  ;;  %v2991_v0 = vsel %vm2960_vm12, %v2988_v56, %v2990_v30 }
 0x2e6   : > { %v8767_v57 = vpop.f32.mrf.mxu1 }
 0x2e7   : > { %v2861_v34 = vrot.slane %v8767_v57, 2  ;;  %v2926_v58 = vrot.slane %v8767_v57, 4  ;;  %v2992_v4 = vrot.slane %v8767_v57, 6  ;;  %v6837_v7 = vpack.i.bf16 %v8767_v57, %v8755_v28 }
 0x2e8   : > { %6808 = vrot.lane.b32.xlu1 %v6807_v50, %s7157_s14  ;;  %6813 = vrot.lane.b32.xlu0 %v6812_v15, %s7159_s15  ;;  %v2721_v31 = vpop.f32.mrf.mxu1 }
 0x2e9   : > { %v2927_v51 = vsel %vm704_vm3, %v2924_v21, %v2926_v58  ;;  %v2862_v38 = vsel %vm572_vm2, %v2859_v2, %v2861_v34  ;;  %v2993_v41 = vsel %vm2960_vm12, %v2990_v30, %v2992_v4 }
 0x2ea   : > { %v8779_v12 = vpop.f32.mrf.mxu1  ;;  %v6822_v63 = vpack.i.bf16 %v2927_v51, %v2925_v53  ;;  %v6817_v60 = vpack.i.bf16 %v2862_v38, %v2860_v40  ;;  %v6832_v8 = vpack.i.bf16 %v2993_v41, %v2991_v0 }
 0x2eb   : > { %v2863_v35 = vrot.slane %v8779_v12, 2  ;;  %v2928_v9 = vrot.slane %v8779_v12, 4  ;;  %v2994_v1 = vrot.slane %v8779_v12, 6 }
 0x2ec   : > { %6823 = vrot.lane.b32.xlu0 %v6822_v63, %s7157_s14  ;;  %6818 = vrot.lane.b32.xlu1 %v6817_v60, %s7158_s17  ;;  %v2726_v3 = vpop.f32.mrf.mxu1 }
 0x2ed   : > { %v2864_v11 = vsel %vm572_vm2, %v2861_v34, %v2863_v35  ;;  %v2929_v14 = vsel %vm704_vm3, %v2926_v58, %v2928_v9  ;;  %v2995_v59 = vsel %vm2960_vm12, %v2992_v4, %v2994_v1 }
 0x2ee   : > { %v8786_v52 = vpop.f32.mrf.mxu1 }
 0x2ef   : > { %v2865_v46 = vrot.slane %v8786_v52, 2  ;;  %v2930_v47 = vrot.slane %v8786_v52, 4  ;;  %v2996_v20 = vrot.slane %v8786_v52, 6 }
 0x2f0   : > { %6828 = vrot.lane.b32.xlu0 %v6827_v37, %s7160_s24  ;;  %6833 = vrot.lane.b32.xlu1 %v6832_v8, %s7159_s15  ;;  %v2731_v49 = vpop.f32.mrf.mxu1 }
 0x2f1   : > { %v2866_v62 = vsel %vm572_vm2, %v2863_v35, %v2865_v46  ;;  %v2931_v56 = vsel %vm704_vm3, %v2928_v9, %v2930_v47  ;;  %v2997_v48 = vsel %vm2960_vm12, %v2994_v1, %v2996_v20  ;;  %v6872_v9 = vpack.i.bf16 %v8786_v52, %v8779_v12 }
 0x2f2   : > { %v8799_v27 = vpop.f32.mrf.mxu1  ;;  %v6842_v33 = vpack.i.bf16 %v2866_v62, %v2864_v11  ;;  %v6847_v39 = vpack.i.bf16 %v2931_v56, %v2929_v14  ;;  %v6852_v32 = vpack.i.bf16 %v2997_v48, %v2995_v59 }
 0x2f3   : > { %v2867_v5 = vrot.slane %v8799_v27, 2  ;;  %v2932_v18 = vrot.slane %v8799_v27, 4  ;;  %v2998_v29 = vrot.slane %v8799_v27, 6 }
 0x2f4   : > { %6838 = vrot.lane.b32.xlu1 %v6837_v7, %s7160_s24  ;;  %6843 = vrot.lane.b32.xlu0 %v6842_v33, %s7158_s17  ;;  %v2736_v43 = vpop.f32.mrf.mxu1 }
 0x2f5   : > { %v2933_v50 = vsel %vm704_vm3, %v2930_v47, %v2932_v18  ;;  %v2868_v34 = vsel %vm572_vm2, %v2865_v46, %v2867_v5  ;;  %v2999_v38 = vsel %vm2960_vm12, %v2996_v20, %v2998_v29 }
 0x2f6   : > { %v8811_v10 = vpop.f32.mrf.mxu1 }
 0x2f7   : > { %v2869_v26 = vrot.slane %v8811_v10, 2  ;;  %v2934_v2 = vrot.slane %v8811_v10, 4  ;;  %v3000_v21 = vrot.slane %v8811_v10, 6  ;;  %v6877_v60 = vpack.i.bf16 %v8811_v10, %v8799_v27 }
 0x2f8   : > { %6848 = vrot.lane.b32.xlu1 %v6847_v39, %s7157_s14  ;;  %6853 = vrot.lane.b32.xlu0 %v6852_v32, %s7159_s15  ;;  %v2741_v17 = vpop.f32.mrf.mxu1 }
 0x2f9   : > { %v2935_v15 = vsel %vm704_vm3, %v2932_v18, %v2934_v2  ;;  %v2870_v58 = vsel %vm572_vm2, %v2867_v5, %v2869_v26  ;;  %v3001_v53 = vsel %vm2960_vm12, %v2998_v29, %v3000_v21 }
 0x2fa   : > { %v8823_v4 = vpop.f32.mrf.mxu1  ;;  %v6862_v30 = vpack.i.bf16 %v2935_v15, %v2933_v50  ;;  %v6857_v31 = vpack.i.bf16 %v2870_v58, %v2868_v34  ;;  %v6867_v41 = vpack.i.bf16 %v3001_v53, %v2999_v38 }
 0x2fb   : > { %v2871_v40 = vrot.slane %v8823_v4, 2  ;;  %v2936_v8 = vrot.slane %v8823_v4, 4  ;;  %v3002_v46 = vrot.slane %v8823_v4, 6 }
 0x2fc   : > { %6863 = vrot.lane.b32.xlu0 %v6862_v30, %s7157_s14  ;;  %6858 = vrot.lane.b32.xlu1 %v6857_v31, %s7158_s17  ;;  %v2746_v51 = vpop.f32.mrf.mxu1 }
 0x2fd   : > { %v2872_v47 = vsel %vm572_vm2, %v2869_v26, %v2871_v40  ;;  %v2937_v48 = vsel %vm704_vm3, %v2934_v2, %v2936_v8  ;;  %v3003_v43 = vsel %vm2960_vm12, %v3000_v21, %v3002_v46 }
 0x2fe   : > { %v8830_v63 = vpop.f32.mrf.mxu1 }
 0x2ff   : > { %v2873_v3 = vrot.slane %v8830_v63, 2  ;;  %v2938_v35 = vrot.slane %v8830_v63, 4  ;;  %v3004_v0 = vrot.slane %v8830_v63, 6  ;;  %v6907_v38 = vpack.i.bf16 %v8830_v63, %v8823_v4 }
 0x300   : > { %6878 = vrot.lane.b32.xlu0 %v6877_v60, %s7160_s24  ;;  %6868 = vrot.lane.b32.xlu1 %v6867_v41, %s7159_s15  ;;  %v2751_v37 = vpop.f32.mrf.mxu1 }
 0x301   : > { %v2874_v20 = vsel %vm572_vm2, %v2871_v40, %v2873_v3  ;;  %v2939_v11 = vsel %vm704_vm3, %v2936_v8, %v2938_v35  ;;  %v3005_v62 = vsel %vm2960_vm12, %v3002_v46, %v3004_v0 }
 0x302   : > { %v8843_v49 = vpop.f32.mrf.mxu1  ;;  %v6882_v1 = vpack.i.bf16 %v2874_v20, %v2872_v47  ;;  %v6887_v18 = vpack.i.bf16 %v2939_v11, %v2937_v48  ;;  %v6892_v14 = vpack.i.bf16 %v3005_v62, %v3003_v43 }
 0x303   : > { %v2875_v33 = vrot.slane %v8843_v49, 2  ;;  %v2940_v56 = vrot.slane %v8843_v49, 4  ;;  %v3006_v26 = vrot.slane %v8843_v49, 6 }
 0x304   : > { %6873 = vrot.lane.b32.xlu1 %v6872_v9, %s7160_s24  ;;  %6883 = vrot.lane.b32.xlu0 %v6882_v1, %s7158_s17  ;;  %v2756_v7 = vpop.f32.mrf.mxu1 }
 0x305   : > { %v2941_v2 = vsel %vm704_vm3, %v2938_v35, %v2940_v56  ;;  %v2876_v17 = vsel %vm572_vm2, %v2873_v3, %v2875_v33  ;;  %v3007_v51 = vsel %vm2960_vm12, %v3004_v0, %v3006_v26 }
 0x306   : > { %v8855_v5 = vpop.f32.mrf.mxu1 }
 0x307   : > { %v2877_v59 = vrot.slane %v8855_v5, 2  ;;  %v2942_v39 = vrot.slane %v8855_v5, 4  ;;  %v3008_v32 = vrot.slane %v8855_v5, 6  ;;  %v6917_v9 = vpack.i.bf16 %v8855_v5, %v8843_v49 }
 0x308   : > { %6888 = vrot.lane.b32.xlu1 %v6887_v18, %s7157_s14  ;;  %6893 = vrot.lane.b32.xlu0 %v6892_v14, %s7159_s15  ;;  %v2761_v29 = vpop.f32.mrf.mxu1 }
 0x309   : > { %v2943_v21 = vsel %vm704_vm3, %v2940_v56, %v2942_v39  ;;  %v2878_v50 = vsel %vm572_vm2, %v2875_v33, %v2877_v59  ;;  %v3009_v30 = vsel %vm2960_vm12, %v3006_v26, %v3008_v32 }
 0x30a   : > { %v8867_v15 = vpop.f32.mrf.mxu1  ;;  %v6902_v34 = vpack.i.bf16 %v2943_v21, %v2941_v2  ;;  %v6897_v58 = vpack.i.bf16 %v2878_v50, %v2876_v17  ;;  %v6912_v60 = vpack.i.bf16 %v3009_v30, %v3007_v51 }
 0x30b   : > { %v2879_v53 = vrot.slane %v8867_v15, 2  ;;  %v2944_v8 = vrot.slane %v8867_v15, 4  ;;  %v3010_v0 = vrot.slane %v8867_v15, 6 }
 0x30c   : > { %6903 = vrot.lane.b32.xlu0 %v6902_v34, %s7157_s14  ;;  %6898 = vrot.lane.b32.xlu1 %v6897_v58, %s7158_s17  ;;  %v2766_v31 = vpop.f32.mrf.mxu1 }
 0x30d   : > { %v2880_v46 = vsel %vm572_vm2, %v2877_v59, %v2879_v53  ;;  %v2945_v48 = vsel %vm704_vm3, %v2942_v39, %v2944_v8  ;;  %v3011_v43 = vsel %vm2960_vm12, %v3008_v32, %v3010_v0 }
 0x30e   : > { %v8874_v40 = vpop.f32.mrf.mxu1 }
 0x30f   : > { %v2881_v41 = vrot.slane %v8874_v40, 2  ;;  %v2946_v3 = vrot.slane %v8874_v40, 4  ;;  %v3012_v35 = vrot.slane %v8874_v40, 6 }
 0x310   : > { %6908 = vrot.lane.b32.xlu0 %v6907_v38, %s7160_s24  ;;  %6913 = vrot.lane.b32.xlu1 %v6912_v60, %s7159_s15  ;;  %v2771_v37 = vpop.f32.mrf.mxu1 }
 0x311   : > { %v2882_v47 = vsel %vm572_vm2, %v2879_v53, %v2881_v41  ;;  %v2947_v11 = vsel %vm704_vm3, %v2944_v8, %v2946_v3  ;;  %v3013_v62 = vsel %vm2960_vm12, %v3010_v0, %v3012_v35 }
 0x312   : > { %v8887_v20 = vpop.f32.mrf.mxu1  ;;  %v6922_v1 = vpack.i.bf16 %v2882_v47, %v2880_v46  ;;  %v6927_v14 = vpack.i.bf16 %v2947_v11, %v2945_v48  ;;  %v6932_v59 = vpack.i.bf16 %v3013_v62, %v3011_v43 }
 0x313   : > { %v2883_v33 = vrot.slane %v8887_v20, 2  ;;  %v2948_v56 = vrot.slane %v8887_v20, 4  ;;  %v3014_v21 = vrot.slane %v8887_v20, 6 }
 0x314   : > { %6918 = vrot.lane.b32.xlu1 %v6917_v9, %s7160_s24  ;;  %6923 = vrot.lane.b32.xlu0 %v6922_v1, %s7158_s17  ;;  %v2776_v7 = vpop.f32.mrf.mxu1 }
 0x315   : > { %v2949_v39 = vsel %vm704_vm3, %v2946_v3, %v2948_v56  ;;  %v2884_v50 = vsel %vm572_vm2, %v2881_v41, %v2883_v33  ;;  %v3015_v60 = vsel %vm2960_vm12, %v3012_v35, %v3014_v21  ;;  %v6952_v7 = vpack.i.bf16 %v8874_v40, %v8867_v15 }
 0x316   : > { %v8899_v18 = vpop.f32.mrf.mxu1 }
 0x317   : > { %v2885_v26 = vrot.slane %v8899_v18, 2  ;;  %v2950_v29 = vrot.slane %v8899_v18, 4  ;;  %v3016_v2 = vrot.slane %v8899_v18, 6  ;;  %v6957_v41 = vpack.i.bf16 %v8899_v18, %v8887_v20 }
 0x318   : > { %6928 = vrot.lane.b32.xlu1 %v6927_v14, %s7157_s14  ;;  %6933 = vrot.lane.b32.xlu0 %v6932_v59, %s7159_s15  ;;  %v2781_v17 = vpop.f32.mrf.mxu1 }
 0x319   : > { %v2951_v32 = vsel %vm704_vm3, %v2948_v56, %v2950_v29  ;;  %v2886_v34 = vsel %vm572_vm2, %v2883_v33, %v2885_v26  ;;  %v3017_v53 = vsel %vm2960_vm12, %v3014_v21, %v3016_v2 }
 0x31a   : > { %v8911_v58 = vpop.f32.mrf.mxu1  ;;  %v6942_v30 = vpack.i.bf16 %v2951_v32, %v2949_v39  ;;  %v6937_v31 = vpack.i.bf16 %v2886_v34, %v2884_v50  ;;  %v6947_v37 = vpack.i.bf16 %v3017_v53, %v3015_v60 }
 0x31b   : > { %v2887_v38 = vrot.slane %v8911_v58, 2  ;;  %v2952_v9 = vrot.slane %v8911_v58, 4  ;;  %v3018_v35 = vrot.slane %v8911_v58, 6 }
 0x31c   : > { %6943 = vrot.lane.b32.xlu0 %v6942_v30, %s7157_s14  ;;  %6938 = vrot.lane.b32.xlu1 %v6937_v31, %s7158_s17  ;;  %v2786_v51 = vpop.f32.mrf.mxu1 }
 0x31d   : > { %v2888_v1 = vsel %vm572_vm2, %v2885_v26, %v2887_v38  ;;  %v2953_v26 = vsel %vm704_vm3, %v2950_v29, %v2952_v9  ;;  %v3019_v21 = vsel %vm2960_vm12, %v3016_v2, %v3018_v35 }
 0x31e   : > { %v8918_v3 = vpop.f32.mrf.mxu1 }
 0x31f   : > { %v2889_v8 = vrot.slane %v8918_v3, 2  ;;  %v2954_v0 = vrot.slane %v8918_v3, 4  ;;  %v3020_v46 = vrot.slane %v8918_v3, 6 }
 0x320   : > { %6958 = vrot.lane.b32.xlu0 %v6957_v41, %s7160_s24  ;;  %6948 = vrot.lane.b32.xlu1 %v6947_v37, %s7159_s15  ;;  %v2791_v47 = vpop.f32.mrf.mxu1 }
 0x321   : > { %v2890_v11 = vsel %vm572_vm2, %v2887_v38, %v2889_v8  ;;  %v2955_v43 = vsel %vm704_vm3, %v2952_v9, %v2954_v0  ;;  %v3021_v14 = vsel %vm2960_vm12, %v3018_v35, %v3020_v46 }
 0x322   : > { %v8931_v62 = vpop.f32.mrf.mxu1  ;;  %v6962_v33 = vpack.i.bf16 %v2890_v11, %v2888_v1  ;;  %v6967_v50 = vpack.i.bf16 %v2955_v43, %v2953_v26  ;;  %v6972_v34 = vpack.i.bf16 %v3021_v14, %v3019_v21  ;;  %v6987_v43 = vpack.i.bf16 %v8918_v3, %v8911_v58 }
 0x323   : > { %v2891_v56 = vrot.slane %v8931_v62, 2  ;;  %v2956_v48 = vrot.slane %v8931_v62, 4  ;;  %v3022_v17 = vrot.slane %v8931_v62, 6 }
 0x324   : > { %6953 = vrot.lane.b32.xlu1 %v6952_v7, %s7160_s24  ;;  %6963 = vrot.lane.b32.xlu0 %v6962_v33, %s7158_s17  ;;  %v2796_v59 = vpop.f32.mrf.mxu1 }
 0x325   : > { %v2957_v30 = vsel %vm704_vm3, %v2954_v0, %v2956_v48  ;;  %v2959_v53 = vsel %vm704_vm3, %v2956_v48, 0.0  ;;  %v2892_v51 = vsel %vm572_vm2, %v2889_v8, %v2891_v56  ;;  %v2894_v38 = vsel %vm572_vm2, %v2891_v56, 0.0 }
 0x326   : > { %v6684_v39 = vpop.permute.xlu0 %6683  ;;  %v6689_v32 = vpop.permute.xlu1 %6688  ;;  %v6982_v37 = vpack.i.bf16 %v2959_v53, %v2957_v30  ;;  %v6977_v47 = vpack.i.bf16 %v2894_v38, %v2892_v51  ;;  %v3023_v0 = vsel %vm2960_vm12, %v3020_v46, %v3022_v17  ;;  %v3025_v1 = vsel %vm2960_vm12, %v3022_v17, 0.0 }
 0x327   : > { %v6686_v31 = vunpack.i.h.bf16 %v6684_v39  ;;  %v6685_v60 = vunpack.i.l.bf16 %v6684_v39  ;;  %v6691_v29 = vunpack.i.h.bf16 %v6689_v32  ;;  %v6690_v41 = vunpack.i.l.bf16 %v6689_v32 }
 0x328   : > { %6968 = vrot.lane.b32.xlu1 %v6967_v50, %s7157_s14  ;;  %6973 = vrot.lane.b32.xlu0 %v6972_v34, %s7159_s15  ;;  %v6992_v14 = vpack.i.bf16 %v3025_v1, %v3023_v0  ;;  %v9941_v34 = vmov 0.0  }
 0x329   : > { %v3416_v9 = vsel %vm3414_vm13, %v8593_v23, %v6686_v31  ;;  %v3415_v11 = vsel %vm3414_vm13, %v8582_v61, %v6685_v60  ;;  %v3448_v7 = vsel %vm2476_vm11, %v6686_v31, %v6691_v29  ;;  %v3447_v33 = vsel %vm2476_vm11, %v6685_v60, %v6690_v41 }
 0x32a   : > { %v6694_v2 = vpop.permute.xlu0 %6693  ;;  %v3545_v61 = vpack.c.bf16 %v3416_v9, %v3415_v11  ;;  %v6997_v30 = vpack.i.bf16 %v9941_v34, %v8931_v62 }
 0x32b   : > { %v6696_v8 = vunpack.i.h.bf16 %v6694_v2  ;;  %v6695_v35 = vunpack.i.l.bf16 %v6694_v2 }
 0x32c   : > { %6983 = vrot.lane.b32.xlu0 %v6982_v37, %s7157_s14  ;;  %6978 = vrot.lane.b32.xlu1 %v6977_v47, %s7158_s17  ;;  %s5820_s17 = sshll.u32 %s7259_s29, 7  ;;  %s7167_s29 = smov [#allocation2]  }
 0x32d   : > { %v3480_v46 = vsel %vm3479_vm14, %v3447_v33, %v6695_v35  ;;  %v3481_v56 = vsel %vm3479_vm14, %v3448_v7, %v6696_v8  ;;  %s9825_s23 = scalar_lea.hbm %s9879_s13, %s5820_s17 }
 0x32e   : > { %v6704_v23 = vpop.permute.xlu0 %6703  ;;  %v6699_v48 = vpop.permute.xlu1 %6698  ;;  %v3546_v59 = vpack.c.bf16 %v3481_v56, %v3480_v46 }
 0x32f   : > { %v6706_v26 = vunpack.i.h.bf16 %v6704_v23  ;;  %v6705_v21 = vunpack.i.l.bf16 %v6704_v23  ;;  %v6701_v17 = vunpack.i.h.bf16 %v6699_v48  ;;  %v6700_v39 = vunpack.i.l.bf16 %v6699_v48 }
 0x330   : > { %6988 = vrot.lane.b32.xlu0 %v6987_v43, %s7160_s24  ;;  %6993 = vrot.lane.b32.xlu1 %v6992_v14, %s7159_s15  ;;  %s7161_s15 = smov 116  }
 0x331   : > { %3864 = vmatprep.mubr.bf16.mxu0 %v3546_v59  ;;  %v3450_v60 = vsel %vm2476_vm11, %v6701_v17, %v6706_v26  ;;  %v3449_v29 = vsel %vm2476_vm11, %v6700_v39, %v6705_v21  ;;  %v3417_v37 = vsel %vm3414_vm13, %v8607_v24, %v6700_v39  ;;  %v3418_v47 = vsel %vm3414_vm13, %v8621_v55, %v6701_v17 }
 0x332   : > { %3865 = vmatmul.mubr.bf16.vlgmr.msra.gmra.mxu0 %v3545_v61  ;;  %v6719_v32 = vpop.permute.xlu0 %6718  ;;  %v6709_v50 = vpop.permute.xlu1 %6708  ;;  %v3548_v56 = vpack.c.bf16 %v3418_v47, %v3417_v37 }
 0x333   : > { %v6721_v31 = vunpack.i.h.bf16 %v6719_v32  ;;  %v6720_v53 = vunpack.i.l.bf16 %v6719_v32  ;;  %v6711_v51 = vunpack.i.h.bf16 %v6709_v50  ;;  %v6710_v38 = vunpack.i.l.bf16 %v6709_v50 }
 0x334   : > { %6998 = vrot.lane.b32.xlu1 %v6997_v30, %s7160_s24  ;;  %s432_s24 = sand.u32 1, %s7141_s26  }
 0x335   : > { %v3482_v41 = vsel %vm3479_vm14, %v3449_v29, %v6710_v38  ;;  %v3483_v2 = vsel %vm3479_vm14, %v3450_v60, %v6711_v51  ;;  %v3516_v11 = vsel %vm3512_vm15, %v6711_v51, %v6721_v31  ;;  %v3515_v7 = vsel %vm3512_vm15, %v6710_v38, %v6720_v53  ;;  %s5631_s16 = sshll.u32 %s432_s24, 3 }
 0x336   : > { %v6724_v0 = vpop.permute.xlu0 %6723  ;;  %v6714_v9 = vpop.permute.xlu1 %6713  ;;  %v3549_v1 = vpack.c.bf16 %v3483_v2, %v3482_v41  ;;  %v3550_v24 = vpack.c.bf16 %v3516_v11, %v3515_v7  ;;  %s434_s20 = scalar_lea.vmem [#allocation2], %s5631_s16  ;;  %s7093_s16 = sshll.u32 %s7167_s29, 4  ;;  %s7094_s16 = int_to_ptr.vmem [resolvable:$false] %s7093_s16 }
 0x337   : > { %v6716_v33 = vunpack.i.h.bf16 %v6714_v9  ;;  %v6715_v46 = vunpack.i.l.bf16 %v6714_v9  ;;  %v6726_v43 = vunpack.i.h.bf16 %v6724_v0  ;;  %v6725_v14 = vunpack.i.l.bf16 %v6724_v0  ;;  %s7095_s22 = scalar_lea.vmem %s7094_s16, 256 }
 0x338   : > { %3872 = vmatprep.mubr.bf16.mxu0 %v3549_v1 }
 0x339   : > { %v3514_v23 = vsel %vm3512_vm15, %v6696_v8, %v6716_v33  ;;  %v3513_v48 = vsel %vm3512_vm15, %v6695_v35, %v6715_v46  ;;  %v3419_v53 = vsel %vm3414_vm13, %v8633_v42, %v6725_v14  ;;  %v3420_v51 = vsel %vm3414_vm13, %v8647_v44, %v6726_v43 }
 0x33a   : > { %v3547_v55 = vpack.c.bf16 %v3514_v23, %v3513_v48  ;;  %3873 = vmatmul.mubr.bf16.gmra.mxu0 %v3548_v56  ;;  %v6734_v59 = vpop.permute.xlu0 %6733  ;;  %v6729_v61 = vpop.permute.xlu1 %6728  ;;  %v3551_v37 = vpack.c.bf16 %v3420_v51, %v3419_v53 }
 0x33b   : > { %v6736_v26 = vunpack.i.h.bf16 %v6734_v59  ;;  %v6735_v21 = vunpack.i.l.bf16 %v6734_v59  ;;  %v6731_v17 = vunpack.i.h.bf16 %v6729_v61  ;;  %v6730_v39 = vunpack.i.l.bf16 %v6729_v61 }
 0x33c   : > { %6170 = vmatprep.mubr.msk.bf16.mxu1 %vm3780_vm0, %v3547_v55 }
 0x33d   : > { %v3452_v32 = vsel %vm2476_vm11, %v6726_v43, %v6731_v17  ;;  %v3451_v8 = vsel %vm2476_vm11, %v6725_v14, %v6730_v39  ;;  %6171 = vmatmul.mubr.msk.bf16.vlgmr.msra.gmra.mxu1 %vm3780_vm0, %v3550_v24 }
 0x33e   : > { %v6744_v35 = vpop.permute.xlu0 %6743  ;;  %v6739_v50 = vpop.permute.xlu1 %6738  ;;  %v3484_v30 = vsel %vm3479_vm14, %v3451_v8, %v6735_v21  ;;  %v3485_v31 = vsel %vm3479_vm14, %v3452_v32, %v6736_v26 }
 0x33f   : > { %v6746_v38 = vunpack.i.h.bf16 %v6744_v35  ;;  %v6745_v60 = vunpack.i.l.bf16 %v6744_v35  ;;  %v6741_v29 = vunpack.i.h.bf16 %v6739_v50  ;;  %v6740_v41 = vunpack.i.l.bf16 %v6739_v50 }
 0x340   : > { %v3552_v2 = vpack.c.bf16 %v3485_v31, %v3484_v30 }
 0x341   : > { %v3454_v33 = vsel %vm2476_vm11, %v6741_v29, %v6746_v38  ;;  %v3453_v42 = vsel %vm2476_vm11, %v6740_v41, %v6745_v60  ;;  %v3421_v55 = vsel %vm3414_vm13, %v8654_v36, %v6740_v41  ;;  %v3422_v59 = vsel %vm3414_vm13, %v8667_v22, %v6741_v29 }
 0x342   : > { %3880 = vmatprep.mubr.bf16.mxu0 %v3552_v2  ;;  %v6749_v47 = vpop.permute.xlu0 %6748  ;;  %v6754_v0 = vpop.permute.xlu1 %6753  ;;  %v3554_v39 = vpack.c.bf16 %v3422_v59, %v3421_v55 }
 0x343   : > { %v6751_v9 = vunpack.i.h.bf16 %v6749_v47  ;;  %v6750_v1 = vunpack.i.l.bf16 %v6749_v47  ;;  %v6756_v11 = vunpack.i.h.bf16 %v6754_v0  ;;  %v6755_v7 = vunpack.i.l.bf16 %v6754_v0  ;;  %3881 = vmatmul.mubr.bf16.gmra.mxu0 %v3551_v37 }
 0x345   : > { %v3518_v44 = vsel %vm3512_vm15, %v6736_v26, %v6751_v9  ;;  %v3517_v46 = vsel %vm3512_vm15, %v6735_v21, %v6750_v1  ;;  %v3486_v56 = vsel %vm3479_vm14, %v3453_v42, %v6755_v7  ;;  %v3487_v23 = vsel %vm3479_vm14, %v3454_v33, %v6756_v11 }
 0x346   : > { %v3553_v48 = vpack.c.bf16 %v3518_v44, %v3517_v46  ;;  %v6764_v24 = vpop.permute.xlu0 %6763  ;;  %v6759_v43 = vpop.permute.xlu1 %6758  ;;  %v3555_v14 = vpack.c.bf16 %v3487_v23, %v3486_v56 }
 0x347   : > { %v6761_v61 = vunpack.i.h.bf16 %v6759_v43  ;;  %v6760_v17 = vunpack.i.l.bf16 %v6759_v43  ;;  %v6766_v32 = vunpack.i.h.bf16 %v6764_v24  ;;  %v6765_v8 = vunpack.i.l.bf16 %v6764_v24 }
 0x348   : > { %3888 = vmatprep.mubr.bf16.mxu0 %v3555_v14  ;;  %6174 = vmatprep.mubr.msk.bf16.mxu1 %vm3780_vm0, %v3553_v48 }
 0x349   : > { %v3519_v26 = vsel %vm3512_vm15, %v6755_v7, %v6760_v17  ;;  %v3520_v21 = vsel %vm3512_vm15, %v6756_v11, %v6761_v61  ;;  %v3423_v37 = vsel %vm3414_vm13, %v8679_v19, %v6765_v8  ;;  %v3424_v47 = vsel %vm3414_vm13, %v8691_v13, %v6766_v32 }
 0x34a   : > { %v3556_v35 = vpack.c.bf16 %v3520_v21, %v3519_v26  ;;  %v6774_v50 = vpop.permute.xlu0 %6773  ;;  %v6769_v30 = vpop.permute.xlu1 %6768  ;;  %v3557_v33 = vpack.c.bf16 %v3424_v47, %v3423_v37 }
 0x34b   : > { %v6776_v31 = vunpack.i.h.bf16 %v6774_v50  ;;  %v6775_v36 = vunpack.i.l.bf16 %v6774_v50  ;;  %v6771_v53 = vunpack.i.h.bf16 %v6769_v30  ;;  %v6770_v51 = vunpack.i.l.bf16 %v6769_v30  ;;  %3889 = vmatmul.mubr.bf16.gmra.mxu0 %v3554_v39 }
 0x34c   : > { %6175 = vmatmul.mubr.msk.bf16.gmra.mxu1 %vm3780_vm0, %v3556_v35 }
 0x34d   : > { %v3456_v22 = vsel %vm2476_vm11, %v6766_v32, %v6771_v53  ;;  %v3455_v38 = vsel %vm2476_vm11, %v6765_v8, %v6770_v51 }
 0x34e   : > { %v6784_v60 = vpop.permute.xlu0 %6783  ;;  %v6779_v29 = vpop.permute.xlu1 %6778  ;;  %v3488_v41 = vsel %vm3479_vm14, %v3455_v38, %v6775_v36  ;;  %v3489_v2 = vsel %vm3479_vm14, %v3456_v22, %v6776_v31 }
 0x34f   : > { %v6786_v0 = vunpack.i.h.bf16 %v6784_v60  ;;  %v6785_v9 = vunpack.i.l.bf16 %v6784_v60  ;;  %v6781_v1 = vunpack.i.h.bf16 %v6779_v29  ;;  %v6780_v11 = vunpack.i.l.bf16 %v6779_v29 }
 0x350   : > { %v3558_v7 = vpack.c.bf16 %v3489_v2, %v3488_v41 }
 0x351   : > { %v3458_v24 = vsel %vm2476_vm11, %v6781_v1, %v6786_v0  ;;  %v3457_v19 = vsel %vm2476_vm11, %v6780_v11, %v6785_v9  ;;  %v3425_v61 = vsel %vm3414_vm13, %v8698_v6, %v6780_v11  ;;  %v3426_v17 = vsel %vm3414_vm13, %v8711_v45, %v6781_v1 }
 0x352   : > { %3896 = vmatprep.mubr.bf16.mxu0 %v3558_v7  ;;  %v6799_v42 = vpop.permute.xlu0 %6798  ;;  %v6789_v44 = vpop.permute.xlu1 %6788  ;;  %v3560_v50 = vpack.c.bf16 %v3426_v17, %v3425_v61 }
 0x353   : > { %v6801_v46 = vunpack.i.h.bf16 %v6799_v42  ;;  %v6800_v56 = vunpack.i.l.bf16 %v6799_v42  ;;  %v6791_v23 = vunpack.i.h.bf16 %v6789_v44  ;;  %v6790_v48 = vunpack.i.l.bf16 %v6789_v44  ;;  %3897 = vmatmul.mubr.bf16.gmra.mxu0 %v3557_v33 }
 0x355   : > { %v3490_v13 = vsel %vm3479_vm14, %v3457_v19, %v6790_v48  ;;  %v3491_v43 = vsel %vm3479_vm14, %v3458_v24, %v6791_v23  ;;  %v3524_v26 = vsel %vm3512_vm15, %v6791_v23, %v6801_v46  ;;  %v3523_v21 = vsel %vm3512_vm15, %v6790_v48, %v6800_v56 }
 0x356   : > { %v6804_v14 = vpop.permute.xlu0 %6803  ;;  %v6794_v55 = vpop.permute.xlu1 %6793  ;;  %v3561_v59 = vpack.c.bf16 %v3491_v43, %v3490_v13  ;;  %v3562_v30 = vpack.c.bf16 %v3524_v26, %v3523_v21 }
 0x357   : > { %v6796_v39 = vunpack.i.h.bf16 %v6794_v55  ;;  %v6795_v32 = vunpack.i.l.bf16 %v6794_v55  ;;  %v6806_v53 = vunpack.i.h.bf16 %v6804_v14  ;;  %v6805_v51 = vunpack.i.l.bf16 %v6804_v14 }
 0x358   : > { %3904 = vmatprep.mubr.bf16.mxu0 %v3561_v59 }
 0x359   : > { %v3522_v8 = vsel %vm3512_vm15, %v6776_v31, %v6796_v39  ;;  %v3521_v35 = vsel %vm3512_vm15, %v6775_v36, %v6795_v32  ;;  %v3427_v9 = vsel %vm3414_vm13, %v8723_v54, %v6805_v51  ;;  %v3428_v1 = vsel %vm3414_vm13, %v8735_v16, %v6806_v53 }
 0x35a   : > { %v3559_v22 = vpack.c.bf16 %v3522_v8, %v3521_v35  ;;  %v6814_v6 = vpop.permute.xlu0 %6813  ;;  %v6809_v38 = vpop.permute.xlu1 %6808  ;;  %v3563_v46 = vpack.c.bf16 %v3428_v1, %v3427_v9 }
 0x35b   : > { %v6816_v60 = vunpack.i.h.bf16 %v6814_v6  ;;  %v6815_v45 = vunpack.i.l.bf16 %v6814_v6  ;;  %v6811_v29 = vunpack.i.h.bf16 %v6809_v38  ;;  %v6810_v41 = vunpack.i.l.bf16 %v6809_v38  ;;  %3905 = vmatmul.mubr.bf16.gmra.mxu0 %v3560_v50 }
 0x35c   : > { %6178 = vmatprep.mubr.msk.bf16.mxu1 %vm3780_vm0, %v3559_v22 }
 0x35d   : > { %v3460_v2 = vsel %vm2476_vm11, %v6806_v53, %v6811_v29  ;;  %v3459_v31 = vsel %vm2476_vm11, %v6805_v51, %v6810_v41  ;;  %6179 = vmatmul.mubr.msk.bf16.gmra.mxu1 %vm3780_vm0, %v3562_v30 }
 0x35e   : > { %v6824_v36 = vpop.permute.xlu0 %6823  ;;  %v6819_v37 = vpop.permute.xlu1 %6818  ;;  %v3492_v47 = vsel %vm3479_vm14, %v3459_v31, %v6815_v45  ;;  %v3493_v0 = vsel %vm3479_vm14, %v3460_v2, %v6816_v60 }
 0x35f   : > { %v6826_v11 = vunpack.i.h.bf16 %v6824_v36  ;;  %v6825_v7 = vunpack.i.l.bf16 %v6824_v36  ;;  %v6821_v33 = vunpack.i.h.bf16 %v6819_v37  ;;  %v6820_v42 = vunpack.i.l.bf16 %v6819_v37 }
 0x360   : > { %v3564_v44 = vpack.c.bf16 %v3493_v0, %v3492_v47 }
 0x361   : > { %v3462_v43 = vsel %vm2476_vm11, %v6821_v33, %v6826_v11  ;;  %v3461_v54 = vsel %vm2476_vm11, %v6820_v42, %v6825_v7  ;;  %v3429_v39 = vsel %vm3414_vm13, %v8742_v25, %v6820_v42  ;;  %v3430_v32 = vsel %vm3414_vm13, %v8755_v28, %v6821_v33 }
 0x362   : > { %3912 = vmatprep.mubr.bf16.mxu0 %v3564_v44  ;;  %v6829_v56 = vpop.permute.xlu0 %6828  ;;  %v6834_v23 = vpop.permute.xlu1 %6833  ;;  %v3566_v53 = vpack.c.bf16 %v3430_v32, %v3429_v39 }
 0x363   : > { %v6831_v48 = vunpack.i.h.bf16 %v6829_v56  ;;  %v6830_v24 = vunpack.i.l.bf16 %v6829_v56  ;;  %v6836_v19 = vunpack.i.h.bf16 %v6834_v23  ;;  %v6835_v13 = vunpack.i.l.bf16 %v6834_v23  ;;  %3913 = vmatmul.mubr.bf16.gmra.mxu0 %v3563_v46 }
 0x365   : > { %v3526_v16 = vsel %vm3512_vm15, %v6816_v60, %v6831_v48  ;;  %v3525_v14 = vsel %vm3512_vm15, %v6815_v45, %v6830_v24  ;;  %v3494_v55 = vsel %vm3479_vm14, %v3461_v54, %v6835_v13  ;;  %v3495_v59 = vsel %vm3479_vm14, %v3462_v43, %v6836_v19 }
 0x366   : > { %v3565_v61 = vpack.c.bf16 %v3526_v16, %v3525_v14  ;;  %v6844_v17 = vpop.permute.xlu0 %6843  ;;  %v6839_v26 = vpop.permute.xlu1 %6838  ;;  %v3567_v21 = vpack.c.bf16 %v3495_v59, %v3494_v55 }
 0x367   : > { %v6841_v8 = vunpack.i.h.bf16 %v6839_v26  ;;  %v6840_v35 = vunpack.i.l.bf16 %v6839_v26  ;;  %v6846_v51 = vunpack.i.h.bf16 %v6844_v17  ;;  %v6845_v22 = vunpack.i.l.bf16 %v6844_v17 }
 0x368   : > { %3920 = vmatprep.mubr.bf16.mxu0 %v3567_v21  ;;  %6182 = vmatprep.mubr.msk.bf16.mxu1 %vm3780_vm0, %v3565_v61 }
 0x369   : > { %v3527_v50 = vsel %vm3512_vm15, %v6835_v13, %v6840_v35  ;;  %v3528_v30 = vsel %vm3512_vm15, %v6836_v19, %v6841_v8  ;;  %v3431_v0 = vsel %vm3414_vm13, %v8767_v57, %v6845_v22  ;;  %v3432_v9 = vsel %vm3414_vm13, %v8779_v12, %v6846_v51 }
 0x36a   : > { %v3568_v6 = vpack.c.bf16 %v3528_v30, %v3527_v50  ;;  %v6854_v38 = vpop.permute.xlu0 %6853  ;;  %v6849_v60 = vpop.permute.xlu1 %6848  ;;  %v3569_v44 = vpack.c.bf16 %v3432_v9, %v3431_v0 }
 0x36b   : > { %v6856_v45 = vunpack.i.h.bf16 %v6854_v38  ;;  %v6855_v25 = vunpack.i.l.bf16 %v6854_v38  ;;  %v6851_v29 = vunpack.i.h.bf16 %v6849_v60  ;;  %v6850_v41 = vunpack.i.l.bf16 %v6849_v60  ;;  %3921 = vmatmul.mubr.bf16.gmra.mxu0 %v3566_v53 }
 0x36c   : > { %6183 = vmatmul.mubr.msk.bf16.gmra.mxu1 %vm3780_vm0, %v3568_v6 }
 0x36d   : > { %v3464_v28 = vsel %vm2476_vm11, %v6846_v51, %v6851_v29  ;;  %v3463_v2 = vsel %vm2476_vm11, %v6845_v22, %v6850_v41 }
 0x36e   : > { %v6864_v31 = vpop.permute.xlu0 %6863  ;;  %v6859_v36 = vpop.permute.xlu1 %6858  ;;  %v3496_v37 = vsel %vm3479_vm14, %v3463_v2, %v6855_v25  ;;  %v3497_v47 = vsel %vm3479_vm14, %v3464_v28, %v6856_v45 }
 0x36f   : > { %v6866_v1 = vunpack.i.h.bf16 %v6864_v31  ;;  %v6865_v11 = vunpack.i.l.bf16 %v6864_v31  ;;  %v6861_v7 = vunpack.i.h.bf16 %v6859_v36  ;;  %v6860_v33 = vunpack.i.l.bf16 %v6859_v36 }
 0x370   : > { %v3570_v42 = vpack.c.bf16 %v3497_v47, %v3496_v37 }
 0x371   : > { %v3466_v13 = vsel %vm2476_vm11, %v6861_v7, %v6866_v1  ;;  %v3465_v57 = vsel %vm2476_vm11, %v6860_v33, %v6865_v11  ;;  %v3433_v55 = vsel %vm3414_vm13, %v8786_v52, %v6860_v33  ;;  %v3434_v59 = vsel %vm3414_vm13, %v8799_v27, %v6861_v7 }
 0x372   : > { %3928 = vmatprep.mubr.bf16.mxu0 %v3570_v42  ;;  %v6879_v46 = vpop.permute.xlu0 %6878  ;;  %v6869_v56 = vpop.permute.xlu1 %6868  ;;  %v3572_v8 = vpack.c.bf16 %v3434_v59, %v3433_v55 }
 0x373   : > { %v6881_v23 = vunpack.i.h.bf16 %v6879_v46  ;;  %v6880_v48 = vunpack.i.l.bf16 %v6879_v46  ;;  %v6871_v24 = vunpack.i.h.bf16 %v6869_v56  ;;  %v6870_v19 = vunpack.i.l.bf16 %v6869_v56  ;;  %3929 = vmatmul.mubr.bf16.gmra.mxu0 %v3569_v44 }
 0x375   : > { %v3498_v12 = vsel %vm3479_vm14, %v3465_v57, %v6870_v19  ;;  %v3499_v43 = vsel %vm3479_vm14, %v3466_v13, %v6871_v24  ;;  %v3532_v61 = vsel %vm3512_vm15, %v6871_v24, %v6881_v23  ;;  %v3531_v17 = vsel %vm3512_vm15, %v6870_v19, %v6880_v48 }
 0x376   : > { %v6884_v54 = vpop.permute.xlu0 %6883  ;;  %v6874_v16 = vpop.permute.xlu1 %6873  ;;  %v3573_v14 = vpack.c.bf16 %v3499_v43, %v3498_v12  ;;  %v3574_v35 = vpack.c.bf16 %v3532_v61, %v3531_v17 }
 0x377   : > { %v6876_v26 = vunpack.i.h.bf16 %v6874_v16  ;;  %v6875_v21 = vunpack.i.l.bf16 %v6874_v16  ;;  %v6886_v50 = vunpack.i.h.bf16 %v6884_v54  ;;  %v6885_v30 = vunpack.i.l.bf16 %v6884_v54 }
 0x378   : > { %3936 = vmatprep.mubr.bf16.mxu0 %v3573_v14 }
 0x379   : > { %v3530_v39 = vsel %vm3512_vm15, %v6856_v45, %v6876_v26  ;;  %v3529_v32 = vsel %vm3512_vm15, %v6855_v25, %v6875_v21  ;;  %v3435_v2 = vsel %vm3414_vm13, %v8811_v10, %v6885_v30  ;;  %v3436_v31 = vsel %vm3414_vm13, %v8823_v4, %v6886_v50 }
 0x37a   : > { %v3571_v53 = vpack.c.bf16 %v3530_v39, %v3529_v32  ;;  %v6894_v52 = vpop.permute.xlu0 %6893  ;;  %v6889_v51 = vpop.permute.xlu1 %6888  ;;  %v3575_v1 = vpack.c.bf16 %v3436_v31, %v3435_v2 }
 0x37b   : > { %v6896_v22 = vunpack.i.h.bf16 %v6894_v52  ;;  %v6895_v27 = vunpack.i.l.bf16 %v6894_v52  ;;  %v6891_v6 = vunpack.i.h.bf16 %v6889_v51  ;;  %v6890_v38 = vunpack.i.l.bf16 %v6889_v51  ;;  %3937 = vmatmul.mubr.bf16.gmra.mxu0 %v3572_v8 }
 0x37c   : > { %6186 = vmatprep.mubr.msk.bf16.mxu1 %vm3780_vm0, %v3571_v53 }
 0x37d   : > { %v3468_v60 = vsel %vm2476_vm11, %v6886_v50, %v6891_v6  ;;  %v3467_v45 = vsel %vm2476_vm11, %v6885_v30, %v6890_v38  ;;  %6187 = vmatmul.mubr.msk.bf16.gmra.mxu1 %vm3780_vm0, %v3574_v35 }
 0x37e   : > { %v6904_v25 = vpop.permute.xlu0 %6903  ;;  %v6899_v29 = vpop.permute.xlu1 %6898  ;;  %v3500_v41 = vsel %vm3479_vm14, %v3467_v45, %v6895_v27  ;;  %v3501_v28 = vsel %vm3479_vm14, %v3468_v60, %v6896_v22 }
 0x37f   : > { %v6906_v36 = vunpack.i.h.bf16 %v6904_v25  ;;  %v6905_v37 = vunpack.i.l.bf16 %v6904_v25  ;;  %v6901_v47 = vunpack.i.h.bf16 %v6899_v29  ;;  %v6900_v0 = vunpack.i.l.bf16 %v6899_v29 }
 0x380   : > { %v3576_v9 = vpack.c.bf16 %v3501_v28, %v3500_v41 }
 0x381   : > { %v3470_v56 = vsel %vm2476_vm11, %v6901_v47, %v6906_v36  ;;  %v3469_v10 = vsel %vm2476_vm11, %v6900_v0, %v6905_v37  ;;  %v3437_v43 = vsel %vm3414_vm13, %v8830_v63, %v6900_v0  ;;  %v3438_v54 = vsel %vm3414_vm13, %v8843_v49, %v6901_v47 }
 0x382   : > { %3944 = vmatprep.mubr.bf16.mxu0 %v3576_v9  ;;  %v6909_v11 = vpop.permute.xlu0 %6908  ;;  %v6914_v7 = vpop.permute.xlu1 %6913  ;;  %v3578_v61 = vpack.c.bf16 %v3438_v54, %v3437_v43 }
 0x383   : > { %v6911_v33 = vunpack.i.h.bf16 %v6909_v11  ;;  %v6910_v42 = vunpack.i.l.bf16 %v6909_v11  ;;  %v6916_v44 = vunpack.i.h.bf16 %v6914_v7  ;;  %v6915_v46 = vunpack.i.l.bf16 %v6914_v7  ;;  %3945 = vmatmul.mubr.bf16.gmra.mxu0 %v3575_v1 }
 0x385   : > { %v3534_v4 = vsel %vm3512_vm15, %v6896_v22, %v6911_v33  ;;  %v3533_v23 = vsel %vm3512_vm15, %v6895_v27, %v6910_v42  ;;  %v3502_v48 = vsel %vm3479_vm14, %v3469_v10, %v6915_v46  ;;  %v3503_v24 = vsel %vm3479_vm14, %v3470_v56, %v6916_v44 }
 0x386   : > { %v3577_v19 = vpack.c.bf16 %v3534_v4, %v3533_v23  ;;  %v6924_v13 = vpop.permute.xlu0 %6923  ;;  %v6919_v57 = vpop.permute.xlu1 %6918  ;;  %v3579_v12 = vpack.c.bf16 %v3503_v24, %v3502_v48 }
 0x387   : > { %v6921_v16 = vunpack.i.h.bf16 %v6919_v57  ;;  %v6920_v14 = vunpack.i.l.bf16 %v6919_v57  ;;  %v6926_v17 = vunpack.i.h.bf16 %v6924_v13  ;;  %v6925_v26 = vunpack.i.l.bf16 %v6924_v13 }
 0x388   : > { %3952 = vmatprep.mubr.bf16.mxu0 %v3579_v12  ;;  %6190 = vmatprep.mubr.msk.bf16.mxu1 %vm3780_vm0, %v3577_v19 }
 0x389   : > { %v3535_v55 = vsel %vm3512_vm15, %v6915_v46, %v6920_v14  ;;  %v3536_v59 = vsel %vm3512_vm15, %v6916_v44, %v6921_v16  ;;  %v3440_v53 = vsel %vm3414_vm13, %v8867_v15, %v6926_v17  ;;  %v3439_v52 = vsel %vm3414_vm13, %v8855_v5, %v6925_v26 }
 0x38a   : > { %v3580_v21 = vpack.c.bf16 %v3536_v59, %v3535_v55  ;;  %v6934_v39 = vpop.permute.xlu0 %6933  ;;  %v6929_v32 = vpop.permute.xlu1 %6928  ;;  %v3581_v41 = vpack.c.bf16 %v3440_v53, %v3439_v52 }
 0x38b   : > { %v6936_v8 = vunpack.i.h.bf16 %v6934_v39  ;;  %v6935_v63 = vunpack.i.l.bf16 %v6934_v39  ;;  %v6931_v35 = vunpack.i.h.bf16 %v6929_v32  ;;  %v6930_v50 = vunpack.i.l.bf16 %v6929_v32  ;;  %3953 = vmatmul.mubr.bf16.gmra.mxu0 %v3578_v61 }
 0x38c   : > { %6191 = vmatmul.mubr.msk.bf16.gmra.mxu1 %vm3780_vm0, %v3580_v21 }
 0x38d   : > { %v3472_v49 = vsel %vm2476_vm11, %v6926_v17, %v6931_v35  ;;  %v3471_v30 = vsel %vm2476_vm11, %v6925_v26, %v6930_v50 }
 0x38e   : > { %v6944_v51 = vpop.permute.xlu0 %6943  ;;  %v6939_v22 = vpop.permute.xlu1 %6938  ;;  %v3504_v27 = vsel %vm3479_vm14, %v3471_v30, %v6935_v63  ;;  %v3505_v6 = vsel %vm3479_vm14, %v3472_v49, %v6936_v8 }
 0x38f   : > { %v6946_v38 = vunpack.i.h.bf16 %v6944_v51  ;;  %v6945_v60 = vunpack.i.l.bf16 %v6944_v51  ;;  %v6941_v45 = vunpack.i.h.bf16 %v6939_v22  ;;  %v6940_v25 = vunpack.i.l.bf16 %v6939_v22 }
 0x390   : > { %v3582_v29 = vpack.c.bf16 %v3505_v6, %v3504_v27 }
 0x391   : > { %v3474_v5 = vsel %vm2476_vm11, %v6941_v45, %v6946_v38  ;;  %v3473_v47 = vsel %vm2476_vm11, %v6940_v25, %v6945_v60  ;;  %v3442_v1 = vsel %vm3414_vm13, %v8887_v20, %v6941_v45  ;;  %v3441_v11 = vsel %vm3414_vm13, %v8874_v40, %v6940_v25 }
 0x392   : > { %3960 = vmatprep.mubr.bf16.mxu0 %v3582_v29  ;;  %v6959_v28 = vpop.permute.xlu0 %6958  ;;  %v6949_v2 = vpop.permute.xlu1 %6948  ;;  %v3584_v4 = vpack.c.bf16 %v3442_v1, %v3441_v11  ;;  %v4546_v1 = vld [vmem:[%s9872_s6 + $0x40] sm:$0xff] }
 0x393   : > { %v6961_v31 = vunpack.i.h.bf16 %v6959_v28  ;;  %v6960_v15 = vunpack.i.l.bf16 %v6959_v28  ;;  %v6951_v36 = vunpack.i.h.bf16 %v6949_v2  ;;  %v6950_v37 = vunpack.i.l.bf16 %v6949_v2  ;;  %3961 = vmatmul.mubr.bf16.gmra.mxu0 %v3581_v41 }
 0x395   : > { %v3506_v0 = vsel %vm3479_vm14, %v3473_v47, %v6950_v37  ;;  %v3507_v9 = vsel %vm3479_vm14, %v3474_v5, %v6951_v36  ;;  %v3540_v44 = vsel %vm3512_vm15, %v6951_v36, %v6961_v31  ;;  %v3539_v46 = vsel %vm3512_vm15, %v6950_v37, %v6960_v15 }
 0x396   : > { %v6964_v7 = vpop.permute.xlu0 %6963  ;;  %v6954_v33 = vpop.permute.xlu1 %6953  ;;  %v3585_v42 = vpack.c.bf16 %v3507_v9, %v3506_v0  ;;  %v3586_v24 = vpack.c.bf16 %v3540_v44, %v3539_v46  ;;  %v4547_v0 = vld [vmem:[%s9872_s6 + $0x48] sm:$0xff] }
 0x397   : > { %v6956_v56 = vunpack.i.h.bf16 %v6954_v33  ;;  %v6955_v10 = vunpack.i.l.bf16 %v6954_v33  ;;  %v6966_v20 = vunpack.i.h.bf16 %v6964_v7  ;;  %v6965_v19 = vunpack.i.l.bf16 %v6964_v7  ;;  %v4545_v7 = vld [vmem:[%s9872_s6 + $0x38] sm:$0xff]  ;;  %v4543_v46 = vld [vmem:[%s9872_s6 + $0x28] sm:$0xff] }
 0x398   : > { %3968 = vmatprep.mubr.bf16.mxu0 %v3585_v42  ;;  %v4544_v42 = vld [vmem:[%s9872_s6 + $0x30] sm:$0xff] }
 0x399   : > { %v3538_v23 = vsel %vm3512_vm15, %v6936_v8, %v6956_v56  ;;  %v3537_v48 = vsel %vm3512_vm15, %v6935_v63, %v6955_v10  ;;  %v3444_v59 = vsel %vm3414_vm13, %v8911_v58, %v6966_v20  ;;  %v3443_v61 = vsel %vm3414_vm13, %v8899_v18, %v6965_v19 }
 0x39a   : > { %v3583_v13 = vpack.c.bf16 %v3538_v23, %v3537_v48  ;;  %v6974_v40 = vpop.permute.xlu0 %6973  ;;  %v6969_v57 = vpop.permute.xlu1 %6968  ;;  %v3587_v49 = vpack.c.bf16 %v3444_v59, %v3443_v61  ;;  %v4542_v23 = vld [vmem:[%s9872_s6 + $0x20] sm:$0xff] }
 0x39b   : > { %v6976_v12 = vunpack.i.h.bf16 %v6974_v40  ;;  %v6975_v43 = vunpack.i.l.bf16 %v6974_v40  ;;  %v6971_v54 = vunpack.i.h.bf16 %v6969_v57  ;;  %v6970_v16 = vunpack.i.l.bf16 %v6969_v57  ;;  %3969 = vmatmul.mubr.bf16.gmra.mxu0 %v3584_v4  ;;  %v9161_v4 = vld [vmem:[%s9871_s5] ss:$0 sm:$0xff] }
 0x39c   : > { %6194 = vmatprep.mubr.msk.bf16.mxu1 %vm3780_vm0, %v3583_v13  ;;  %v4540_v13 = vld [vmem:[%s9872_s6 + $0x10] sm:$0xff] }
 0x39d   : > { %v3476_v14 = vsel %vm2476_vm11, %v6966_v20, %v6971_v54  ;;  %v3475_v55 = vsel %vm2476_vm11, %v6965_v19, %v6970_v16  ;;  %6195 = vmatmul.mubr.msk.bf16.gmra.mxu1 %vm3780_vm0, %v3586_v24  ;;  %v4541_v19 = vld [vmem:[%s9872_s6 + $0x18] sm:$0xff] }
 0x39e   : > { %v6984_v17 = vpop.permute.xlu0 %6983  ;;  %v6979_v26 = vpop.permute.xlu1 %6978  ;;  %v3508_v21 = vsel %vm3479_vm14, %v3475_v55, %v6975_v43  ;;  %v3509_v39 = vsel %vm3479_vm14, %v3476_v14, %v6976_v12 }
 0x39f   : > { %v6986_v32 = vunpack.i.h.bf16 %v6984_v17  ;;  %v6985_v8 = vunpack.i.l.bf16 %v6984_v17  ;;  %v6981_v63 = vunpack.i.h.bf16 %v6979_v26  ;;  %v6980_v35 = vunpack.i.l.bf16 %v6979_v26  ;;  %v4539_v17 = vld [vmem:[%s9872_s6 + $0x8] sm:$0xff]  ;;  %v4538_v26 = vld [vmem:[%s9872_s6] sm:$0xff] }
 0x3a0   : > { %v3588_v50 = vpack.c.bf16 %v3509_v39, %v3508_v21 }
 0x3a1   : > { %v3478_v18 = vsel %vm2476_vm11, %v6981_v63, %v6986_v32  ;;  %v3477_v27 = vsel %vm2476_vm11, %v6980_v35, %v6985_v8  ;;  %v3446_v25 = vsel %vm3414_vm13, %v8931_v62, %v6981_v63  ;;  %v3445_v29 = vsel %vm3414_vm13, %v8918_v3, %v6980_v35  ;;  %v4549_v3 = vld [vmem:[%s9872_s6 + $0x58] sm:$0xff]  ;;  %v4548_v62 = vld [vmem:[%s9872_s6 + $0x50] sm:$0xff] }
 0x3a2   : > { %3976 = vmatprep.mubr.bf16.mxu0 %v3588_v50  ;;  %v6989_v30 = vpop.permute.xlu0 %6988  ;;  %v6994_v53 = vpop.permute.xlu1 %6993  ;;  %v3590_v36 = vpack.c.bf16 %v3446_v25, %v3445_v29  ;;  %6202 = vmatprep.subr.mxu1 %v4549_v3  ;;  %vm5306_vm13 = vcmask 523264  }
 0x3a3   : > { %v6991_v52 = vunpack.i.h.bf16 %v6989_v30  ;;  %v6990_v58 = vunpack.i.l.bf16 %v6989_v30  ;;  %v6996_v51 = vunpack.i.h.bf16 %v6994_v53  ;;  %v6995_v22 = vunpack.i.l.bf16 %v6994_v53  ;;  %3977 = vmatmul.mubr.bf16.gmra.mxu0 %v3587_v49  ;;  %6203 = vmatpush3.msra.mxu1 %v4549_v3 }
 0x3a4   : > { %6204 = vmatprep.subr.mxu1 %v4548_v62 }
 0x3a5   : > { %v3542_v6 = vsel %vm3512_vm15, %v6976_v12, %v6991_v52  ;;  %v3541_v38 = vsel %vm3512_vm15, %v6975_v43, %v6990_v58  ;;  %v3510_v60 = vsel %vm3479_vm14, %v3477_v27, %v6995_v22  ;;  %v3511_v45 = vsel %vm3479_vm14, %v3478_v18, %v6996_v51  ;;  %6205 = vmatpush3.msra.mxu1 %v4548_v62 }
 0x3a6   : > { %v3589_v41 = vpack.c.bf16 %v3542_v6, %v3541_v38  ;;  %v6999_v28 = vpop.permute.xlu1 %6998  ;;  %v3591_v2 = vpack.c.bf16 %v3511_v45, %v3510_v60  ;;  %6206 = vmatprep.subr.mxu1 %v4547_v0  ;;  %vm5419_vm14 = vcmask 982016  }
 0x3a7   : > { %v7001_v31 = vunpack.i.h.bf16 %v6999_v28  ;;  %v7000_v15 = vunpack.i.l.bf16 %v6999_v28  ;;  %6207 = vmatpush3.msra.mxu1 %v4547_v0 }
 0x3a8   : > { %3984 = vmatprep.mubr.bf16.mxu0 %v3591_v2  ;;  %6198 = vmatprep.mubr.msk.bf16.mxu1 %vm3780_vm0, %v3589_v41 }
 0x3a9   : > { %v3543_v37 = vsel %vm3512_vm15, %v6995_v22, %v7000_v15  ;;  %v3544_v5 = vsel %vm3512_vm15, %v6996_v51, %v7001_v31  ;;  %6208 = vmatprep.subr.mxu1 %v4546_v1 }
 0x3aa   : > { %v3592_v47 = vpack.c.bf16 %v3544_v5, %v3543_v37  ;;  %6209 = vmatpush3.msra.mxu1 %v4546_v1 }
 0x3ab   : > { %3985 = vmatmul.mubr.bf16.gmra.mxu0 %v3590_v36  ;;  %6210 = vmatprep.subr.mxu1 %v4545_v7 }
 0x3ac   : > { %6199 = vmatmul.mubr.msk.bf16.gmra.mxu1 %vm3780_vm0, %v3592_v47 }
 0x3ad   : > { %6211 = vmatpush3.msra.mxu1 %v4545_v7 }
 0x3ae   : > { %6212 = vmatprep.subr.mxu1 %v4544_v42 }
 0x3af   : > { %6213 = vmatpush3.msra.mxu1 %v4544_v42 }
 0x3b0   : > { %6214 = vmatprep.subr.mxu1 %v4543_v46 }
 0x3b1   : > { %6215 = vmatpush3.msra.mxu1 %v4543_v46 }
 0x3b2   : > { %6216 = vmatprep.subr.mxu1 %v4542_v23 }
 0x3b3   : > { %6217 = vmatpush3.msra.mxu1 %v4542_v23 }
 0x3b4   : > { %6218 = vmatprep.subr.mxu1 %v4541_v19 }
 0x3b5   : > { %6219 = vmatpush3.msra.mxu1 %v4541_v19 }
 0x3b6   : > { %6220 = vmatprep.subr.mxu1 %v4540_v13 }
 0x3b7   : > { %6221 = vmatpush3.msra.mxu1 %v4540_v13 }
 0x3b8   : > { %6222 = vmatprep.subr.mxu1 %v4539_v17 }
 0x3b9   : > { %6223 = vmatpush3.msra.mxu1 %v4539_v17 }
 0x3ba   : > { %6224 = vmatprep.subr.mxu1 %v4538_v26 }
 0x3bb   : > { %6225 = vmatpush3.msra.mxu1 %v4538_v26 }
 0x3f2   : > { %v5839_v9 = vpop.f32.mrf.mxu0 }
 0x3f4   : > { %v5840_v11 = vpop.f32.mrf.mxu0 }
 0x3f5   : > { %v5841_v56 = vadd.f32 %v5840_v11, %v5839_v9 }
 0x3f6   : > { %v5842_v33 = vpop.f32.mrf.mxu0 }
 0x3f7   : > { %v3867_v12 = vadd.f32 %v5841_v56, %v9161_v4 }
 0x3f8   : > { %v5843_v44 = vpop.f32.mrf.mxu0 }
 0x3f9   : > { %v5844_v40 = vadd.f32 %v5843_v44, %v5842_v33 }
 0x3fa   : > { %v5845_v10 = vpop.f32.mrf.mxu0 }
 0x3fb   : > { %v3870_v21 = vadd.f32 %v5844_v40, %v9161_v4 }
 0x3fc   : > { %v5846_v48 = vpop.f32.mrf.mxu0 }
 0x3fd   : > { %v5847_v24 = vadd.f32 %v5846_v48, %v5845_v10  ;;  %v6172_v20 = vpop.f32.mrf.mxu1 }
 0x3fe   : > { %v5848_v57 = vpop.f32.mrf.mxu0 }
 0x3ff   : > { %v3875_v43 = vadd.f32 %v5847_v24, %v9161_v4  ;;  %v4027_v54 = vpop.f32.mrf.mxu1 }
 0x400   : > { %v5849_v16 = vpop.f32.mrf.mxu0  ;;  %v4028_v14 = vadd.f32 %v4027_v54, %v3867_v12 }
 0x401   : > { %v4036_v55 = vadd.f32 %v6172_v20, %v3875_v43  ;;  %v5850_v59 = vadd.f32 %v5849_v16, %v5848_v57  ;;  %v6173_v61 = vpop.f32.mrf.mxu1 }
 0x402   : > { %v4154_v35 = vmax.f32 %v4028_v14, 0.0 }
 0x403   : > { %v3878_v39 = vadd.f32 %v5850_v59, %v9161_v4  ;;  %v5851_v32 = vpop.f32.mrf.mxu0  ;;  %v4030_v8 = vpop.f32.mrf.mxu1  ;;  %v4156_v63 = vmax.f32 %v4036_v55, 0.0 }
 0x404   : > { %v4031_v50 = vadd.f32 %v4030_v8, %v3870_v21  ;;  %v4218_v22 = vrot.slane %v4154_v35, 2 }
 0x405   : > { %v4039_v49 = vadd.f32 %v6173_v61, %v3878_v39  ;;  %v5852_v30 = vpop.f32.mrf.mxu0  ;;  %v4221_v51 = vrot.slane %v4156_v63, 2 }
 0x406   : > { %v4155_v53 = vmax.f32 %v4031_v50, 0.0  ;;  %v5853_v6 = vadd.f32 %v5852_v30, %v5851_v32 }
 0x407   : > { %v4157_v52 = vmax.f32 %v4039_v49, 0.0  ;;  %v5854_v58 = vpop.f32.mrf.mxu0 }
 0x408   : > { %v4219_v18 = vrot.slane %v4155_v53, 2  ;;  %v3883_v36 = vadd.f32 %v5853_v6, %v9161_v4 }
 0x409   : > { %v4223_v27 = vrot.slane %v4157_v52, 2  ;;  %v5855_v38 = vpop.f32.mrf.mxu0 }
 0x40a   : > { %v4220_v60 = vsel %vm572_vm2, %v4218_v22, %v4219_v18  ;;  %v4222_v45 = vsel %vm572_vm2, %v4219_v18, %v4221_v51  ;;  %v5856_v31 = vadd.f32 %v5855_v38, %v5854_v58 }
 0x40b   : > { %v9184_v25 = vmax.f32 %v4155_v53, %v4222_v45  ;;  %v5857_v29 = vpop.f32.mrf.mxu0  ;;  %v9186_v41 = vmax.f32 %v4154_v35, %v4220_v60  ;;  %v4224_v28 = vsel %vm572_vm2, %v4221_v51, %v4223_v27 }
 0x40c   : > { %v6176_v2 = vpop.f32.mrf.mxu1  ;;  %v9194_v62 = vmax.f32 %v4156_v63, %v4224_v28  ;;  %v3886_v7 = vadd.f32 %v5856_v31, %v9161_v4 }
 0x40d   : > { %v5858_v15 = vpop.f32.mrf.mxu0  ;;  %4380 = vrot.lane.b32.xlu1 %v9184_v25, %s7161_s15  ;;  %4378 = vrot.lane.b32.xlu0 %v9186_v41, %s7161_s15 }
 0x40e   : > { %v5859_v37 = vadd.f32 %v5858_v15, %v5857_v29  ;;  %v4043_v5 = vpop.f32.mrf.mxu1 }
 0x40f   : > { %v5860_v47 = vpop.f32.mrf.mxu0  ;;  %v4044_v3 = vadd.f32 %v4043_v5, %v3883_v36 }
 0x410   : > { %v3891_v0 = vadd.f32 %v5859_v37, %v9161_v4  ;;  %v6177_v9 = vpop.f32.mrf.mxu1 }
 0x411   : > { %v4158_v1 = vmax.f32 %v4044_v3, 0.0  ;;  %v5861_v11 = vpop.f32.mrf.mxu0  ;;  %4382 = vrot.lane.b32.xlu0 %v9194_v62, %s7161_s15 }
 0x412   : > { %v4052_v33 = vadd.f32 %v6176_v2, %v3891_v0  ;;  %v5862_v42 = vadd.f32 %v5861_v11, %v5860_v47  ;;  %v4046_v44 = vpop.f32.mrf.mxu1 }
 0x413   : > { %v4225_v46 = vrot.slane %v4158_v1, 2  ;;  %v5863_v56 = vpop.f32.mrf.mxu0  ;;  %v4047_v10 = vadd.f32 %v4046_v44, %v3886_v7 }
 0x414   : > { %v4160_v23 = vmax.f32 %v4052_v33, 0.0  ;;  %v3894_v48 = vadd.f32 %v5862_v42, %v9161_v4 }
 0x415   : > { %v4226_v24 = vsel %vm572_vm2, %v4223_v27, %v4225_v46  ;;  %v4159_v20 = vmax.f32 %v4047_v10, 0.0  ;;  %v5864_v19 = vpop.f32.mrf.mxu0 }
 0x416   : > { %v4055_v13 = vadd.f32 %v6177_v9, %v3894_v48  ;;  %v9202_v40 = vmax.f32 %v4157_v52, %v4226_v24  ;;  %v4229_v57 = vrot.slane %v4160_v23, 2  ;;  %v5865_v17 = vadd.f32 %v5864_v19, %v5863_v56 }
 0x417   : > { %v4227_v12 = vrot.slane %v4159_v20, 2  ;;  %v5866_v43 = vpop.f32.mrf.mxu0 }
 0x418   : > { %v4161_v54 = vmax.f32 %v4055_v13, 0.0  ;;  %4384 = vrot.lane.b32.xlu1 %v9202_v40, %s7161_s15  ;;  %v3899_v50 = vadd.f32 %v5865_v17, %v9161_v4 }
 0x419   : > { %v4228_v16 = vsel %vm572_vm2, %v4225_v46, %v4227_v12  ;;  %v4230_v14 = vsel %vm572_vm2, %v4227_v12, %v4229_v57  ;;  %v5867_v55 = vpop.f32.mrf.mxu0 }
 0x41a   : > { %v4231_v59 = vrot.slane %v4161_v54, 2  ;;  %v9208_v61 = vmax.f32 %v4159_v20, %v4230_v14  ;;  %v9210_v26 = vmax.f32 %v4158_v1, %v4228_v16  ;;  %v5868_v63 = vadd.f32 %v5867_v55, %v5866_v43 }
 0x41b   : > { %v5869_v21 = vpop.f32.mrf.mxu0 }
 0x41c   : > { %v4232_v39 = vsel %vm572_vm2, %v4229_v57, %v4231_v59  ;;  %4388 = vrot.lane.b32.xlu1 %v9208_v61, %s7161_s15  ;;  %4386 = vrot.lane.b32.xlu0 %v9210_v26, %s7161_s15  ;;  %v3902_v38 = vadd.f32 %v5868_v63, %v9161_v4 }
 0x41d   : > { %v5870_v32 = vpop.f32.mrf.mxu0  ;;  %v6180_v8 = vpop.f32.mrf.mxu1  ;;  %v9218_v49 = vmax.f32 %v4160_v23, %v4232_v39 }
 0x41e   : > { %v5871_v35 = vadd.f32 %v5870_v32, %v5869_v21 }
 0x41f   : > { %v5872_v30 = vpop.f32.mrf.mxu0  ;;  %v4059_v53 = vpop.f32.mrf.mxu1 }
 0x420   : > { %v3907_v52 = vadd.f32 %v5871_v35, %v9161_v4  ;;  %v4060_v58 = vadd.f32 %v4059_v53, %v3899_v50  ;;  %4390 = vrot.lane.b32.xlu0 %v9218_v49, %s7161_s15 }
 0x421   : > { %v5873_v51 = vpop.f32.mrf.mxu0  ;;  %v6181_v22 = vpop.f32.mrf.mxu1 }
 0x422   : > { %v4068_v18 = vadd.f32 %v6180_v8, %v3907_v52  ;;  %v4162_v27 = vmax.f32 %v4060_v58, 0.0  ;;  %v5874_v6 = vadd.f32 %v5873_v51, %v5872_v30 }
 0x423   : > { %v5875_v60 = vpop.f32.mrf.mxu0  ;;  %v4062_v45 = vpop.f32.mrf.mxu1 }
 0x424   : > { %v4164_v29 = vmax.f32 %v4068_v18, 0.0  ;;  %v4233_v28 = vrot.slane %v4162_v27, 2  ;;  %v3910_v2 = vadd.f32 %v5874_v6, %v9161_v4  ;;  %v4063_v31 = vadd.f32 %v4062_v45, %v3902_v38 }
 0x425   : > { %v5876_v15 = vpop.f32.mrf.mxu0 }
 0x426   : > { %v4234_v36 = vsel %vm572_vm2, %v4231_v59, %v4233_v28  ;;  %v4071_v37 = vadd.f32 %v6181_v22, %v3910_v2  ;;  %v4163_v5 = vmax.f32 %v4063_v31, 0.0  ;;  %v4237_v0 = vrot.slane %v4164_v29, 2 }
 0x427   : > { %v5878_v47 = vpop.f32.mrf.mxu0  ;;  %v9226_v3 = vmax.f32 %v4161_v54, %v4234_v36  ;;  %v5877_v11 = vadd.f32 %v5876_v15, %v5875_v60 }
 0x428   : > { %v4165_v9 = vmax.f32 %v4071_v37, 0.0  ;;  %v4235_v1 = vrot.slane %v4163_v5, 2 }
 0x429   : > { %v5879_v7 = vpop.f32.mrf.mxu0  ;;  %4392 = vrot.lane.b32.xlu1 %v9226_v3, %s7161_s15  ;;  %v3915_v19 = vadd.f32 %v5877_v11, %v9161_v4 }
 0x42a   : > { %v4239_v33 = vrot.slane %v4165_v9, 2  ;;  %v4236_v42 = vsel %vm572_vm2, %v4233_v28, %v4235_v1  ;;  %v4238_v44 = vsel %vm572_vm2, %v4235_v1, %v4237_v0  ;;  %v5880_v24 = vadd.f32 %v5879_v7, %v5878_v47 }
 0x42b   : > { %v9232_v46 = vmax.f32 %v4163_v5, %v4238_v44  ;;  %v5881_v56 = vpop.f32.mrf.mxu0  ;;  %v9234_v10 = vmax.f32 %v4162_v27, %v4236_v42 }
 0x42c   : > { %v4240_v23 = vsel %vm572_vm2, %v4237_v0, %v4239_v33  ;;  %v6184_v48 = vpop.f32.mrf.mxu1  ;;  %v3918_v17 = vadd.f32 %v5880_v24, %v9161_v4 }
 0x42d   : > { %v5882_v20 = vpop.f32.mrf.mxu0  ;;  %4396 = vrot.lane.b32.xlu1 %v9232_v46, %s7161_s15  ;;  %4394 = vrot.lane.b32.xlu0 %v9234_v10, %s7161_s15  ;;  %v9242_v54 = vmax.f32 %v4164_v29, %v4240_v23 }
 0x42e   : > { %v5883_v13 = vadd.f32 %v5882_v20, %v5881_v56  ;;  %v4075_v57 = vpop.f32.mrf.mxu1 }
 0x42f   : > { %v5884_v12 = vpop.f32.mrf.mxu0  ;;  %v4076_v43 = vadd.f32 %v4075_v57, %v3915_v19 }
 0x430   : > { %v3923_v16 = vadd.f32 %v5883_v13, %v9161_v4  ;;  %v6185_v14 = vpop.f32.mrf.mxu1 }
 0x431   : > { %v4166_v55 = vmax.f32 %v4076_v43, 0.0  ;;  %v5885_v59 = vpop.f32.mrf.mxu0  ;;  %4398 = vrot.lane.b32.xlu0 %v9242_v54, %s7161_s15 }
 0x432   : > { %v4084_v21 = vadd.f32 %v6184_v48, %v3923_v16  ;;  %v5886_v39 = vadd.f32 %v5885_v59, %v5884_v12  ;;  %v4078_v32 = vpop.f32.mrf.mxu1 }
 0x433   : > { %v4241_v8 = vrot.slane %v4166_v55, 2  ;;  %v5887_v63 = vpop.f32.mrf.mxu0  ;;  %v4079_v35 = vadd.f32 %v4078_v32, %v3918_v17 }
 0x434   : > { %v4168_v50 = vmax.f32 %v4084_v21, 0.0  ;;  %v3926_v30 = vadd.f32 %v5886_v39, %v9161_v4 }
 0x435   : > { %v4242_v53 = vsel %vm572_vm2, %v4239_v33, %v4241_v8  ;;  %v4167_v52 = vmax.f32 %v4079_v35, 0.0  ;;  %v5888_v58 = vpop.f32.mrf.mxu0 }
 0x436   : > { %v4087_v51 = vadd.f32 %v6185_v14, %v3926_v30  ;;  %v9250_v22 = vmax.f32 %v4165_v9, %v4242_v53  ;;  %v4245_v18 = vrot.slane %v4168_v50, 2  ;;  %v5889_v31 = vadd.f32 %v5888_v58, %v5887_v63 }
 0x437   : > { %v4243_v27 = vrot.slane %v4167_v52, 2  ;;  %v5890_v6 = vpop.f32.mrf.mxu0 }
 0x438   : > { %v4169_v38 = vmax.f32 %v4087_v51, 0.0  ;;  %4400 = vrot.lane.b32.xlu1 %v9250_v22, %s7161_s15  ;;  %v3931_v1 = vadd.f32 %v5889_v31, %v9161_v4 }
 0x439   : > { %v4244_v60 = vsel %vm572_vm2, %v4241_v8, %v4243_v27  ;;  %v4246_v45 = vsel %vm572_vm2, %v4243_v27, %v4245_v18  ;;  %v5891_v29 = vpop.f32.mrf.mxu0 }
 0x43a   : > { %v4247_v28 = vrot.slane %v4169_v38, 2  ;;  %v9256_v2 = vmax.f32 %v4167_v52, %v4246_v45  ;;  %v9258_v15 = vmax.f32 %v4166_v55, %v4244_v60  ;;  %v5892_v0 = vadd.f32 %v5891_v29, %v5890_v6 }
 0x43b   : > { %v5893_v36 = vpop.f32.mrf.mxu0 }
 0x43c   : > { %v4248_v37 = vsel %vm572_vm2, %v4245_v18, %v4247_v28  ;;  %4404 = vrot.lane.b32.xlu1 %v9256_v2, %s7161_s15  ;;  %4402 = vrot.lane.b32.xlu0 %v9258_v15, %s7161_s15  ;;  %v3934_v19 = vadd.f32 %v5892_v0, %v9161_v4 }
 0x43d   : > { %v5894_v5 = vpop.f32.mrf.mxu0  ;;  %v6188_v47 = vpop.f32.mrf.mxu1  ;;  %v9266_v11 = vmax.f32 %v4168_v50, %v4248_v37 }
 0x43e   : > { %v5895_v9 = vadd.f32 %v5894_v5, %v5893_v36 }
 0x43f   : > { %v5896_v7 = vpop.f32.mrf.mxu0  ;;  %v4091_v33 = vpop.f32.mrf.mxu1 }
 0x440   : > { %v3939_v42 = vadd.f32 %v5895_v9, %v9161_v4  ;;  %v4092_v44 = vadd.f32 %v4091_v33, %v3931_v1  ;;  %4406 = vrot.lane.b32.xlu0 %v9266_v11, %s7161_s15 }
 0x441   : > { %v5897_v56 = vpop.f32.mrf.mxu0  ;;  %v6189_v23 = vpop.f32.mrf.mxu1 }
 0x442   : > { %v4100_v48 = vadd.f32 %v6188_v47, %v3939_v42  ;;  %v4170_v24 = vmax.f32 %v4092_v44, 0.0  ;;  %v5898_v20 = vadd.f32 %v5897_v56, %v5896_v7 }
 0x443   : > { %v5899_v13 = vpop.f32.mrf.mxu0  ;;  %v4094_v57 = vpop.f32.mrf.mxu1 }
 0x444   : > { %v4172_v12 = vmax.f32 %v4100_v48, 0.0  ;;  %v4249_v43 = vrot.slane %v4170_v24, 2  ;;  %v3942_v16 = vadd.f32 %v5898_v20, %v9161_v4  ;;  %v4095_v14 = vadd.f32 %v4094_v57, %v3934_v19 }
 0x445   : > { %v5900_v55 = vpop.f32.mrf.mxu0 }
 0x446   : > { %v4250_v59 = vsel %vm572_vm2, %v4247_v28, %v4249_v43  ;;  %v4103_v17 = vadd.f32 %v6189_v23, %v3942_v16  ;;  %v4171_v21 = vmax.f32 %v4095_v14, 0.0  ;;  %v4253_v8 = vrot.slane %v4172_v12, 2 }
 0x447   : > { %v5902_v39 = vpop.f32.mrf.mxu0  ;;  %v9274_v32 = vmax.f32 %v4169_v38, %v4250_v59  ;;  %v5901_v50 = vadd.f32 %v5900_v55, %v5899_v13 }
 0x448   : > { %v4173_v63 = vmax.f32 %v4103_v17, 0.0  ;;  %v4251_v35 = vrot.slane %v4171_v21, 2 }
 0x449   : > { %v5903_v30 = vpop.f32.mrf.mxu0  ;;  %4408 = vrot.lane.b32.xlu1 %v9274_v32, %s7161_s15  ;;  %v3947_v29 = vadd.f32 %v5901_v50, %v9161_v4 }
 0x44a   : > { %v4255_v53 = vrot.slane %v4173_v63, 2  ;;  %v4252_v52 = vsel %vm572_vm2, %v4249_v43, %v4251_v35  ;;  %v4254_v58 = vsel %vm572_vm2, %v4251_v35, %v4253_v8  ;;  %v5904_v60 = vadd.f32 %v5903_v30, %v5902_v39 }
 0x44b   : > { %v9280_v51 = vmax.f32 %v4171_v21, %v4254_v58  ;;  %v5905_v18 = vpop.f32.mrf.mxu0  ;;  %v9282_v27 = vmax.f32 %v4170_v24, %v4252_v52 }
 0x44c   : > { %v4256_v6 = vsel %vm572_vm2, %v4253_v8, %v4255_v53  ;;  %v6192_v38 = vpop.f32.mrf.mxu1  ;;  %v3950_v7 = vadd.f32 %v5904_v60, %v9161_v4 }
 0x44d   : > { %v5906_v45 = vpop.f32.mrf.mxu0  ;;  %4412 = vrot.lane.b32.xlu1 %v9280_v51, %s7161_s15  ;;  %4410 = vrot.lane.b32.xlu0 %v9282_v27, %s7161_s15  ;;  %v9290_v5 = vmax.f32 %v4172_v12, %v4256_v6 }
 0x44e   : > { %v5907_v28 = vadd.f32 %v5906_v45, %v5905_v18  ;;  %v4107_v31 = vpop.f32.mrf.mxu1 }
 0x44f   : > { %v5908_v36 = vpop.f32.mrf.mxu0  ;;  %v4108_v37 = vadd.f32 %v4107_v31, %v3947_v29 }
 0x450   : > { %v3955_v47 = vadd.f32 %v5907_v28, %v9161_v4  ;;  %v6193_v0 = vpop.f32.mrf.mxu1 }
 0x451   : > { %v4174_v9 = vmax.f32 %v4108_v37, 0.0  ;;  %v5909_v1 = vpop.f32.mrf.mxu0  ;;  %4414 = vrot.lane.b32.xlu0 %v9290_v5, %s7161_s15 }
 0x452   : > { %v4116_v33 = vadd.f32 %v6192_v38, %v3955_v47  ;;  %v5910_v42 = vadd.f32 %v5909_v1, %v5908_v36  ;;  %v4110_v44 = vpop.f32.mrf.mxu1 }
 0x453   : > { %v4257_v56 = vrot.slane %v4174_v9, 2  ;;  %v5911_v23 = vpop.f32.mrf.mxu0  ;;  %v4111_v48 = vadd.f32 %v4110_v44, %v3950_v7 }
 0x454   : > { %v4176_v24 = vmax.f32 %v4116_v33, 0.0  ;;  %v3958_v20 = vadd.f32 %v5910_v42, %v9161_v4 }
 0x455   : > { %v4258_v19 = vsel %vm572_vm2, %v4255_v53, %v4257_v56  ;;  %v4175_v13 = vmax.f32 %v4111_v48, 0.0  ;;  %v5912_v57 = vpop.f32.mrf.mxu0 }
 0x456   : > { %v4119_v12 = vadd.f32 %v6193_v0, %v3958_v20  ;;  %v9298_v43 = vmax.f32 %v4173_v63, %v4258_v19  ;;  %v4261_v16 = vrot.slane %v4176_v24, 2  ;;  %v5913_v50 = vadd.f32 %v5912_v57, %v5911_v23 }
 0x457   : > { %v4259_v14 = vrot.slane %v4175_v13, 2  ;;  %v5914_v55 = vpop.f32.mrf.mxu0 }
 0x458   : > { %v4177_v59 = vmax.f32 %v4119_v12, 0.0  ;;  %4416 = vrot.lane.b32.xlu1 %v9298_v43, %s7161_s15  ;;  %v3963_v38 = vadd.f32 %v5913_v50, %v9161_v4 }
 0x459   : > { %v4260_v17 = vsel %vm572_vm2, %v4257_v56, %v4259_v14  ;;  %v4262_v21 = vsel %vm572_vm2, %v4259_v14, %v4261_v16  ;;  %v5915_v39 = vpop.f32.mrf.mxu0 }
 0x45a   : > { %v4263_v8 = vrot.slane %v4177_v59, 2  ;;  %v9304_v35 = vmax.f32 %v4175_v13, %v4262_v21  ;;  %v9306_v30 = vmax.f32 %v4174_v9, %v4260_v17  ;;  %v5916_v18 = vadd.f32 %v5915_v39, %v5914_v55 }
 0x45b   : > { %v5917_v63 = vpop.f32.mrf.mxu0 }
 0x45c   : > { %v4264_v53 = vsel %vm572_vm2, %v4261_v16, %v4263_v8  ;;  %4420 = vrot.lane.b32.xlu1 %v9304_v35, %s7161_s15  ;;  %4418 = vrot.lane.b32.xlu0 %v9306_v30, %s7161_s15  ;;  %v3966_v1 = vadd.f32 %v5916_v18, %v9161_v4 }
 0x45d   : > { %v5918_v52 = vpop.f32.mrf.mxu0  ;;  %v6196_v58 = vpop.f32.mrf.mxu1  ;;  %v9314_v60 = vmax.f32 %v4176_v24, %v4264_v53 }
 0x45e   : > { %v5919_v6 = vadd.f32 %v5918_v52, %v5917_v63 }
 0x45f   : > { %v5920_v45 = vpop.f32.mrf.mxu0  ;;  %v4123_v29 = vpop.f32.mrf.mxu1 }
 0x460   : > { %v3971_v28 = vadd.f32 %v5919_v6, %v9161_v4  ;;  %v4124_v31 = vadd.f32 %v4123_v29, %v3963_v38  ;;  %4422 = vrot.lane.b32.xlu0 %v9314_v60, %s7161_s15 }
 0x461   : > { %v5921_v36 = vpop.f32.mrf.mxu0  ;;  %v6197_v37 = vpop.f32.mrf.mxu1 }
 0x462   : > { %v4132_v47 = vadd.f32 %v6196_v58, %v3971_v28  ;;  %v4178_v0 = vmax.f32 %v4124_v31, 0.0  ;;  %v5922_v9 = vadd.f32 %v5921_v36, %v5920_v45 }
 0x463   : > { %v5923_v7 = vpop.f32.mrf.mxu0  ;;  %v4126_v33 = vpop.f32.mrf.mxu1 }
 0x464   : > { %v4180_v42 = vmax.f32 %v4132_v47, 0.0  ;;  %v4265_v44 = vrot.slane %v4178_v0, 2  ;;  %v3974_v56 = vadd.f32 %v5922_v9, %v9161_v4  ;;  %v4127_v23 = vadd.f32 %v4126_v33, %v3966_v1 }
 0x465   : > { %v5924_v48 = vpop.f32.mrf.mxu0 }
 0x466   : > { %v4266_v24 = vsel %vm572_vm2, %v4263_v8, %v4265_v44  ;;  %v4135_v20 = vadd.f32 %v6197_v37, %v3974_v56  ;;  %v4179_v19 = vmax.f32 %v4127_v23, 0.0  ;;  %v4269_v12 = vrot.slane %v4180_v42, 2 }
 0x467   : > { %v5926_v13 = vpop.f32.mrf.mxu0  ;;  %v9322_v57 = vmax.f32 %v4177_v59, %v4266_v24  ;;  %v5925_v55 = vadd.f32 %v5924_v48, %v5923_v7 }
 0x468   : > { %v4181_v16 = vmax.f32 %v4135_v20, 0.0  ;;  %v4267_v14 = vrot.slane %v4179_v19, 2 }
 0x469   : > { %v5927_v17 = vpop.f32.mrf.mxu0  ;;  %4424 = vrot.lane.b32.xlu1 %v9322_v57, %s7161_s15  ;;  %v3979_v6 = vadd.f32 %v5925_v55, %v9161_v4 }
 0x46a   : > { %v4271_v21 = vrot.slane %v4181_v16, 2  ;;  %v4268_v39 = vsel %vm572_vm2, %v4265_v44, %v4267_v14  ;;  %v4270_v50 = vsel %vm572_vm2, %v4267_v14, %v4269_v12  ;;  %v5928_v58 = vadd.f32 %v5927_v17, %v5926_v13 }
 0x46b   : > { %v9328_v63 = vmax.f32 %v4179_v19, %v4270_v50  ;;  %v5929_v8 = vpop.f32.mrf.mxu0  ;;  %v9330_v53 = vmax.f32 %v4178_v0, %v4268_v39 }
 0x46c   : > { %v4272_v59 = vsel %vm572_vm2, %v4269_v12, %v4271_v21  ;;  %v6200_v52 = vpop.f32.mrf.mxu1  ;;  %v3982_v9 = vadd.f32 %v5928_v58, %v9161_v4 }
 0x46d   : > { %v5930_v18 = vpop.f32.mrf.mxu0  ;;  %4428 = vrot.lane.b32.xlu1 %v9328_v63, %s7161_s15  ;;  %4426 = vrot.lane.b32.xlu0 %v9330_v53, %s7161_s15  ;;  %v9338_v31 = vmax.f32 %v4180_v42, %v4272_v59 }
 0x46e   : > { %v5931_v38 = vadd.f32 %v5930_v18, %v5929_v8  ;;  %v4139_v45 = vpop.f32.mrf.mxu1 }
 0x46f   : > { %v5932_v29 = vpop.f32.mrf.mxu0  ;;  %v4140_v28 = vadd.f32 %v4139_v45, %v3979_v6 }
 0x470   : > { %v3987_v36 = vadd.f32 %v5931_v38, %v9161_v4  ;;  %v6201_v37 = vpop.f32.mrf.mxu1 }
 0x471   : > { %v4182_v47 = vmax.f32 %v4140_v28, 0.0  ;;  %v5933_v0 = vpop.f32.mrf.mxu0  ;;  %4430 = vrot.lane.b32.xlu0 %v9338_v31, %s7161_s15 }
 0x472   : > { %v4148_v1 = vadd.f32 %v6200_v52, %v3987_v36  ;;  %v5934_v7 = vadd.f32 %v5933_v0, %v5932_v29  ;;  %v4142_v33 = vpop.f32.mrf.mxu1 }
 0x473   : > { %v4273_v44 = vrot.slane %v4182_v47, 2  ;;  %v4143_v56 = vadd.f32 %v4142_v33, %v3982_v9 }
 0x474   : > { %v4184_v23 = vmax.f32 %v4148_v1, 0.0  ;;  %v3990_v48 = vadd.f32 %v5934_v7, %v9161_v4 }
 0x475   : > { %v4274_v42 = vsel %vm572_vm2, %v4271_v21, %v4273_v44  ;;  %v4183_v24 = vmax.f32 %v4143_v56, 0.0 }
 0x476   : > { %v4151_v20 = vadd.f32 %v6201_v37, %v3990_v48  ;;  %v9346_v19 = vmax.f32 %v4181_v16, %v4274_v42  ;;  %v4277_v13 = vrot.slane %v4184_v23, 2 }
 0x477   : > { %v4275_v12 = vrot.slane %v4183_v24, 2 }
 0x478   : > { %v4185_v14 = vmax.f32 %v4151_v20, 0.0  ;;  %4432 = vrot.lane.b32.xlu1 %v9346_v19, %s7161_s15 }
 0x479   : > { %v4276_v55 = vsel %vm572_vm2, %v4273_v44, %v4275_v12  ;;  %v4278_v17 = vsel %vm572_vm2, %v4275_v12, %v4277_v13 }
 0x47a   : > { %v4279_v39 = vrot.slane %v4185_v14, 2  ;;  %v9352_v50 = vmax.f32 %v4183_v24, %v4278_v17  ;;  %v9354_v4 = vmax.f32 %v4182_v47, %v4276_v55 }
 0x47c   : > { %v4280_v21 = vsel %vm572_vm2, %v4277_v13, %v4279_v39  ;;  %v4313_v16 = vsel %vm572_vm2, %v4279_v39, 0.0  ;;  %4436 = vrot.lane.b32.xlu1 %v9352_v50, %s7161_s15  ;;  %4434 = vrot.lane.b32.xlu0 %v9354_v4, %s7161_s15 }
 0x47d   : > { %v9362_v8 = vmax.f32 %v4185_v14, %v4313_v16  ;;  %v9364_v59 = vmax.f32 %v4184_v23, %v4280_v21 }
 0x47f   : > { %v4381_v52 = vpop.permute.xlu1 %4380  ;;  %v4379_v58 = vpop.permute.xlu0 %4378 }
 0x480   : > { %v4475_v18 = vsel %vm1224_vm6, %v4381_v52, 0.0  ;;  %v4474_v6 = vsel %vm1224_vm6, %v4379_v58, 0.0  ;;  %4440 = vrot.lane.b32.xlu1 %v9362_v8, %s7161_s15  ;;  %4438 = vrot.lane.b32.xlu0 %v9364_v59, %s7161_s15 }
 0x481   : > { %v4507_v38 = vmax.f32 %v9184_v25, %v4475_v18  ;;  %v4506_v45 = vmax.f32 %v9186_v41, %v4474_v6 }
 0x483   : > { %6226 = vmatprep.mubr.msk.f32.mxu1 %vm4550_vm1, %v4506_v45  ;;  %v4383_v29 = vpop.permute.xlu0 %4382 }
 0x484   : > { %v4476_v28 = vsel %vm1224_vm6, %v4383_v29, 0.0  ;;  %6227 = vmatmul.mubr.msk.f32.vlgmr.msra.gmra.mxu1 %vm4550_vm1, %v4507_v38 }
 0x485   : > { %v4508_v36 = vmax.f32 %v9194_v62, %v4476_v28 }
 0x487   : > { %6229 = vmatprep.mubr.msk.f32.mxu1 %vm4550_vm1, %v4508_v36 }
 0x48a   : > { %v4385_v37 = vpop.permute.xlu1 %4384 }
 0x48b   : > { %v4477_v47 = vsel %vm1224_vm6, %v4385_v37, 0.0 }
 0x48c   : > { %v4509_v0 = vmax.f32 %v9202_v40, %v4477_v47 }
 0x48e   : > { %v4389_v9 = vpop.permute.xlu1 %4388  ;;  %6230 = vmatmul.mubr.msk.f32.gmra.mxu1 %vm4550_vm1, %v4509_v0  ;;  %v4387_v25 = vpop.permute.xlu0 %4386 }
 0x48f   : > { %v4479_v41 = vsel %vm1224_vm6, %v4389_v9, 0.0  ;;  %v4478_v1 = vsel %vm1224_vm6, %v4387_v25, 0.0 }
 0x490   : > { %v4511_v7 = vmax.f32 %v9208_v61, %v4479_v41  ;;  %v4510_v33 = vmax.f32 %v9210_v26, %v4478_v1 }
 0x492   : > { %6232 = vmatprep.mubr.msk.f32.mxu1 %vm4550_vm1, %v4510_v33  ;;  %v4391_v62 = vpop.permute.xlu0 %4390 }
 0x493   : > { %v4480_v44 = vsel %vm1224_vm6, %v4391_v62, 0.0  ;;  %6233 = vmatmul.mubr.msk.f32.gmra.mxu1 %vm4550_vm1, %v4511_v7 }
 0x494   : > { %v4512_v40 = vmax.f32 %v9218_v49, %v4480_v44 }
 0x496   : > { %6235 = vmatprep.mubr.msk.f32.mxu1 %vm4550_vm1, %v4512_v40 }
 0x49b   : > { %v4393_v56 = vpop.permute.xlu1 %4392 }
 0x49c   : > { %v4481_v23 = vsel %vm1224_vm6, %v4393_v56, 0.0 }
 0x49d   : > { %v4513_v48 = vmax.f32 %v9226_v3, %v4481_v23 }
 0x49f   : > { %v4397_v42 = vpop.permute.xlu1 %4396  ;;  %6236 = vmatmul.mubr.msk.f32.gmra.mxu1 %vm4550_vm1, %v4513_v48  ;;  %v4395_v61 = vpop.permute.xlu0 %4394 }
 0x4a0   : > { %v4483_v26 = vsel %vm1224_vm6, %v4397_v42, 0.0  ;;  %v4482_v24 = vsel %vm1224_vm6, %v4395_v61, 0.0 }
 0x4a1   : > { %v4515_v20 = vmax.f32 %v9232_v46, %v4483_v26  ;;  %v4514_v13 = vmax.f32 %v9234_v10, %v4482_v24 }
 0x4a3   : > { %6238 = vmatprep.mubr.msk.f32.mxu1 %vm4550_vm1, %v4514_v13  ;;  %v4399_v49 = vpop.permute.xlu0 %4398 }
 0x4a4   : > { %v4484_v12 = vsel %vm1224_vm6, %v4399_v49, 0.0  ;;  %6239 = vmatmul.mubr.msk.f32.gmra.mxu1 %vm4550_vm1, %v4515_v20 }
 0x4a5   : > { %v4516_v3 = vmax.f32 %v9242_v54, %v4484_v12 }
 0x4a7   : > { %6241 = vmatprep.mubr.msk.f32.mxu1 %vm4550_vm1, %v4516_v3 }
 0x4aa   : > { %v4401_v14 = vpop.permute.xlu1 %4400 }
 0x4ab   : > { %v4485_v55 = vsel %vm1224_vm6, %v4401_v14, 0.0 }
 0x4ac   : > { %v4517_v17 = vmax.f32 %v9250_v22, %v4485_v55 }
 0x4ae   : > { %v4405_v39 = vpop.permute.xlu1 %4404  ;;  %6242 = vmatmul.mubr.msk.f32.gmra.mxu1 %vm4550_vm1, %v4517_v17  ;;  %v4403_v46 = vpop.permute.xlu0 %4402 }
 0x4af   : > { %v4487_v10 = vsel %vm1224_vm6, %v4405_v39, 0.0  ;;  %v4486_v21 = vsel %vm1224_vm6, %v4403_v46, 0.0 }
 0x4b0   : > { %v4519_v16 = vmax.f32 %v9256_v2, %v4487_v10  ;;  %v4518_v52 = vmax.f32 %v9258_v15, %v4486_v21  ;;  %v9943_v10 = vld [vmem:[#allocation8_spill] sm:$0xff] }
 0x4b1   : > { %v9472_v21 = vmul.u32 32, %v9943_v10 }
 0x4b2   : > { %6244 = vmatprep.mubr.msk.f32.mxu1 %vm4550_vm1, %v4518_v52  ;;  %v4407_v54 = vpop.permute.xlu0 %4406 }
 0x4b3   : > { %v4488_v58 = vsel %vm1224_vm6, %v4407_v54, 0.0  ;;  %6245 = vmatmul.mubr.msk.f32.gmra.mxu1 %vm4550_vm1, %v4519_v16  ;;  %v9478_v52 = vadd.s32 4, %v9472_v21 }
 0x4b4   : > { %v4520_v22 = vmax.f32 %v9266_v11, %v4488_v58 }
 0x4b6   : > { %6247 = vmatprep.mubr.msk.f32.mxu1 %vm4550_vm1, %v4520_v22 }
 0x4bb   : > { %v4409_v18 = vpop.permute.xlu1 %4408 }
 0x4bc   : > { %v4489_v6 = vsel %vm1224_vm6, %v4409_v18, 0.0 }
 0x4bd   : > { %v4521_v38 = vmax.f32 %v9274_v32, %v4489_v6 }
 0x4bf   : > { %v4413_v45 = vpop.permute.xlu1 %4412  ;;  %6248 = vmatmul.mubr.msk.f32.gmra.mxu1 %vm4550_vm1, %v4521_v38  ;;  %v4411_v2 = vpop.permute.xlu0 %4410 }
 0x4c0   : > { %v4491_v15 = vsel %vm1224_vm6, %v4413_v45, 0.0  ;;  %v4490_v29 = vsel %vm1224_vm6, %v4411_v2, 0.0 }
 0x4c1   : > { %v4523_v28 = vmax.f32 %v9280_v51, %v4491_v15  ;;  %v4522_v36 = vmax.f32 %v9282_v27, %v4490_v29  ;;  %v9511_v29 = vadd.s32 8, %v9472_v21 }
 0x4c3   : > { %6250 = vmatprep.mubr.msk.f32.mxu1 %vm4550_vm1, %v4522_v36  ;;  %v4415_v11 = vpop.permute.xlu0 %4414 }
 0x4c4   : > { %v4492_v37 = vsel %vm1224_vm6, %v4415_v11, 0.0  ;;  %6251 = vmatmul.mubr.msk.f32.gmra.mxu1 %vm4550_vm1, %v4523_v28  ;;  %v9514_v28 = vadd.s32 12, %v9472_v21 }
 0x4c5   : > { %v4524_v32 = vmax.f32 %v9290_v5, %v4492_v37 }
 0x4c7   : > { %6253 = vmatprep.mubr.msk.f32.mxu1 %vm4550_vm1, %v4524_v32 }
 0x4ca   : > { %v4417_v47 = vpop.permute.xlu1 %4416 }
 0x4cb   : > { %v4493_v0 = vsel %vm1224_vm6, %v4417_v47, 0.0 }
 0x4cc   : > { %v4525_v9 = vmax.f32 %v9298_v43, %v4493_v0 }
 0x4ce   : > { %v4421_v25 = vpop.permute.xlu1 %4420  ;;  %6254 = vmatmul.mubr.msk.f32.gmra.mxu1 %vm4550_vm1, %v4525_v9  ;;  %v4419_v51 = vpop.permute.xlu0 %4418 }
 0x4cf   : > { %v4495_v27 = vsel %vm1224_vm6, %v4421_v25, 0.0  ;;  %v4494_v41 = vsel %vm1224_vm6, %v4419_v51, 0.0 }
 0x4d0   : > { %v4527_v1 = vmax.f32 %v9304_v35, %v4495_v27  ;;  %v4526_v7 = vmax.f32 %v9306_v30, %v4494_v41 }
 0x4d2   : > { %6256 = vmatprep.mubr.msk.f32.mxu1 %vm4550_vm1, %v4526_v7  ;;  %v4423_v5 = vpop.permute.xlu0 %4422 }
 0x4d3   : > { %v4496_v33 = vsel %vm1224_vm6, %v4423_v5, 0.0  ;;  %6257 = vmatmul.mubr.msk.f32.gmra.mxu1 %vm4550_vm1, %v4527_v1 }
 0x4d4   : > { %v4528_v43 = vmax.f32 %v9314_v60, %v4496_v33 }
 0x4d6   : > { %6259 = vmatprep.mubr.msk.f32.mxu1 %vm4550_vm1, %v4528_v43 }
 0x4db   : > { %v4425_v62 = vpop.permute.xlu1 %4424 }
 0x4dc   : > { %v4497_v44 = vsel %vm1224_vm6, %v4425_v62, 0.0 }
 0x4dd   : > { %v4529_v40 = vmax.f32 %v9322_v57, %v4497_v44 }
 0x4df   : > { %v4429_v56 = vpop.permute.xlu1 %4428  ;;  %6260 = vmatmul.mubr.msk.f32.gmra.mxu1 %vm4550_vm1, %v4529_v40  ;;  %v4427_v35 = vpop.permute.xlu0 %4426 }
 0x4e0   : > { %v4499_v30 = vsel %vm1224_vm6, %v4429_v56, 0.0  ;;  %v4498_v23 = vsel %vm1224_vm6, %v4427_v35, 0.0 }
 0x4e1   : > { %v4531_v48 = vmax.f32 %v9328_v63, %v4499_v30  ;;  %v4530_v42 = vmax.f32 %v9330_v53, %v4498_v23  ;;  %v7052_v30 = vld [vmem:[%s9873_s7 + $0x38] sm:$0xff]   ;;  %v7163_v23 = vmov 0  }
 0x4e3   : > { %6262 = vmatprep.mubr.msk.f32.mxu1 %vm4550_vm1, %v4530_v42  ;;  %v4431_v60 = vpop.permute.xlu0 %4430  ;;  %v7054_v42 = vld [vmem:[%s9873_s7 + $0x28] sm:$0xff]  }
 0x4e4   : > { %v4500_v61 = vsel %vm1224_vm6, %v4431_v60, 0.0  ;;  %6263 = vmatmul.mubr.msk.f32.gmra.mxu1 %vm4550_vm1, %v4531_v48  ;;  %v7053_v48 = vld [vmem:[%s9873_s7 + $0x30] sm:$0xff]   ;;  %v7055_v60 = vld [vmem:[%s9873_s7 + $0x20] sm:$0xff]  }
 0x4e5   : > { %v4532_v57 = vmax.f32 %v9338_v31, %v4500_v61  ;;  %v7056_v61 = vld [vmem:[%s9873_s7 + $0x18] sm:$0xff]  }
 0x4e7   : > { %6265 = vmatprep.mubr.msk.f32.mxu1 %vm4550_vm1, %v4532_v57  ;;  %v7057_v57 = vld [vmem:[%s9873_s7 + $0x10] sm:$0xff]  }
 0x4ea   : > { %v4433_v26 = vpop.permute.xlu1 %4432 }
 0x4eb   : > { %v4501_v24 = vsel %vm1224_vm6, %v4433_v26, 0.0 }
 0x4ec   : > { %v4533_v20 = vmax.f32 %v9346_v19, %v4501_v24 }
 0x4ee   : > { %v4437_v13 = vpop.permute.xlu1 %4436  ;;  %6266 = vmatmul.mubr.msk.f32.gmra.mxu1 %vm4550_vm1, %v4533_v20  ;;  %v4435_v63 = vpop.permute.xlu0 %4434 }
 0x4ef   : > { %v4503_v53 = vsel %vm1224_vm6, %v4437_v13, 0.0  ;;  %v4502_v49 = vsel %vm1224_vm6, %v4435_v63, 0.0  ;;  %v7058_v13 = vld [vmem:[%s9873_s7 + $0x8] sm:$0xff]  }
 0x4f0   : > { %v4535_v12 = vmax.f32 %v9352_v50, %v4503_v53  ;;  %v4534_v3 = vmax.f32 %v9354_v4, %v4502_v49  ;;  %v9942_v4 = vlaneseq }
 0x4f2   : > { %v4441_v31 = vpop.permute.xlu1 %4440  ;;  %6268 = vmatprep.mubr.msk.f32.mxu1 %vm4550_vm1, %v4534_v3  ;;  %v4439_v14 = vpop.permute.xlu0 %4438  ;;  %v9469_v46 = vand.u32 127, %v9942_v4  ;;  %v7060_v3 = vld [vmem:[%s9873_s7 + $0x58] sm:$0xff]  }
 0x4f3   : > { %v4505_v55 = vsel %vm1224_vm6, %v4441_v31, 0.0  ;;  %v4504_v19 = vsel %vm1224_vm6, %v4439_v14, 0.0  ;;  %6269 = vmatmul.mubr.msk.f32.gmra.mxu1 %vm4550_vm1, %v4535_v12  ;;  %v7059_v12 = vld [vmem:[%s9873_s7] sm:$0xff]   ;;  %v7061_v31 = vld [vmem:[%s9873_s7 + $0x50] sm:$0xff]   ;;  %v7062_v14 = vld [vmem:[%s9873_s7 + $0x48] sm:$0xff]  }
 0x4f4   : > { %v4537_v17 = vmax.f32 %v9362_v8, %v4505_v55  ;;  %v4536_v39 = vmax.f32 %v9364_v59, %v4504_v19  ;;  %v9475_v16 = vadd.s32 128, %v9469_v46  ;;  %vm4955_vm4 = vcmp.eq.s32.totalorder %v9469_v46, %v9478_v52  ;;  %v7063_v55 = vld [vmem:[%s9873_s7 + $0x40] sm:$0xff]   ;;  %v7064_v19 = vld [vmem:[%s9875_s9 + $0x38] ss:$0 sps:$4 sm:$0xff]  }
 0x4f5   : > { %v7162_v59 = vmov 1.0   ;;  %vm4878_vm7 = vcmp.eq.s32.totalorder %v9469_v46, %v9472_v21  ;;  %vm5032_vm8 = vcmp.eq.s32.totalorder %v9469_v46, %v9511_v29  ;;  %vm5109_vm12 = vcmp.eq.s32.totalorder %v9469_v46, %v9514_v28 }
 0x4f6   : > { %6271 = vmatprep.mubr.msk.f32.mxu1 %vm4550_vm1, %v4536_v39  ;;  %vm4956_vm5 = vcmp.eq.s32.totalorder %v9475_v16, %v9478_v52  ;;  %vm4879_vm6 = vcmp.eq.s32.totalorder %v9475_v16, %v9472_v21  ;;  %vm5033_vm9 = vcmp.eq.s32.totalorder %v9475_v16, %v9511_v29  ;;  %vm5110_vm10 = vcmp.eq.s32.totalorder %v9475_v16, %v9514_v28  ;;  %v7065_v39 = vld [vmem:[%s9875_s9 + $0x30] sm:$0xff]   ;;  %v7066_v52 = vld [vmem:[%s9875_s9 + $0x28] sm:$0xff]   ;;  %v7071_v28 = vld [vmem:[%s9875_s9] sm:$0xff]  }
 0x4f7   : > { %6272 = vmatmul.mubr.msk.f32.gmra.mxu1 %vm4550_vm1, %v4537_v17  ;;  %5775 = vmatprep.mubr.msk.f32.mxu0 %vm4879_vm6, %v7162_v59  ;;  %v5424_v17 = vsel %vm704_vm3, %v7064_v19, 0  ;;  %vm5197_vm3 = vcmask 392192   ;;  %v7070_v29 = vld [vmem:[%s9875_s9 + $0x8] sm:$0xff]  }
 0x4f8   : > { %5779 = vmatprep.mubr.msk.f32.mxu1 %vm4956_vm5, %v7162_v59 }
 0x544   : > { %v9466_v50 = vpop.f32.mrf.mxu1 }
 0x546   : > { %v9480_v8 = vpop.f32.mrf.mxu1 }
 0x54e   : > { %v9492_v54 = vpop.f32.mrf.mxu1 }
 0x550   : > { %v9494_v58 = vpop.f32.mrf.mxu1 }
 0x553   : > { %v9496_v22 = vpop.f32.mrf.mxu1 }
 0x555   : > { %v9498_v18 = vpop.f32.mrf.mxu1 }
 0x55f   : > { %v9500_v6 = vpop.f32.mrf.mxu1 }
 0x561   : > { %v9502_v38 = vpop.f32.mrf.mxu1 }
 0x564   : > { %v9504_v45 = vpop.f32.mrf.mxu1 }
 0x566   : > { %v9506_v2 = vpop.f32.mrf.mxu1 }
 0x56e   : > { %v9508_v15 = vpop.f32.mrf.mxu1 }
 0x570   : > { %v9524_v36 = vpop.f32.mrf.mxu1 }
 0x573   : > { %v9526_v11 = vpop.f32.mrf.mxu1 }
 0x575   : > { %v9528_v37 = vpop.f32.mrf.mxu1 }
 0x57f   : > { %v9530_v32 = vpop.f32.mrf.mxu1 }
 0x581   : > { %v9532_v47 = vpop.f32.mrf.mxu1 }
 0x584   : > { %v9534_v0 = vpop.f32.mrf.mxu1 }
 0x586   : > { %v9536_v9 = vpop.f32.mrf.mxu1 }
 0x58e   : > { %v9538_v25 = vpop.f32.mrf.mxu1 }
 0x590   : > { %v9540_v51 = vpop.f32.mrf.mxu1 }
 0x593   : > { %v9542_v27 = vpop.f32.mrf.mxu1 }
 0x595   : > { %v9544_v41 = vpop.f32.mrf.mxu1 }
 0x59f   : > { %v9546_v1 = vpop.f32.mrf.mxu1 }
 0x5a1   : > { %v9548_v7 = vpop.f32.mrf.mxu1 }
 0x5a4   : > { %v9550_v5 = vpop.f32.mrf.mxu1 }
 0x5a6   : > { %v9552_v33 = vpop.f32.mrf.mxu1 }
 0x5ae   : > { %v9554_v43 = vpop.f32.mrf.mxu1 }
 0x5b0   : > { %v9556_v62 = vpop.f32.mrf.mxu1 }
 0x5b3   : > { %v9558_v44 = vpop.f32.mrf.mxu1 }
 0x5b5   : > { %v9560_v40 = vpop.f32.mrf.mxu1 }
 0x5b7   : > { %v9562_v56 = vpop.f32.mrf.mxu1 }
 0x5b8   : > { %6002 = vmatprep.subr.mxu0 %v9562_v56  ;;  %6037 = vmatprep.subr.mxu1 %v9562_v56 }
 0x5b9   : > { %v9566_v35 = vpop.f32.mrf.mxu1  ;;  %6003 = vmatpush3.msra.mxu0 %v9530_v32  ;;  %6038 = vmatpush3.msra.mxu1 %v9530_v32 }
 0x5ba   : > { %6004 = vmatprep.subr.mxu0 %v9566_v35  ;;  %6039 = vmatprep.subr.mxu1 %v9566_v35 }
 0x5bb   : > { %6005 = vmatpush3.msra.mxu0 %v9532_v47  ;;  %6040 = vmatpush3.msra.mxu1 %v9532_v47 }
 0x5bc   : > { %6006 = vmatprep.subr.mxu0 %v9558_v44  ;;  %6041 = vmatprep.subr.mxu1 %v9558_v44 }
 0x5bd   : > { %6007 = vmatpush3.msra.mxu0 %v9526_v11  ;;  %6042 = vmatpush3.msra.mxu1 %v9526_v11 }
 0x5be   : > { %6008 = vmatprep.subr.mxu0 %v9560_v40  ;;  %6043 = vmatprep.subr.mxu1 %v9560_v40 }
 0x5bf   : > { %6009 = vmatpush3.msra.mxu0 %v9528_v37  ;;  %6044 = vmatpush3.msra.mxu1 %v9528_v37 }
 0x5c0   : > { %6010 = vmatprep.subr.mxu0 %v9554_v43  ;;  %6045 = vmatprep.subr.mxu1 %v9554_v43 }
 0x5c1   : > { %6011 = vmatpush3.msra.mxu0 %v9508_v15  ;;  %6046 = vmatpush3.msra.mxu1 %v9508_v15 }
 0x5c2   : > { %6012 = vmatprep.subr.mxu0 %v9556_v62  ;;  %6047 = vmatprep.subr.mxu1 %v9556_v62 }
 0x5c3   : > { %6013 = vmatpush3.msra.mxu0 %v9524_v36  ;;  %6048 = vmatpush3.msra.mxu1 %v9524_v36 }
 0x5c4   : > { %6014 = vmatprep.subr.mxu0 %v9550_v5  ;;  %6049 = vmatprep.subr.mxu1 %v9550_v5 }
 0x5c5   : > { %6015 = vmatpush3.msra.mxu0 %v9504_v45  ;;  %6050 = vmatpush3.msra.mxu1 %v9504_v45 }
 0x5c6   : > { %6016 = vmatprep.subr.mxu0 %v9552_v33  ;;  %6051 = vmatprep.subr.mxu1 %v9552_v33 }
 0x5c7   : > { %6017 = vmatpush3.msra.mxu0 %v9506_v2  ;;  %6052 = vmatpush3.msra.mxu1 %v9506_v2 }
 0x5c8   : > { %6018 = vmatprep.subr.mxu0 %v9546_v1  ;;  %6053 = vmatprep.subr.mxu1 %v9546_v1 }
 0x5c9   : > { %6019 = vmatpush3.msra.mxu0 %v9500_v6  ;;  %6054 = vmatpush3.msra.mxu1 %v9500_v6 }
 0x5ca   : > { %6020 = vmatprep.subr.mxu0 %v9548_v7  ;;  %6055 = vmatprep.subr.mxu1 %v9548_v7 }
 0x5cb   : > { %6021 = vmatpush3.msra.mxu0 %v9502_v38  ;;  %6056 = vmatpush3.msra.mxu1 %v9502_v38 }
 0x5cc   : > { %6022 = vmatprep.subr.mxu0 %v9542_v27  ;;  %6057 = vmatprep.subr.mxu1 %v9542_v27 }
 0x5cd   : > { %6023 = vmatpush3.msra.mxu0 %v9496_v22  ;;  %6058 = vmatpush3.msra.mxu1 %v9496_v22 }
 0x5ce   : > { %6024 = vmatprep.subr.mxu0 %v9544_v41  ;;  %6059 = vmatprep.subr.mxu1 %v9544_v41 }
 0x5cf   : > { %6025 = vmatpush3.msra.mxu0 %v9498_v18  ;;  %6060 = vmatpush3.msra.mxu1 %v9498_v18 }
 0x5d0   : > { %6026 = vmatprep.subr.mxu0 %v9538_v25  ;;  %6061 = vmatprep.subr.mxu1 %v9538_v25 }
 0x5d1   : > { %6027 = vmatpush3.msra.mxu0 %v9492_v54  ;;  %6062 = vmatpush3.msra.mxu1 %v9492_v54 }
 0x5d2   : > { %6028 = vmatprep.subr.mxu0 %v9540_v51  ;;  %6063 = vmatprep.subr.mxu1 %v9540_v51 }
 0x5d3   : > { %6029 = vmatpush3.msra.mxu0 %v9494_v58  ;;  %6064 = vmatpush3.msra.mxu1 %v9494_v58 }
 0x5d4   : > { %6030 = vmatprep.subr.mxu0 %v9534_v0  ;;  %6065 = vmatprep.subr.mxu1 %v9534_v0 }
 0x5d5   : > { %6031 = vmatpush3.msra.mxu0 %v9466_v50  ;;  %6066 = vmatpush3.msra.mxu1 %v9466_v50 }
 0x5d6   : > { %6032 = vmatprep.subr.mxu0 %v9536_v9  ;;  %6067 = vmatprep.subr.mxu1 %v9536_v9 }
 0x5d7   : > { %6033 = vmatpush3.msra.mxu0 %v9480_v8  ;;  %6068 = vmatpush3.msra.mxu1 %v9480_v8 }
 0x5d8   : > { %5780 = vmatmul.mubr.msk.f32.vlgmr.msra.gmra.mxu1 %vm4955_vm4, %v7162_v59  ;;  %6072 = vmatprep.subr.mxu0 %v9562_v56 }
 0x5d9   : > { %6107 = vmatprep.subr.mxu1 %v9562_v56  ;;  %5776 = vmatmul.mubr.msk.f32.vlgmr.msra.gmra.mxu0 %vm4878_vm7, %v7162_v59 }
 0x5da   : > { %6073 = vmatpush3.msra.mxu0 %v9530_v32  ;;  %6108 = vmatpush3.msra.mxu1 %v9530_v32  ;;  %v7072_v32 = vld [vmem:[%s9877_s11 + $0x18] sm:$0x3f]  }
 0x5db   : > { %6074 = vmatprep.subr.mxu0 %v9566_v35  ;;  %6109 = vmatprep.subr.mxu1 %v9566_v35 }
 0x5dc   : > { %6075 = vmatpush3.msra.mxu0 %v9532_v47  ;;  %6110 = vmatpush3.msra.mxu1 %v9532_v47 }
 0x5dd   : > { %6076 = vmatprep.subr.mxu0 %v9558_v44  ;;  %6111 = vmatprep.subr.mxu1 %v9558_v44 }
 0x5de   : > { %6077 = vmatpush3.msra.mxu0 %v9526_v11  ;;  %6112 = vmatpush3.msra.mxu1 %v9526_v11 }
 0x5df   : > { %6078 = vmatprep.subr.mxu0 %v9560_v40  ;;  %6113 = vmatprep.subr.mxu1 %v9560_v40 }
 0x5e0   : > { %6079 = vmatpush3.msra.mxu0 %v9528_v37  ;;  %6114 = vmatpush3.msra.mxu1 %v9528_v37 }
 0x5e1   : > { %6080 = vmatprep.subr.mxu0 %v9554_v43  ;;  %6115 = vmatprep.subr.mxu1 %v9554_v43 }
 0x5e2   : > { %6081 = vmatpush3.msra.mxu0 %v9508_v15  ;;  %6116 = vmatpush3.msra.mxu1 %v9508_v15 }
 0x5e3   : > { %6082 = vmatprep.subr.mxu0 %v9556_v62  ;;  %6117 = vmatprep.subr.mxu1 %v9556_v62 }
 0x5e4   : > { %6083 = vmatpush3.msra.mxu0 %v9524_v36  ;;  %6118 = vmatpush3.msra.mxu1 %v9524_v36  ;;  %v5789_v36 = vld [vmem:[%s9874_s8] ss:$0 sm:$0xff] }
 0x5e5   : > { %6084 = vmatprep.subr.mxu0 %v9550_v5  ;;  %6119 = vmatprep.subr.mxu1 %v9550_v5  ;;  %v5803_v5 = vld [vmem:[%s9876_s10] ss:$0 sm:$0xff] }
 0x5e6   : > { %6085 = vmatpush3.msra.mxu0 %v9504_v45  ;;  %6120 = vmatpush3.msra.mxu1 %v9504_v45 }
 0x5e7   : > { %6086 = vmatprep.subr.mxu0 %v9552_v33  ;;  %6121 = vmatprep.subr.mxu1 %v9552_v33 }
 0x5e8   : > { %6087 = vmatpush3.msra.mxu0 %v9506_v2  ;;  %6122 = vmatpush3.msra.mxu1 %v9506_v2 }
 0x5e9   : > { %6088 = vmatprep.subr.mxu0 %v9546_v1  ;;  %6123 = vmatprep.subr.mxu1 %v9546_v1  ;;  %v7074_v1 = vld [vmem:[%s9877_s11 + $0x8] sm:$0xff]  }
 0x5ea   : > { %6089 = vmatpush3.msra.mxu0 %v9500_v6  ;;  %6124 = vmatpush3.msra.mxu1 %v9500_v6 }
 0x5eb   : > { %6090 = vmatprep.subr.mxu0 %v9548_v7  ;;  %6125 = vmatprep.subr.mxu1 %v9548_v7  ;;  %v7075_v7 = vld [vmem:[%s9877_s11] sm:$0xff]  }
 0x5ec   : > { %6091 = vmatpush3.msra.mxu0 %v9502_v38  ;;  %6126 = vmatpush3.msra.mxu1 %v9502_v38 }
 0x5ed   : > { %6092 = vmatprep.subr.mxu0 %v9542_v27  ;;  %6127 = vmatprep.subr.mxu1 %v9542_v27 }
 0x5ee   : > { %6093 = vmatpush3.msra.mxu0 %v9496_v22  ;;  %6128 = vmatpush3.msra.mxu1 %v9496_v22 }
 0x5ef   : > { %6094 = vmatprep.subr.mxu0 %v9544_v41  ;;  %6129 = vmatprep.subr.mxu1 %v9544_v41  ;;  %v7073_v41 = vld [vmem:[%s9877_s11 + $0x10] sm:$0xff]  }
 0x5f0   : > { %6095 = vmatpush3.msra.mxu0 %v9498_v18  ;;  %6130 = vmatpush3.msra.mxu1 %v9498_v18 }
 0x5f1   : > { %6096 = vmatprep.subr.mxu0 %v9538_v25  ;;  %6131 = vmatprep.subr.mxu1 %v9538_v25 }
 0x5f2   : > { %6097 = vmatpush3.msra.mxu0 %v9492_v54  ;;  %6132 = vmatpush3.msra.mxu1 %v9492_v54  ;;  %v7069_v54 = vld [vmem:[%s9875_s9 + $0x10] sm:$0xff]  }
 0x5f3   : > { %6098 = vmatprep.subr.mxu0 %v9540_v51  ;;  %6133 = vmatprep.subr.mxu1 %v9540_v51  ;;  %v5511_v51 = vsel %vm572_vm2, %v7072_v32, 0  ;;  %vm5506_vm2 = vcmask 490496  }
 0x5f4   : > { %6099 = vmatpush3.msra.mxu0 %v9494_v58  ;;  %6134 = vmatpush3.msra.mxu1 %v9494_v58 }
 0x5f5   : > { %6100 = vmatprep.subr.mxu0 %v9534_v0  ;;  %6135 = vmatprep.subr.mxu1 %v9534_v0 }
 0x5f6   : > { %6101 = vmatpush3.msra.mxu0 %v9466_v50  ;;  %6136 = vmatpush3.msra.mxu1 %v9466_v50 }
 0x5f7   : > { %6102 = vmatprep.subr.mxu0 %v9536_v9  ;;  %6137 = vmatprep.subr.mxu1 %v9536_v9 }
 0x5f8   : > { %6103 = vmatpush3.msra.mxu0 %v9480_v8  ;;  %5783 = vmatprep.mubr.msk.f32.mxu0 %vm5033_vm9, %v7162_v59 }
 0x5f9   : > { %6138 = vmatpush3.msra.mxu1 %v9480_v8  ;;  %5787 = vmatprep.mubr.msk.f32.mxu1 %vm5110_vm10, %v7162_v59  ;;  %v7067_v8 = vld [vmem:[%s9875_s9 + $0x20] sm:$0xff]  }
 0x5fa   : > { %5784 = vmatmul.mubr.msk.f32.vlgmr.msra.gmra.mxu0 %vm5032_vm8, %v7162_v59  ;;  %5788 = vmatmul.mubr.msk.f32.vlgmr.msra.gmra.mxu1 %vm5109_vm12, %v7162_v59  ;;  %v7068_v59 = vld [vmem:[%s9875_s9 + $0x18] sm:$0xff]  }
 0x5fb   : > { %6274 = vmatprep.subr.bf16.mxu1 %v9941_v34  ;;  %5310 = vmatprep.subr.bf16.mxu0 %v7163_v23 }
 0x5fc   : > { %5311 = vmatpush1.bf16.msra.mxu0 %v7052_v30  ;;  %6275 = vmatpush3.bf16.msra.mxu1 %v5424_v17 }
 0x5fd   : > { %5312 = vmatprep.subr.bf16.mxu0 %v7163_v23  ;;  %6276 = vmatprep.subr.bf16.mxu1 %v9941_v34 }
 0x600   : > { %5313 = vmatpush1.bf16.msra.mxu0 %v7053_v48  ;;  %6277 = vmatpush3.bf16.msra.mxu1 %v7065_v39 }
 0x601   : > { %5314 = vmatprep.subr.bf16.mxu0 %v7163_v23  ;;  %6278 = vmatprep.subr.bf16.mxu1 %v9941_v34 }
 0x604   : > { %5315 = vmatpush1.bf16.msra.mxu0 %v7054_v42  ;;  %6279 = vmatpush3.bf16.msra.mxu1 %v7066_v52 }
 0x605   : > { %5316 = vmatprep.subr.bf16.mxu0 %v7163_v23  ;;  %6280 = vmatprep.subr.bf16.mxu1 %v9941_v34 }
 0x608   : > { %5317 = vmatpush1.bf16.msra.mxu0 %v7055_v60  ;;  %6281 = vmatpush3.bf16.msra.mxu1 %v7067_v8 }
 0x609   : > { %5318 = vmatprep.subr.bf16.mxu0 %v7163_v23  ;;  %6282 = vmatprep.subr.bf16.mxu1 %v9941_v34 }
 0x60c   : > { %5319 = vmatpush1.bf16.msra.mxu0 %v7056_v61  ;;  %6283 = vmatpush3.bf16.msra.mxu1 %v7068_v59 }
 0x60d   : > { %5320 = vmatprep.subr.bf16.mxu0 %v7163_v23  ;;  %6284 = vmatprep.subr.bf16.mxu1 %v9941_v34 }
 0x610   : > { %5321 = vmatpush1.bf16.msra.mxu0 %v7057_v57  ;;  %6285 = vmatpush3.bf16.msra.mxu1 %v7069_v54 }
 0x611   : > { %5322 = vmatprep.subr.bf16.mxu0 %v7163_v23  ;;  %6286 = vmatprep.subr.bf16.mxu1 %v9941_v34 }
 0x614   : > { %5323 = vmatpush1.bf16.msra.mxu0 %v7058_v13  ;;  %6287 = vmatpush3.bf16.msra.mxu1 %v7070_v29 }
 0x615   : > { %5324 = vmatprep.subr.bf16.mxu0 %v7163_v23  ;;  %6288 = vmatprep.subr.bf16.mxu1 %v9941_v34 }
 0x618   : > { %5325 = vmatpush1.bf16.msra.mxu0 %v7059_v12  ;;  %6289 = vmatpush3.bf16.msra.mxu1 %v7071_v28 }
 0x619   : > { %5334 = vmatprep.subr.bf16.mxu0 %v7163_v23  ;;  %6294 = vmatprep.subr.bf16.mxu1 %v9941_v34 }
 0x61c   : > { %5335 = vmatpush2.bf16.msra.mxu0 %v7060_v3 }
 0x61d   : > { %5336 = vmatprep.subr.bf16.mxu0 %v7163_v23 }
 0x620   : > { %5337 = vmatpush2.bf16.msra.mxu0 %v7061_v31 }
 0x621   : > { %5338 = vmatprep.subr.bf16.mxu0 %v7163_v23 }
 0x624   : > { %5339 = vmatpush2.bf16.msra.mxu0 %v7062_v14 }
 0x625   : > { %5340 = vmatprep.subr.bf16.mxu0 %v7163_v23 }
 0x628   : > { %5341 = vmatpush2.bf16.msra.mxu0 %v7063_v55 }
 0x698   : > { %v6069_v26 = vpop.f32.mrf.mxu1 }
 0x699   : > { %v6034_v24 = vpop.f32.mrf.mxu0 }
 0x69a   : > { %v6070_v20 = vpop.f32.mrf.mxu1 }
 0x69b   : > { %v6071_v63 = vadd.f32 %v6070_v20, %v6069_v26  ;;  %v6035_v53 = vpop.f32.mrf.mxu0 }
 0x69c   : > { %v6036_v49 = vadd.f32 %v6035_v53, %v6034_v24 }
 0x69d   : > { %5186 = vrot.lane.b32.xlu0 %v6071_v63, %s7164_s21 }
 0x6ba   : > { %v6104_v50 = vpop.f32.mrf.mxu0  ;;  %v6139_v4 = vpop.f32.mrf.mxu1 }
 0x6bc   : > { %v6105_v46 = vpop.f32.mrf.mxu0  ;;  %v6140_v10 = vpop.f32.mrf.mxu1 }
 0x6bd   : > { %v6106_v21 = vadd.f32 %v6105_v46, %v6104_v50  ;;  %v6141_v16 = vadd.f32 %v6140_v10, %v6139_v4 }
 0x6bf   : > { %5194 = vrot.lane.b32.xlu0 %v6141_v16, %s7157_s14  ;;  %5190 = vrot.lane.b32.xlu1 %v6106_v21, %s7165_s27  ;;  %s5568_s14 = sshll.u32 %s434_s20, 4  ;;  %s5555_s27 = scalar_lea.sflag [#allocation3], %s432_s24  ;;  %s9827_s14 = int_to_ptr.vmem [resolvable:$true] %s5568_s14 }
 0x6c0   : > { %s7089_s21 = scalar_lea.vmem %s9827_s14, 128  ;;  %p7096_p0 = scmp.lt.s32.totalorder %s9827_s14, %s7094_s16 }
 0x6c1   : > { %p7090_p11 = scmp.ne.s32.totalorder %s9827_s14, %s7089_s21  ;;  %p7097_p1 = scmp.lt.s32.totalorder %s7095_s22, %s7089_s21 }
 0x6c3   : > { %p7091_p12 = pnand %p7090_p11, %p7276_p5  ;;  %p7098_p2 = por %p7097_p1, %p7096_p0 }
 0x6c5   : > { %p7092_p13 = pneg %p7091_p12 }
 0x6c7   : > { %p7099_p3 = pnand %p7098_p2, %p7092_p13 }
 0x70f   : > { %v5187_v58 = vpop.permute.xlu0 %5186 }
 0x710   : > { %v5198_v22 = vsel %vm5197_vm3, %v6036_v49, %v5187_v58 }
 0x731   : > { %v5195_v18 = vpop.permute.xlu0 %5194  ;;  %v5191_v6 = vpop.permute.xlu1 %5190 }
 0x732   : > { %v5199_v38 = vsel %vm4550_vm1, %v5198_v22, %v5191_v6  ;;  %v5200_v45 = vsel %vm2476_vm11, %v5191_v6, %v5195_v18  ;;  %vm7166_vm11 = vmmov 0  }
 0x733   : > { %v5201_v2 = vpack.c.bf16 %v5199_v38, %v5199_v38  ;;  %v5202_v15 = vpack.c.bf16 %v5200_v45, %v5200_v45  ;;  %6290 = vmatprep.mubr.msk.bf16.mxu1 %vm7166_vm11, %v9941_v34 }
 0x735   : > { %5802 = vmatprep.mubr.msk.bf16.mxu0 %vm5306_vm13, %v5202_v15 }
 0x736   : > { %5343 = vmatmul.mubr.bf16.vlgmr.msra.gmra.mxu0 %v5201_v2 }
 0x7f6   : > { %v5344_v11 = vpop.f32.mrf.mxu0 }
 0x7f7   : > { %v5345_v37 = vadd.f32 %v5789_v36, %v5344_v11 }
 0x7f8   : > { %v5346_v47 = vpop.f32.mrf.mxu0 }
 0x7f9   : > { %v5350_v0 = vmax.f32 %v5345_v37, 0.0 }
 0x7fa   : > { %v5347_v9 = vpop.f32.mrf.mxu0 }
 0x7fb   : > { %v5351_v25 = vpack.c.bf16 %v5350_v0, %v5350_v0 }
 0x7fc   : > { %v5348_v27 = vpop.f32.mrf.mxu0 }
 0x7fd   : > { %6291 = vmatmul.mubr.msk.bf16.vlgmr.msra.gmra.mxu1 %vm5419_vm14, %v5351_v25 }
 0x7fe   : > { %6295 = vmatpush3.bf16.msra.mxu1 %v5511_v51  ;;  %6302 = vmatprep.mubr.msk.bf16.mxu1 %vm7166_vm11, %v9941_v34 }
 0x7ff   : > { %6296 = vmatprep.subr.bf16.mxu1 %v9941_v34 }
 0x802   : > { %6297 = vmatpush3.bf16.msra.mxu1 %v7073_v41 }
 0x803   : > { %6298 = vmatprep.subr.bf16.mxu1 %v9941_v34 }
 0x806   : > { %6299 = vmatpush3.bf16.msra.mxu1 %v7074_v1 }
 0x807   : > { %6300 = vmatprep.subr.bf16.mxu1 %v9941_v34  ;;  %v5813_v34 = vld [vmem:[%s9878_s12] ss:$0 sm:$0xff] }
 0x80a   : > { %6301 = vmatpush3.bf16.msra.mxu1 %v7075_v7 }
 0x8bd   : > { %v5460_v33 = vpop.f32.mrf.mxu1 }
 0x8be   : > { %v5461_v43 = vadd.f32 %v5803_v5, %v5460_v33 }
 0x8bf   : > { %v6292_v62 = vpop.f32.mrf.mxu1 }
 0x8c0   : > { %v5466_v44 = vmax.f32 %v5461_v43, 0.0 }
 0x8c1   : > { %v5463_v40 = vpop.f32.mrf.mxu1 }
 0x8c2   : > { %v5467_v56 = vpack.c.bf16 %v5466_v44, %v5466_v44 }
 0x8c3   : > { %v6293_v35 = vpop.f32.mrf.mxu1 }
 0x8c4   : > { %6303 = vmatmul.mubr.msk.bf16.vlgmr.msra.gmra.mxu1 %vm5506_vm2, %v5467_v56 }
 0x984   : > { %v5547_v30 = vpop.f32.mrf.mxu1 }
 0x985   : > { %v5548_v23 = vadd.f32 %v5813_v34, %v5547_v30 }
 0x986   : > { %v6304_v48 = vpop.f32.mrf.mxu1 }
 0x987   : > { %5553 = vst [vmem:[%s434_s20] sm:$0xff] %v5548_v23 }
 0x988   : > { %v5550_v42 = vpop.f32.mrf.mxu1 }
 0x989   : > { %7102 = shalt.err (!%p7099_p3)
}
 0x98a   : > { %s7103_s17 = scalar_lea.hbm %s9825_s23, 128  ;;  %s7107_s30 = scalar_lea.hbm %s9879_s13, 256 }
 0x98b   : > { %p7104_p4 = scmp.ne.s32.totalorder %s9825_s23, %s7103_s17  ;;  %p7108_p9 = scmp.lt.s32.totalorder %s9825_s23, %s9879_s13 }
 0x98c   : > { %p7109_p10 = scmp.lt.s32.totalorder %s7107_s30, %s7103_s17 }
 0x98d   : > { %p7105_p7 = pnand %p7104_p4, %p7276_p5 }
 0x98e   : > { %p7110_p11 = por %p7109_p10, %p7108_p9 }
 0x98f   : > { %p7106_p8 = pneg %p7105_p7 }
 0x991   : > { %p7111_p12 = pnand %p7110_p11, %p7106_p8 }
 0x993   : > { %7114 = shalt.err (!%p7111_p12)
}
 0x994   : > { %6307 = dma.vmem_to_hbm [thread:$0]  (%p7276_p5), %s9827_s14, 128, %s9825_s23, %s5555_s27   ;;  %v6305_v60 = vpop.f32.mrf.mxu1 }
 0x995 PF: > { %p6313_p13 = scmp.ge.s32.totalorder %s7149_s28, 2  ;;  %s5580_s21 = sand.u32 1, %s7137_s25  }
 0x996   : > { %s5581_s16 = scalar_lea.sflag [#allocation3], %s5580_s21 }
 0x997   : > { %p6310_p0 = pnand %p6313_p13, %p7280_p6 }
 0x999   : > { %p6311_p1 = pneg %p6310_p0 }
 0x99b   : > { %7132 = dma.done.wait (%p6311_p1), %s5581_s16, 128  }
 0x99c   : > { %7134 = vsyncadd (%p6311_p1), %s5581_s16, 4294967168  ;;  %s9944_s28 = sld [smem:[#allocation6_spill]]  ;;  %s9947_s25 = smov %s7141_s26 }
 0x99d   : > { %s9945_s22 = sld [smem:[#allocation5_spill]] }
 0x99e   : > { %s9946_s27 = sld [smem:[#allocation7_spill]] }
 0x9a2   : > { %p23_p2 = scmp.ge.s32.totalorder %s9944_s28, 4  }
 0x9a3   : > { %s9948_s26 = smov %s9945_s22 }
 0x9a4   :  { %25 = sbr.rel (!%p23_p2) target bundleno = 3 (0x3), region = 107 }
 0x9a9   :  { %5586 = vsyncpa [#allocation3], 1 }
 0x9aa   :  { %5588 = vsyncpa [#allocation3 + $0x1], 1 }

</bundles_post_ra>
